<compile_context>
chip_gen: v5e
topology: v5e:2x2
jax: 0.10.0
libtpu: 0.0.40
codegen_flags: <defaults>
</compile_context>

<pallas_src>
import jax
import jax.numpy as jnp
from jax.experimental import pallas as pl
from jax.experimental.pallas import tpu as pltpu


C_PAD = 128          # lane padding for every channel dimension
PH, PW = 12, 16      # pooled conv1 spatial grid kept in VMEM (width 12 padded to 16)


def _vmem_spec():
    return pl.BlockSpec(memory_space=pltpu.MemorySpace.VMEM)


# ------------------------------ fused kernel --------------------------------

def fused_forward_kernel(p1_ref, w1_ref, b1_ref, w2_ref, b2_ref, sp_ref,
                         w3_ref, b3_ref, w4_ref, b4_ref, o_ref, z1_ref):
    B = o_ref.shape[0]
    rows1 = B * PH * PW          # rows per pool-parity block of the conv1 matmul

    # conv1 (im2col matmul; rows pre-ordered (hp, wp, b, ph, pw)) + pool1 + relu.
    w1 = w1_ref[...]
    m = None
    for blk in range(4):                                  # 4 corners of each 2x2 window
        part = jnp.dot(p1_ref[blk * rows1:(blk + 1) * rows1, :], w1,
                       preferred_element_type=jnp.float32)
        m = part if blk == 0 else jnp.maximum(m, part)
    z1 = jnp.maximum(m + b1_ref[...], 0.0)                # (B*192, 128) f32
    z1_ref[...] = z1.reshape(B, PH, PW, C_PAD)            # NHWC, W padded to 16

    # conv2 as shift-and-accumulate: 25 MXU matmuls over the 5x5 window.
    acc = jnp.zeros((B * 64, C_PAD), jnp.float32)
    for kh in range(5):
        for kw in range(5):
            slab = z1_ref[:, kh:kh + 8, kw:kw + 8, :].reshape(B * 64, C_PAD)
            acc = acc + jnp.dot(slab.astype(jnp.bfloat16), w2_ref[kh * 5 + kw],
                                preferred_element_type=jnp.float32)
    y2 = acc + b2_ref[...]                                # rows ordered (b, oh, ow)

    # pool2 + relu via exact 0/1 selection matmuls (pick the 4 window corners).
    z2 = None
    for c in range(4):
        part = jnp.dot(sp_ref[c], y2, preferred_element_type=jnp.float32)
        z2 = part if c == 0 else jnp.maximum(z2, part)
    z2 = jnp.maximum(z2, 0.0)                             # (16*B, 128), rows (pos, b)

    # fc1 + relu: sum of 16 per-spatial-position matmuls (NHWC-ordered weights).
    h = jnp.zeros((B, C_PAD), jnp.float32)
    for p in range(16):
        h = h + jnp.dot(z2[p * B:(p + 1) * B, :].astype(jnp.bfloat16), w3_ref[p],
                        preferred_element_type=jnp.float32)
    h = jnp.maximum(h + b3_ref[...], 0.0)                 # padded cols >= 64 stay 0

    # fc2 + log_softmax over the 3 real classes (padded lanes masked before reduce).
    logits = jnp.dot(h.astype(jnp.bfloat16), w4_ref[...],
                     preferred_element_type=jnp.float32) + b4_ref[...]
    col = jax.lax.broadcasted_iota(jnp.int32, logits.shape, 1)
    masked = jnp.where(col < 3, logits, -1e30)
    mx = jnp.max(masked, axis=-1, keepdims=True)
    s = masked - mx
    lse = jnp.log(jnp.sum(jnp.exp(s), axis=-1, keepdims=True))
    o_ref[...] = s - lse


# ------------------------------- host glue ----------------------------------

def _conv1_patches(x_nchw):
    """(B,1,28,28) -> (4*B*192, 25) bf16 im2col rows ordered (hp, wp, b, ph, pw).

    Row order groups the four 2x2-pool corners into contiguous blocks so pool1
    becomes a max over 4 row blocks inside the kernel.  The pooled width is
    padded 12 -> 16 (extra columns are never read by the conv2 window slices).
    """
    B = x_nchw.shape[0]
    x = x_nchw[:, 0]                                           # (B, 28, 28)
    xp = jnp.pad(x, ((0, 0), (0, 0), (0, 2 * PW + 4 - 28)))    # pad W: 28 -> 36
    cols = [xp[:, kh:kh + 2 * PH, kw:kw + 2 * PW]
            for kh in range(5) for kw in range(5)]
    pat = jnp.stack(cols, axis=-1)                             # (B, 24, 32, 25)
    pat = pat.reshape(B, PH, 2, PW, 2, 25)                     # (b, ph, hp, pw, wp, f)
    pat = jnp.transpose(pat, (2, 4, 0, 1, 3, 5))               # (hp, wp, b, ph, pw, f)
    return pat.reshape(4 * B * PH * PW, 25).astype(jnp.bfloat16)


def _pool2_select(B):
    """(4, 16*B, B*64) 0/1 matrices: entry [c, p*B+b, r] is 1 iff conv2-output row r
    (rows ordered (b, oh, ow), oh,ow in 0..7) is corner c of pooled position p of
    batch b."""
    hw = jnp.arange(4)[:, None, None]
    k = jnp.arange(16 * B)[None, :, None]
    r = jnp.arange(B * 64)[None, None, :]
    b, p = k % B, k // B
    ph, pw = p // 4, p % 4
    hp, wp = hw // 2, hw % 2
    tgt = b * 64 + (2 * ph + hp) * 8 + (2 * pw + wp)
    return (r == tgt).astype(jnp.float32)


# ------------------------------ parameters ----------------------------------

def init_params(key):
    """Deterministic PyTorch-like uniform(-1/sqrt(fan_in), 1/sqrt(fan_in)) init."""
    ks = jax.random.split(key, 8)

    def u(k, shape, fan_in):
        bound = 1.0 / float(fan_in) ** 0.5
        return jax.random.uniform(k, shape, jnp.float32, -bound, bound)

    return {
        "conv1_w": u(ks[0], (15, 1, 5, 5), 1 * 5 * 5),
        "conv1_b": u(ks[1], (15,), 1 * 5 * 5),
        "conv2_w": u(ks[2], (30, 15, 5, 5), 15 * 5 * 5),
        "conv2_b": u(ks[3], (30,), 15 * 5 * 5),
        "fc1_w": u(ks[4], (64, 480), 480),
        "fc1_b": u(ks[5], (64,), 480),
        "fc2_w": u(ks[6], (3, 64), 64),
        "fc2_b": u(ks[7], (3,), 64),
    }


def prepare_params(params):
    """One-time weight prep: reorder to NHWC / per-spatial-position layouts,
    zero-pad all channel dims to 128 lanes, cast MXU operands to bf16
    (biases and all epilogue math stay f32)."""
    f32, bf16 = jnp.float32, jnp.bfloat16

    w1 = params["conv1_w"].reshape(15, 25).T                       # (c_in*kh*kw, c_out)
    w1p = jnp.zeros((25, C_PAD), f32).at[:, :15].set(w1).astype(bf16)
    b1p = jnp.zeros((1, C_PAD), f32).at[0, :15].set(params["conv1_b"])

    w2 = jnp.transpose(params["conv2_w"], (2, 3, 1, 0)).reshape(25, 15, 30)
    w2p = jnp.zeros((25, C_PAD, C_PAD), f32).at[:, :15, :30].set(w2).astype(bf16)
    b2p = jnp.zeros((1, C_PAD), f32).at[0, :30].set(params["conv2_b"])

    w3 = jnp.transpose(params["fc1_w"].reshape(64, 30, 4, 4), (2, 3, 1, 0))
    w3 = w3.reshape(16, 30, 64)                                    # (h*4+w, c, out)
    w3p = jnp.zeros((16, C_PAD, C_PAD), f32).at[:, :30, :64].set(w3).astype(bf16)
    b3p = jnp.zeros((1, C_PAD), f32).at[0, :64].set(params["fc1_b"])

    w4p = jnp.zeros((C_PAD, C_PAD), f32).at[:64, :3].set(params["fc2_w"].T).astype(bf16)
    b4p = jnp.zeros((1, C_PAD), f32).at[0, :3].set(params["fc2_b"])

    return {"w1": w1p, "b1": b1p, "w2": w2p, "b2": b2p,
            "w3": w3p, "b3": b3p, "w4": w4p, "b4": b4p}


# -------------------------------- forward -----------------------------------

def forward(prep, x_nchw):
    B = x_nchw.shape[0]
    p1 = _conv1_patches(x_nchw)
    sp = _pool2_select(B)
    out = pl.pallas_call(
        fused_forward_kernel,
        out_shape=jax.ShapeDtypeStruct((B, C_PAD), jnp.float32),
        in_specs=[_vmem_spec()] * 10,
        out_specs=_vmem_spec(),
        scratch_shapes=[pltpu.VMEM((B, PH, PW, C_PAD), jnp.float32)],
    )(p1, prep["w1"], prep["b1"], prep["w2"], prep["b2"], sp,
      prep["w3"], prep["b3"], prep["w4"], prep["b4"])
    # TODO(synk): nn.Dropout(p=0.5) is declared in __init__ but never applied in
    # forward(), so it is intentionally omitted here.
    return out[:, :3]


if __name__ == "__main__":
    key = jax.random.PRNGKey(0)
    kp, kx = jax.random.split(key)
    params = init_params(kp)
    prep = prepare_params(params)

    # Input consistent with flatten -> 480: (B, 1, 28, 28) NCHW (MNIST-like).
    x = jax.random.normal(kx, (2, 1, 28, 28), jnp.float32)

    out = jax.jit(forward)(prep, x)
    jax.block_until_ready(out)

    assert out.shape == (2, 3), out.shape
    # log-softmax rows should exp-sum to ~1
    assert bool(jnp.all(jnp.abs(jnp.sum(jnp.exp(out), axis=-1) - 1.0) < 1e-3))
    print("KERNEL_OK")
</pallas_src>

<mosaic_0001>
module attributes {stable_mosaic.version = 11 : i64} {
  func.func @fused_forward_kernel(%arg0: memref<1536x25xbf16, #tpu.memory_space<vmem>>, %arg1: memref<25x128xbf16, #tpu.memory_space<vmem>>, %arg2: memref<1x128xf32, #tpu.memory_space<vmem>>, %arg3: memref<25x128x128xbf16, #tpu.memory_space<vmem>>, %arg4: memref<1x128xf32, #tpu.memory_space<vmem>>, %arg5: memref<4x32x128xf32, #tpu.memory_space<vmem>>, %arg6: memref<16x128x128xbf16, #tpu.memory_space<vmem>>, %arg7: memref<1x128xf32, #tpu.memory_space<vmem>>, %arg8: memref<128x128xbf16, #tpu.memory_space<vmem>>, %arg9: memref<1x128xf32, #tpu.memory_space<vmem>>, %arg10: memref<2x128xf32, #tpu.memory_space<vmem>>, %arg11: memref<2x12x16x128xf32, #tpu.memory_space<vmem>>) attributes {dimension_semantics = [], scalar_prefetch = 0 : i64, scratch_operands = 1 : i64, tpu.core_type = #tpu.core_type<tc>} {
    %c0 = arith.constant 0 : index
    %c0_0 = arith.constant 0 : index
    %0 = vector.load %arg1[%c0, %c0_0] : memref<25x128xbf16, #tpu.memory_space<vmem>>, vector<25x128xbf16>
    %c0_1 = arith.constant 0 : index
    %c0_2 = arith.constant 0 : index
    %1 = vector.load %arg0[%c0_1, %c0_2] : memref<1536x25xbf16, #tpu.memory_space<vmem>>, vector<384x25xbf16>
    %cst = arith.constant dense<0.000000e+00> : vector<384x128xf32>
    %2 = tpu.matmul %1, %0, %cst {dimension_numbers = #tpu.dot_dimension_numbers<[1], [0], [0], [1], [0, 0, 1, 1], [], []>} : vector<384x25xbf16>, vector<25x128xbf16>, vector<384x128xf32> -> vector<384x128xf32>
    %c384 = arith.constant 384 : index
    %c0_3 = arith.constant 0 : index
    %3 = vector.load %arg0[%c384, %c0_3] : memref<1536x25xbf16, #tpu.memory_space<vmem>>, vector<384x25xbf16>
    %cst_4 = arith.constant dense<0.000000e+00> : vector<384x128xf32>
    %4 = tpu.matmul %3, %0, %cst_4 {dimension_numbers = #tpu.dot_dimension_numbers<[1], [0], [0], [1], [0, 0, 1, 1], [], []>} : vector<384x25xbf16>, vector<25x128xbf16>, vector<384x128xf32> -> vector<384x128xf32>
    %5 = arith.maximumf %2, %4 : vector<384x128xf32>
    %c768 = arith.constant 768 : index
    %c0_5 = arith.constant 0 : index
    %6 = vector.load %arg0[%c768, %c0_5] : memref<1536x25xbf16, #tpu.memory_space<vmem>>, vector<384x25xbf16>
    %cst_6 = arith.constant dense<0.000000e+00> : vector<384x128xf32>
    %7 = tpu.matmul %6, %0, %cst_6 {dimension_numbers = #tpu.dot_dimension_numbers<[1], [0], [0], [1], [0, 0, 1, 1], [], []>} : vector<384x25xbf16>, vector<25x128xbf16>, vector<384x128xf32> -> vector<384x128xf32>
    %8 = arith.maximumf %5, %7 : vector<384x128xf32>
    %c1152 = arith.constant 1152 : index
    %c0_7 = arith.constant 0 : index
    %9 = vector.load %arg0[%c1152, %c0_7] : memref<1536x25xbf16, #tpu.memory_space<vmem>>, vector<384x25xbf16>
    %cst_8 = arith.constant dense<0.000000e+00> : vector<384x128xf32>
    %10 = tpu.matmul %9, %0, %cst_8 {dimension_numbers = #tpu.dot_dimension_numbers<[1], [0], [0], [1], [0, 0, 1, 1], [], []>} : vector<384x25xbf16>, vector<25x128xbf16>, vector<384x128xf32> -> vector<384x128xf32>
    %11 = arith.maximumf %8, %10 : vector<384x128xf32>
    %c0_9 = arith.constant 0 : index
    %c0_10 = arith.constant 0 : index
    %12 = vector.load %arg2[%c0_9, %c0_10] : memref<1x128xf32, #tpu.memory_space<vmem>>, vector<1x128xf32>
    %13 = vector.broadcast %12 : vector<1x128xf32> to vector<384x128xf32>
    %14 = arith.addf %11, %13 : vector<384x128xf32>
    %cst_11 = arith.constant 0.000000e+00 : f32
    %15 = vector.broadcast %cst_11 : f32 to vector<384x128xf32>
    %16 = arith.maximumf %14, %15 : vector<384x128xf32>
    %17 = vector.shape_cast %16 : vector<384x128xf32> to vector<2x12x16x128xf32>
    %c0_12 = arith.constant 0 : index
    %c0_13 = arith.constant 0 : index
    %c0_14 = arith.constant 0 : index
    %c0_15 = arith.constant 0 : index
    %18 = vector.load %arg11[%c0_12, %c0_13, %c0_14, %c0_15] : memref<2x12x16x128xf32, #tpu.memory_space<vmem>>, vector<2x12x16x128xf32>
    tpu.vector_store %arg11[%c0_12, %c0_13, %c0_14, %c0_15], %17 {strides = array<i32>} : memref<2x12x16x128xf32, #tpu.memory_space<vmem>>, vector<2x12x16x128xf32>,
    %cst_16 = arith.constant 0.000000e+00 : f32
    %19 = vector.broadcast %cst_16 : f32 to vector<128x128xf32>
    %c0_17 = arith.constant 0 : index
    %c0_18 = arith.constant 0 : index
    %c0_19 = arith.constant 0 : index
    %c0_20 = arith.constant 0 : index
    %20 = vector.load %arg11[%c0_17, %c0_18, %c0_19, %c0_20] : memref<2x12x16x128xf32, #tpu.memory_space<vmem>>, vector<2x8x8x128xf32>
    %21 = vector.shape_cast %20 : vector<2x8x8x128xf32> to vector<128x128xf32>
    %22 = arith.truncf %21 : vector<128x128xf32> to vector<128x128xbf16>
    %c0_21 = arith.constant 0 : index
    %c0_22 = arith.constant 0 : index
    %c0_23 = arith.constant 0 : index
    %23 = vector.load %arg3[%c0_21, %c0_22, %c0_23] : memref<25x128x128xbf16, #tpu.memory_space<vmem>>, vector<1x128x128xbf16>
    %24 = vector.shape_cast %23 : vector<1x128x128xbf16> to vector<128x128xbf16>
    %cst_24 = arith.constant dense<0.000000e+00> : vector<128x128xf32>
    %25 = tpu.matmul %22, %24, %cst_24 {dimension_numbers = #tpu.dot_dimension_numbers<[1], [0], [0], [1], [0, 0, 1, 1], [], []>} : vector<128x128xbf16>, vector<128x128xbf16>, vector<128x128xf32> -> vector<128x128xf32>
    %26 = arith.addf %19, %25 : vector<128x128xf32>
    %c0_25 = arith.constant 0 : index
    %c0_26 = arith.constant 0 : index
    %c1 = arith.constant 1 : index
    %c0_27 = arith.constant 0 : index
    %27 = vector.load %arg11[%c0_25, %c0_26, %c1, %c0_27] : memref<2x12x16x128xf32, #tpu.memory_space<vmem>>, vector<2x8x8x128xf32>
    %28 = vector.shape_cast %27 : vector<2x8x8x128xf32> to vector<128x128xf32>
    %29 = arith.truncf %28 : vector<128x128xf32> to vector<128x128xbf16>
    %c1_28 = arith.constant 1 : index
    %c0_29 = arith.constant 0 : index
    %c0_30 = arith.constant 0 : index
    %30 = vector.load %arg3[%c1_28, %c0_29, %c0_30] : memref<25x128x128xbf16, #tpu.memory_space<vmem>>, vector<1x128x128xbf16>
    %31 = vector.shape_cast %30 : vector<1x128x128xbf16> to vector<128x128xbf16>
    %cst_31 = arith.constant dense<0.000000e+00> : vector<128x128xf32>
    %32 = tpu.matmul %29, %31, %cst_31 {dimension_numbers = #tpu.dot_dimension_numbers<[1], [0], [0], [1], [0, 0, 1, 1], [], []>} : vector<128x128xbf16>, vector<128x128xbf16>, vector<128x128xf32> -> vector<128x128xf32>
    %33 = arith.addf %26, %32 : vector<128x128xf32>
    %c0_32 = arith.constant 0 : index
    %c0_33 = arith.constant 0 : index
    %c2 = arith.constant 2 : index
    %c0_34 = arith.constant 0 : index
    %34 = vector.load %arg11[%c0_32, %c0_33, %c2, %c0_34] : memref<2x12x16x128xf32, #tpu.memory_space<vmem>>, vector<2x8x8x128xf32>
    %35 = vector.shape_cast %34 : vector<2x8x8x128xf32> to vector<128x128xf32>
    %36 = arith.truncf %35 : vector<128x128xf32> to vector<128x128xbf16>
    %c2_35 = arith.constant 2 : index
    %c0_36 = arith.constant 0 : index
    %c0_37 = arith.constant 0 : index
    %37 = vector.load %arg3[%c2_35, %c0_36, %c0_37] : memref<25x128x128xbf16, #tpu.memory_space<vmem>>, vector<1x128x128xbf16>
    %38 = vector.shape_cast %37 : vector<1x128x128xbf16> to vector<128x128xbf16>
    %cst_38 = arith.constant dense<0.000000e+00> : vector<128x128xf32>
    %39 = tpu.matmul %36, %38, %cst_38 {dimension_numbers = #tpu.dot_dimension_numbers<[1], [0], [0], [1], [0, 0, 1, 1], [], []>} : vector<128x128xbf16>, vector<128x128xbf16>, vector<128x128xf32> -> vector<128x128xf32>
    %40 = arith.addf %33, %39 : vector<128x128xf32>
    %c0_39 = arith.constant 0 : index
    %c0_40 = arith.constant 0 : index
    %c3 = arith.constant 3 : index
    %c0_41 = arith.constant 0 : index
    %41 = vector.load %arg11[%c0_39, %c0_40, %c3, %c0_41] : memref<2x12x16x128xf32, #tpu.memory_space<vmem>>, vector<2x8x8x128xf32>
    %42 = vector.shape_cast %41 : vector<2x8x8x128xf32> to vector<128x128xf32>
    %43 = arith.truncf %42 : vector<128x128xf32> to vector<128x128xbf16>
    %c3_42 = arith.constant 3 : index
    %c0_43 = arith.constant 0 : index
    %c0_44 = arith.constant 0 : index
    %44 = vector.load %arg3[%c3_42, %c0_43, %c0_44] : memref<25x128x128xbf16, #tpu.memory_space<vmem>>, vector<1x128x128xbf16>
    %45 = vector.shape_cast %44 : vector<1x128x128xbf16> to vector<128x128xbf16>
    %cst_45 = arith.constant dense<0.000000e+00> : vector<128x128xf32>
    %46 = tpu.matmul %43, %45, %cst_45 {dimension_numbers = #tpu.dot_dimension_numbers<[1], [0], [0], [1], [0, 0, 1, 1], [], []>} : vector<128x128xbf16>, vector<128x128xbf16>, vector<128x128xf32> -> vector<128x128xf32>
    %47 = arith.addf %40, %46 : vector<128x128xf32>
    %c0_46 = arith.constant 0 : index
    %c0_47 = arith.constant 0 : index
    %c4 = arith.constant 4 : index
    %c0_48 = arith.constant 0 : index
    %48 = vector.load %arg11[%c0_46, %c0_47, %c4, %c0_48] : memref<2x12x16x128xf32, #tpu.memory_space<vmem>>, vector<2x8x8x128xf32>
    %49 = vector.shape_cast %48 : vector<2x8x8x128xf32> to vector<128x128xf32>
    %50 = arith.truncf %49 : vector<128x128xf32> to vector<128x128xbf16>
    %c4_49 = arith.constant 4 : index
    %c0_50 = arith.constant 0 : index
    %c0_51 = arith.constant 0 : index
    %51 = vector.load %arg3[%c4_49, %c0_50, %c0_51] : memref<25x128x128xbf16, #tpu.memory_space<vmem>>, vector<1x128x128xbf16>
    %52 = vector.shape_cast %51 : vector<1x128x128xbf16> to vector<128x128xbf16>
    %cst_52 = arith.constant dense<0.000000e+00> : vector<128x128xf32>
    %53 = tpu.matmul %50, %52, %cst_52 {dimension_numbers = #tpu.dot_dimension_numbers<[1], [0], [0], [1], [0, 0, 1, 1], [], []>} : vector<128x128xbf16>, vector<128x128xbf16>, vector<128x128xf32> -> vector<128x128xf32>
    %54 = arith.addf %47, %53 : vector<128x128xf32>
    %c0_53 = arith.constant 0 : index
    %c1_54 = arith.constant 1 : index
    %c0_55 = arith.constant 0 : index
    %c0_56 = arith.constant 0 : index
    %55 = vector.load %arg11[%c0_53, %c1_54, %c0_55, %c0_56] : memref<2x12x16x128xf32, #tpu.memory_space<vmem>>, vector<2x8x8x128xf32>
    %56 = vector.shape_cast %55 : vector<2x8x8x128xf32> to vector<128x128xf32>
    %57 = arith.truncf %56 : vector<128x128xf32> to vector<128x128xbf16>
    %c5 = arith.constant 5 : index
    %c0_57 = arith.constant 0 : index
    %c0_58 = arith.constant 0 : index
    %58 = vector.load %arg3[%c5, %c0_57, %c0_58] : memref<25x128x128xbf16, #tpu.memory_space<vmem>>, vector<1x128x128xbf16>
    %59 = vector.shape_cast %58 : vector<1x128x128xbf16> to vector<128x128xbf16>
    %cst_59 = arith.constant dense<0.000000e+00> : vector<128x128xf32>
    %60 = tpu.matmul %57, %59, %cst_59 {dimension_numbers = #tpu.dot_dimension_numbers<[1], [0], [0], [1], [0, 0, 1, 1], [], []>} : vector<128x128xbf16>, vector<128x128xbf16>, vector<128x128xf32> -> vector<128x128xf32>
    %61 = arith.addf %54, %60 : vector<128x128xf32>
    %c0_60 = arith.constant 0 : index
    %c1_61 = arith.constant 1 : index
    %c1_62 = arith.constant 1 : index
    %c0_63 = arith.constant 0 : index
    %62 = vector.load %arg11[%c0_60, %c1_61, %c1_62, %c0_63] : memref<2x12x16x128xf32, #tpu.memory_space<vmem>>, vector<2x8x8x128xf32>
    %63 = vector.shape_cast %62 : vector<2x8x8x128xf32> to vector<128x128xf32>
    %64 = arith.truncf %63 : vector<128x128xf32> to vector<128x128xbf16>
    %c6 = arith.constant 6 : index
    %c0_64 = arith.constant 0 : index
    %c0_65 = arith.constant 0 : index
    %65 = vector.load %arg3[%c6, %c0_64, %c0_65] : memref<25x128x128xbf16, #tpu.memory_space<vmem>>, vector<1x128x128xbf16>
    %66 = vector.shape_cast %65 : vector<1x128x128xbf16> to vector<128x128xbf16>
    %cst_66 = arith.constant dense<0.000000e+00> : vector<128x128xf32>
    %67 = tpu.matmul %64, %66, %cst_66 {dimension_numbers = #tpu.dot_dimension_numbers<[1], [0], [0], [1], [0, 0, 1, 1], [], []>} : vector<128x128xbf16>, vector<128x128xbf16>, vector<128x128xf32> -> vector<128x128xf32>
    %68 = arith.addf %61, %67 : vector<128x128xf32>
    %c0_67 = arith.constant 0 : index
    %c1_68 = arith.constant 1 : index
    %c2_69 = arith.constant 2 : index
    %c0_70 = arith.constant 0 : index
    %69 = vector.load %arg11[%c0_67, %c1_68, %c2_69, %c0_70] : memref<2x12x16x128xf32, #tpu.memory_space<vmem>>, vector<2x8x8x128xf32>
    %70 = vector.shape_cast %69 : vector<2x8x8x128xf32> to vector<128x128xf32>
    %71 = arith.truncf %70 : vector<128x128xf32> to vector<128x128xbf16>
    %c7 = arith.constant 7 : index
    %c0_71 = arith.constant 0 : index
    %c0_72 = arith.constant 0 : index
    %72 = vector.load %arg3[%c7, %c0_71, %c0_72] : memref<25x128x128xbf16, #tpu.memory_space<vmem>>, vector<1x128x128xbf16>
    %73 = vector.shape_cast %72 : vector<1x128x128xbf16> to vector<128x128xbf16>
    %cst_73 = arith.constant dense<0.000000e+00> : vector<128x128xf32>
    %74 = tpu.matmul %71, %73, %cst_73 {dimension_numbers = #tpu.dot_dimension_numbers<[1], [0], [0], [1], [0, 0, 1, 1], [], []>} : vector<128x128xbf16>, vector<128x128xbf16>, vector<128x128xf32> -> vector<128x128xf32>
    %75 = arith.addf %68, %74 : vector<128x128xf32>
    %c0_74 = arith.constant 0 : index
    %c1_75 = arith.constant 1 : index
    %c3_76 = arith.constant 3 : index
    %c0_77 = arith.constant 0 : index
    %76 = vector.load %arg11[%c0_74, %c1_75, %c3_76, %c0_77] : memref<2x12x16x128xf32, #tpu.memory_space<vmem>>, vector<2x8x8x128xf32>
    %77 = vector.shape_cast %76 : vector<2x8x8x128xf32> to vector<128x128xf32>
    %78 = arith.truncf %77 : vector<128x128xf32> to vector<128x128xbf16>
    %c8 = arith.constant 8 : index
    %c0_78 = arith.constant 0 : index
    %c0_79 = arith.constant 0 : index
    %79 = vector.load %arg3[%c8, %c0_78, %c0_79] : memref<25x128x128xbf16, #tpu.memory_space<vmem>>, vector<1x128x128xbf16>
    %80 = vector.shape_cast %79 : vector<1x128x128xbf16> to vector<128x128xbf16>
    %cst_80 = arith.constant dense<0.000000e+00> : vector<128x128xf32>
    %81 = tpu.matmul %78, %80, %cst_80 {dimension_numbers = #tpu.dot_dimension_numbers<[1], [0], [0], [1], [0, 0, 1, 1], [], []>} : vector<128x128xbf16>, vector<128x128xbf16>, vector<128x128xf32> -> vector<128x128xf32>
    %82 = arith.addf %75, %81 : vector<128x128xf32>
    %c0_81 = arith.constant 0 : index
    %c1_82 = arith.constant 1 : index
    %c4_83 = arith.constant 4 : index
    %c0_84 = arith.constant 0 : index
    %83 = vector.load %arg11[%c0_81, %c1_82, %c4_83, %c0_84] : memref<2x12x16x128xf32, #tpu.memory_space<vmem>>, vector<2x8x8x128xf32>
    %84 = vector.shape_cast %83 : vector<2x8x8x128xf32> to vector<128x128xf32>
    %85 = arith.truncf %84 : vector<128x128xf32> to vector<128x128xbf16>
    %c9 = arith.constant 9 : index
    %c0_85 = arith.constant 0 : index
    %c0_86 = arith.constant 0 : index
    %86 = vector.load %arg3[%c9, %c0_85, %c0_86] : memref<25x128x128xbf16, #tpu.memory_space<vmem>>, vector<1x128x128xbf16>
    %87 = vector.shape_cast %86 : vector<1x128x128xbf16> to vector<128x128xbf16>
    %cst_87 = arith.constant dense<0.000000e+00> : vector<128x128xf32>
    %88 = tpu.matmul %85, %87, %cst_87 {dimension_numbers = #tpu.dot_dimension_numbers<[1], [0], [0], [1], [0, 0, 1, 1], [], []>} : vector<128x128xbf16>, vector<128x128xbf16>, vector<128x128xf32> -> vector<128x128xf32>
    %89 = arith.addf %82, %88 : vector<128x128xf32>
    %c0_88 = arith.constant 0 : index
    %c2_89 = arith.constant 2 : index
    %c0_90 = arith.constant 0 : index
    %c0_91 = arith.constant 0 : index
    %90 = vector.load %arg11[%c0_88, %c2_89, %c0_90, %c0_91] : memref<2x12x16x128xf32, #tpu.memory_space<vmem>>, vector<2x8x8x128xf32>
    %91 = vector.shape_cast %90 : vector<2x8x8x128xf32> to vector<128x128xf32>
    %92 = arith.truncf %91 : vector<128x128xf32> to vector<128x128xbf16>
    %c10 = arith.constant 10 : index
    %c0_92 = arith.constant 0 : index
    %c0_93 = arith.constant 0 : index
    %93 = vector.load %arg3[%c10, %c0_92, %c0_93] : memref<25x128x128xbf16, #tpu.memory_space<vmem>>, vector<1x128x128xbf16>
    %94 = vector.shape_cast %93 : vector<1x128x128xbf16> to vector<128x128xbf16>
    %cst_94 = arith.constant dense<0.000000e+00> : vector<128x128xf32>
    %95 = tpu.matmul %92, %94, %cst_94 {dimension_numbers = #tpu.dot_dimension_numbers<[1], [0], [0], [1], [0, 0, 1, 1], [], []>} : vector<128x128xbf16>, vector<128x128xbf16>, vector<128x128xf32> -> vector<128x128xf32>
    %96 = arith.addf %89, %95 : vector<128x128xf32>
    %c0_95 = arith.constant 0 : index
    %c2_96 = arith.constant 2 : index
    %c1_97 = arith.constant 1 : index
    %c0_98 = arith.constant 0 : index
    %97 = vector.load %arg11[%c0_95, %c2_96, %c1_97, %c0_98] : memref<2x12x16x128xf32, #tpu.memory_space<vmem>>, vector<2x8x8x128xf32>
    %98 = vector.shape_cast %97 : vector<2x8x8x128xf32> to vector<128x128xf32>
    %99 = arith.truncf %98 : vector<128x128xf32> to vector<128x128xbf16>
    %c11 = arith.constant 11 : index
    %c0_99 = arith.constant 0 : index
    %c0_100 = arith.constant 0 : index
    %100 = vector.load %arg3[%c11, %c0_99, %c0_100] : memref<25x128x128xbf16, #tpu.memory_space<vmem>>, vector<1x128x128xbf16>
    %101 = vector.shape_cast %100 : vector<1x128x128xbf16> to vector<128x128xbf16>
    %cst_101 = arith.constant dense<0.000000e+00> : vector<128x128xf32>
    %102 = tpu.matmul %99, %101, %cst_101 {dimension_numbers = #tpu.dot_dimension_numbers<[1], [0], [0], [1], [0, 0, 1, 1], [], []>} : vector<128x128xbf16>, vector<128x128xbf16>, vector<128x128xf32> -> vector<128x128xf32>
    %103 = arith.addf %96, %102 : vector<128x128xf32>
    %c0_102 = arith.constant 0 : index
    %c2_103 = arith.constant 2 : index
    %c2_104 = arith.constant 2 : index
    %c0_105 = arith.constant 0 : index
    %104 = vector.load %arg11[%c0_102, %c2_103, %c2_104, %c0_105] : memref<2x12x16x128xf32, #tpu.memory_space<vmem>>, vector<2x8x8x128xf32>
    %105 = vector.shape_cast %104 : vector<2x8x8x128xf32> to vector<128x128xf32>
    %106 = arith.truncf %105 : vector<128x128xf32> to vector<128x128xbf16>
    %c12 = arith.constant 12 : index
    %c0_106 = arith.constant 0 : index
    %c0_107 = arith.constant 0 : index
    %107 = vector.load %arg3[%c12, %c0_106, %c0_107] : memref<25x128x128xbf16, #tpu.memory_space<vmem>>, vector<1x128x128xbf16>
    %108 = vector.shape_cast %107 : vector<1x128x128xbf16> to vector<128x128xbf16>
    %cst_108 = arith.constant dense<0.000000e+00> : vector<128x128xf32>
    %109 = tpu.matmul %106, %108, %cst_108 {dimension_numbers = #tpu.dot_dimension_numbers<[1], [0], [0], [1], [0, 0, 1, 1], [], []>} : vector<128x128xbf16>, vector<128x128xbf16>, vector<128x128xf32> -> vector<128x128xf32>
    %110 = arith.addf %103, %109 : vector<128x128xf32>
    %c0_109 = arith.constant 0 : index
    %c2_110 = arith.constant 2 : index
    %c3_111 = arith.constant 3 : index
    %c0_112 = arith.constant 0 : index
    %111 = vector.load %arg11[%c0_109, %c2_110, %c3_111, %c0_112] : memref<2x12x16x128xf32, #tpu.memory_space<vmem>>, vector<2x8x8x128xf32>
    %112 = vector.shape_cast %111 : vector<2x8x8x128xf32> to vector<128x128xf32>
    %113 = arith.truncf %112 : vector<128x128xf32> to vector<128x128xbf16>
    %c13 = arith.constant 13 : index
    %c0_113 = arith.constant 0 : index
    %c0_114 = arith.constant 0 : index
    %114 = vector.load %arg3[%c13, %c0_113, %c0_114] : memref<25x128x128xbf16, #tpu.memory_space<vmem>>, vector<1x128x128xbf16>
    %115 = vector.shape_cast %114 : vector<1x128x128xbf16> to vector<128x128xbf16>
    %cst_115 = arith.constant dense<0.000000e+00> : vector<128x128xf32>
    %116 = tpu.matmul %113, %115, %cst_115 {dimension_numbers = #tpu.dot_dimension_numbers<[1], [0], [0], [1], [0, 0, 1, 1], [], []>} : vector<128x128xbf16>, vector<128x128xbf16>, vector<128x128xf32> -> vector<128x128xf32>
    %117 = arith.addf %110, %116 : vector<128x128xf32>
    %c0_116 = arith.constant 0 : index
    %c2_117 = arith.constant 2 : index
    %c4_118 = arith.constant 4 : index
    %c0_119 = arith.constant 0 : index
    %118 = vector.load %arg11[%c0_116, %c2_117, %c4_118, %c0_119] : memref<2x12x16x128xf32, #tpu.memory_space<vmem>>, vector<2x8x8x128xf32>
    %119 = vector.shape_cast %118 : vector<2x8x8x128xf32> to vector<128x128xf32>
    %120 = arith.truncf %119 : vector<128x128xf32> to vector<128x128xbf16>
    %c14 = arith.constant 14 : index
    %c0_120 = arith.constant 0 : index
    %c0_121 = arith.constant 0 : index
    %121 = vector.load %arg3[%c14, %c0_120, %c0_121] : memref<25x128x128xbf16, #tpu.memory_space<vmem>>, vector<1x128x128xbf16>
    %122 = vector.shape_cast %121 : vector<1x128x128xbf16> to vector<128x128xbf16>
    %cst_122 = arith.constant dense<0.000000e+00> : vector<128x128xf32>
    %123 = tpu.matmul %120, %122, %cst_122 {dimension_numbers = #tpu.dot_dimension_numbers<[1], [0], [0], [1], [0, 0, 1, 1], [], []>} : vector<128x128xbf16>, vector<128x128xbf16>, vector<128x128xf32> -> vector<128x128xf32>
    %124 = arith.addf %117, %123 : vector<128x128xf32>
    %c0_123 = arith.constant 0 : index
    %c3_124 = arith.constant 3 : index
    %c0_125 = arith.constant 0 : index
    %c0_126 = arith.constant 0 : index
    %125 = vector.load %arg11[%c0_123, %c3_124, %c0_125, %c0_126] : memref<2x12x16x128xf32, #tpu.memory_space<vmem>>, vector<2x8x8x128xf32>
    %126 = vector.shape_cast %125 : vector<2x8x8x128xf32> to vector<128x128xf32>
    %127 = arith.truncf %126 : vector<128x128xf32> to vector<128x128xbf16>
    %c15 = arith.constant 15 : index
    %c0_127 = arith.constant 0 : index
    %c0_128 = arith.constant 0 : index
    %128 = vector.load %arg3[%c15, %c0_127, %c0_128] : memref<25x128x128xbf16, #tpu.memory_space<vmem>>, vector<1x128x128xbf16>
    %129 = vector.shape_cast %128 : vector<1x128x128xbf16> to vector<128x128xbf16>
    %cst_129 = arith.constant dense<0.000000e+00> : vector<128x128xf32>
    %130 = tpu.matmul %127, %129, %cst_129 {dimension_numbers = #tpu.dot_dimension_numbers<[1], [0], [0], [1], [0, 0, 1, 1], [], []>} : vector<128x128xbf16>, vector<128x128xbf16>, vector<128x128xf32> -> vector<128x128xf32>
    %131 = arith.addf %124, %130 : vector<128x128xf32>
    %c0_130 = arith.constant 0 : index
    %c3_131 = arith.constant 3 : index
    %c1_132 = arith.constant 1 : index
    %c0_133 = arith.constant 0 : index
    %132 = vector.load %arg11[%c0_130, %c3_131, %c1_132, %c0_133] : memref<2x12x16x128xf32, #tpu.memory_space<vmem>>, vector<2x8x8x128xf32>
    %133 = vector.shape_cast %132 : vector<2x8x8x128xf32> to vector<128x128xf32>
    %134 = arith.truncf %133 : vector<128x128xf32> to vector<128x128xbf16>
    %c16 = arith.constant 16 : index
    %c0_134 = arith.constant 0 : index
    %c0_135 = arith.constant 0 : index
    %135 = vector.load %arg3[%c16, %c0_134, %c0_135] : memref<25x128x128xbf16, #tpu.memory_space<vmem>>, vector<1x128x128xbf16>
    %136 = vector.shape_cast %135 : vector<1x128x128xbf16> to vector<128x128xbf16>
    %cst_136 = arith.constant dense<0.000000e+00> : vector<128x128xf32>
    %137 = tpu.matmul %134, %136, %cst_136 {dimension_numbers = #tpu.dot_dimension_numbers<[1], [0], [0], [1], [0, 0, 1, 1], [], []>} : vector<128x128xbf16>, vector<128x128xbf16>, vector<128x128xf32> -> vector<128x128xf32>
    %138 = arith.addf %131, %137 : vector<128x128xf32>
    %c0_137 = arith.constant 0 : index
    %c3_138 = arith.constant 3 : index
    %c2_139 = arith.constant 2 : index
    %c0_140 = arith.constant 0 : index
    %139 = vector.load %arg11[%c0_137, %c3_138, %c2_139, %c0_140] : memref<2x12x16x128xf32, #tpu.memory_space<vmem>>, vector<2x8x8x128xf32>
    %140 = vector.shape_cast %139 : vector<2x8x8x128xf32> to vector<128x128xf32>
    %141 = arith.truncf %140 : vector<128x128xf32> to vector<128x128xbf16>
    %c17 = arith.constant 17 : index
    %c0_141 = arith.constant 0 : index
    %c0_142 = arith.constant 0 : index
    %142 = vector.load %arg3[%c17, %c0_141, %c0_142] : memref<25x128x128xbf16, #tpu.memory_space<vmem>>, vector<1x128x128xbf16>
    %143 = vector.shape_cast %142 : vector<1x128x128xbf16> to vector<128x128xbf16>
    %cst_143 = arith.constant dense<0.000000e+00> : vector<128x128xf32>
    %144 = tpu.matmul %141, %143, %cst_143 {dimension_numbers = #tpu.dot_dimension_numbers<[1], [0], [0], [1], [0, 0, 1, 1], [], []>} : vector<128x128xbf16>, vector<128x128xbf16>, vector<128x128xf32> -> vector<128x128xf32>
    %145 = arith.addf %138, %144 : vector<128x128xf32>
    %c0_144 = arith.constant 0 : index
    %c3_145 = arith.constant 3 : index
    %c3_146 = arith.constant 3 : index
    %c0_147 = arith.constant 0 : index
    %146 = vector.load %arg11[%c0_144, %c3_145, %c3_146, %c0_147] : memref<2x12x16x128xf32, #tpu.memory_space<vmem>>, vector<2x8x8x128xf32>
    %147 = vector.shape_cast %146 : vector<2x8x8x128xf32> to vector<128x128xf32>
    %148 = arith.truncf %147 : vector<128x128xf32> to vector<128x128xbf16>
    %c18 = arith.constant 18 : index
    %c0_148 = arith.constant 0 : index
    %c0_149 = arith.constant 0 : index
    %149 = vector.load %arg3[%c18, %c0_148, %c0_149] : memref<25x128x128xbf16, #tpu.memory_space<vmem>>, vector<1x128x128xbf16>
    %150 = vector.shape_cast %149 : vector<1x128x128xbf16> to vector<128x128xbf16>
    %cst_150 = arith.constant dense<0.000000e+00> : vector<128x128xf32>
    %151 = tpu.matmul %148, %150, %cst_150 {dimension_numbers = #tpu.dot_dimension_numbers<[1], [0], [0], [1], [0, 0, 1, 1], [], []>} : vector<128x128xbf16>, vector<128x128xbf16>, vector<128x128xf32> -> vector<128x128xf32>
    %152 = arith.addf %145, %151 : vector<128x128xf32>
    %c0_151 = arith.constant 0 : index
    %c3_152 = arith.constant 3 : index
    %c4_153 = arith.constant 4 : index
    %c0_154 = arith.constant 0 : index
    %153 = vector.load %arg11[%c0_151, %c3_152, %c4_153, %c0_154] : memref<2x12x16x128xf32, #tpu.memory_space<vmem>>, vector<2x8x8x128xf32>
    %154 = vector.shape_cast %153 : vector<2x8x8x128xf32> to vector<128x128xf32>
    %155 = arith.truncf %154 : vector<128x128xf32> to vector<128x128xbf16>
    %c19 = arith.constant 19 : index
    %c0_155 = arith.constant 0 : index
    %c0_156 = arith.constant 0 : index
    %156 = vector.load %arg3[%c19, %c0_155, %c0_156] : memref<25x128x128xbf16, #tpu.memory_space<vmem>>, vector<1x128x128xbf16>
    %157 = vector.shape_cast %156 : vector<1x128x128xbf16> to vector<128x128xbf16>
    %cst_157 = arith.constant dense<0.000000e+00> : vector<128x128xf32>
    %158 = tpu.matmul %155, %157, %cst_157 {dimension_numbers = #tpu.dot_dimension_numbers<[1], [0], [0], [1], [0, 0, 1, 1], [], []>} : vector<128x128xbf16>, vector<128x128xbf16>, vector<128x128xf32> -> vector<128x128xf32>
    %159 = arith.addf %152, %158 : vector<128x128xf32>
    %c0_158 = arith.constant 0 : index
    %c4_159 = arith.constant 4 : index
    %c0_160 = arith.constant 0 : index
    %c0_161 = arith.constant 0 : index
    %160 = vector.load %arg11[%c0_158, %c4_159, %c0_160, %c0_161] : memref<2x12x16x128xf32, #tpu.memory_space<vmem>>, vector<2x8x8x128xf32>
    %161 = vector.shape_cast %160 : vector<2x8x8x128xf32> to vector<128x128xf32>
    %162 = arith.truncf %161 : vector<128x128xf32> to vector<128x128xbf16>
    %c20 = arith.constant 20 : index
    %c0_162 = arith.constant 0 : index
    %c0_163 = arith.constant 0 : index
    %163 = vector.load %arg3[%c20, %c0_162, %c0_163] : memref<25x128x128xbf16, #tpu.memory_space<vmem>>, vector<1x128x128xbf16>
    %164 = vector.shape_cast %163 : vector<1x128x128xbf16> to vector<128x128xbf16>
    %cst_164 = arith.constant dense<0.000000e+00> : vector<128x128xf32>
    %165 = tpu.matmul %162, %164, %cst_164 {dimension_numbers = #tpu.dot_dimension_numbers<[1], [0], [0], [1], [0, 0, 1, 1], [], []>} : vector<128x128xbf16>, vector<128x128xbf16>, vector<128x128xf32> -> vector<128x128xf32>
    %166 = arith.addf %159, %165 : vector<128x128xf32>
    %c0_165 = arith.constant 0 : index
    %c4_166 = arith.constant 4 : index
    %c1_167 = arith.constant 1 : index
    %c0_168 = arith.constant 0 : index
    %167 = vector.load %arg11[%c0_165, %c4_166, %c1_167, %c0_168] : memref<2x12x16x128xf32, #tpu.memory_space<vmem>>, vector<2x8x8x128xf32>
    %168 = vector.shape_cast %167 : vector<2x8x8x128xf32> to vector<128x128xf32>
    %169 = arith.truncf %168 : vector<128x128xf32> to vector<128x128xbf16>
    %c21 = arith.constant 21 : index
    %c0_169 = arith.constant 0 : index
    %c0_170 = arith.constant 0 : index
    %170 = vector.load %arg3[%c21, %c0_169, %c0_170] : memref<25x128x128xbf16, #tpu.memory_space<vmem>>, vector<1x128x128xbf16>
    %171 = vector.shape_cast %170 : vector<1x128x128xbf16> to vector<128x128xbf16>
    %cst_171 = arith.constant dense<0.000000e+00> : vector<128x128xf32>
    %172 = tpu.matmul %169, %171, %cst_171 {dimension_numbers = #tpu.dot_dimension_numbers<[1], [0], [0], [1], [0, 0, 1, 1], [], []>} : vector<128x128xbf16>, vector<128x128xbf16>, vector<128x128xf32> -> vector<128x128xf32>
    %173 = arith.addf %166, %172 : vector<128x128xf32>
    %c0_172 = arith.constant 0 : index
    %c4_173 = arith.constant 4 : index
    %c2_174 = arith.constant 2 : index
    %c0_175 = arith.constant 0 : index
    %174 = vector.load %arg11[%c0_172, %c4_173, %c2_174, %c0_175] : memref<2x12x16x128xf32, #tpu.memory_space<vmem>>, vector<2x8x8x128xf32>
    %175 = vector.shape_cast %174 : vector<2x8x8x128xf32> to vector<128x128xf32>
    %176 = arith.truncf %175 : vector<128x128xf32> to vector<128x128xbf16>
    %c22 = arith.constant 22 : index
    %c0_176 = arith.constant 0 : index
    %c0_177 = arith.constant 0 : index
    %177 = vector.load %arg3[%c22, %c0_176, %c0_177] : memref<25x128x128xbf16, #tpu.memory_space<vmem>>, vector<1x128x128xbf16>
    %178 = vector.shape_cast %177 : vector<1x128x128xbf16> to vector<128x128xbf16>
    %cst_178 = arith.constant dense<0.000000e+00> : vector<128x128xf32>
    %179 = tpu.matmul %176, %178, %cst_178 {dimension_numbers = #tpu.dot_dimension_numbers<[1], [0], [0], [1], [0, 0, 1, 1], [], []>} : vector<128x128xbf16>, vector<128x128xbf16>, vector<128x128xf32> -> vector<128x128xf32>
    %180 = arith.addf %173, %179 : vector<128x128xf32>
    %c0_179 = arith.constant 0 : index
    %c4_180 = arith.constant 4 : index
    %c3_181 = arith.constant 3 : index
    %c0_182 = arith.constant 0 : index
    %181 = vector.load %arg11[%c0_179, %c4_180, %c3_181, %c0_182] : memref<2x12x16x128xf32, #tpu.memory_space<vmem>>, vector<2x8x8x128xf32>
    %182 = vector.shape_cast %181 : vector<2x8x8x128xf32> to vector<128x128xf32>
    %183 = arith.truncf %182 : vector<128x128xf32> to vector<128x128xbf16>
    %c23 = arith.constant 23 : index
    %c0_183 = arith.constant 0 : index
    %c0_184 = arith.constant 0 : index
    %184 = vector.load %arg3[%c23, %c0_183, %c0_184] : memref<25x128x128xbf16, #tpu.memory_space<vmem>>, vector<1x128x128xbf16>
    %185 = vector.shape_cast %184 : vector<1x128x128xbf16> to vector<128x128xbf16>
    %cst_185 = arith.constant dense<0.000000e+00> : vector<128x128xf32>
    %186 = tpu.matmul %183, %185, %cst_185 {dimension_numbers = #tpu.dot_dimension_numbers<[1], [0], [0], [1], [0, 0, 1, 1], [], []>} : vector<128x128xbf16>, vector<128x128xbf16>, vector<128x128xf32> -> vector<128x128xf32>
    %187 = arith.addf %180, %186 : vector<128x128xf32>
    %c0_186 = arith.constant 0 : index
    %c4_187 = arith.constant 4 : index
    %c4_188 = arith.constant 4 : index
    %c0_189 = arith.constant 0 : index
    %188 = vector.load %arg11[%c0_186, %c4_187, %c4_188, %c0_189] : memref<2x12x16x128xf32, #tpu.memory_space<vmem>>, vector<2x8x8x128xf32>
    %189 = vector.shape_cast %188 : vector<2x8x8x128xf32> to vector<128x128xf32>
    %190 = arith.truncf %189 : vector<128x128xf32> to vector<128x128xbf16>
    %c24 = arith.constant 24 : index
    %c0_190 = arith.constant 0 : index
    %c0_191 = arith.constant 0 : index
    %191 = vector.load %arg3[%c24, %c0_190, %c0_191] : memref<25x128x128xbf16, #tpu.memory_space<vmem>>, vector<1x128x128xbf16>
    %192 = vector.shape_cast %191 : vector<1x128x128xbf16> to vector<128x128xbf16>
    %cst_192 = arith.constant dense<0.000000e+00> : vector<128x128xf32>
    %193 = tpu.matmul %190, %192, %cst_192 {dimension_numbers = #tpu.dot_dimension_numbers<[1], [0], [0], [1], [0, 0, 1, 1], [], []>} : vector<128x128xbf16>, vector<128x128xbf16>, vector<128x128xf32> -> vector<128x128xf32>
    %194 = arith.addf %187, %193 : vector<128x128xf32>
    %c0_193 = arith.constant 0 : index
    %c0_194 = arith.constant 0 : index
    %195 = vector.load %arg4[%c0_193, %c0_194] : memref<1x128xf32, #tpu.memory_space<vmem>>, vector<1x128xf32>
    %196 = vector.broadcast %195 : vector<1x128xf32> to vector<128x128xf32>
    %197 = arith.addf %194, %196 : vector<128x128xf32>
    %c0_195 = arith.constant 0 : index
    %c0_196 = arith.constant 0 : index
    %c0_197 = arith.constant 0 : index
    %198 = vector.load %arg5[%c0_195, %c0_196, %c0_197] : memref<4x32x128xf32, #tpu.memory_space<vmem>>, vector<1x32x128xf32>
    %199 = vector.shape_cast %198 : vector<1x32x128xf32> to vector<32x128xf32>
    %cst_198 = arith.constant dense<0.000000e+00> : vector<32x128xf32>
    %200 = tpu.matmul %199, %197, %cst_198 {dimension_numbers = #tpu.dot_dimension_numbers<[1], [0], [0], [1], [0, 0, 1, 1], [], []>} : vector<32x128xf32>, vector<128x128xf32>, vector<32x128xf32> -> vector<32x128xf32>
    %c1_199 = arith.constant 1 : index
    %c0_200 = arith.constant 0 : index
    %c0_201 = arith.constant 0 : index
    %201 = vector.load %arg5[%c1_199, %c0_200, %c0_201] : memref<4x32x128xf32, #tpu.memory_space<vmem>>, vector<1x32x128xf32>
    %202 = vector.shape_cast %201 : vector<1x32x128xf32> to vector<32x128xf32>
    %cst_202 = arith.constant dense<0.000000e+00> : vector<32x128xf32>
    %203 = tpu.matmul %202, %197, %cst_202 {dimension_numbers = #tpu.dot_dimension_numbers<[1], [0], [0], [1], [0, 0, 1, 1], [], []>} : vector<32x128xf32>, vector<128x128xf32>, vector<32x128xf32> -> vector<32x128xf32>
    %204 = arith.maximumf %200, %203 : vector<32x128xf32>
    %c2_203 = arith.constant 2 : index
    %c0_204 = arith.constant 0 : index
    %c0_205 = arith.constant 0 : index
    %205 = vector.load %arg5[%c2_203, %c0_204, %c0_205] : memref<4x32x128xf32, #tpu.memory_space<vmem>>, vector<1x32x128xf32>
    %206 = vector.shape_cast %205 : vector<1x32x128xf32> to vector<32x128xf32>
    %cst_206 = arith.constant dense<0.000000e+00> : vector<32x128xf32>
    %207 = tpu.matmul %206, %197, %cst_206 {dimension_numbers = #tpu.dot_dimension_numbers<[1], [0], [0], [1], [0, 0, 1, 1], [], []>} : vector<32x128xf32>, vector<128x128xf32>, vector<32x128xf32> -> vector<32x128xf32>
    %208 = arith.maximumf %204, %207 : vector<32x128xf32>
    %c3_207 = arith.constant 3 : index
    %c0_208 = arith.constant 0 : index
    %c0_209 = arith.constant 0 : index
    %209 = vector.load %arg5[%c3_207, %c0_208, %c0_209] : memref<4x32x128xf32, #tpu.memory_space<vmem>>, vector<1x32x128xf32>
    %210 = vector.shape_cast %209 : vector<1x32x128xf32> to vector<32x128xf32>
    %cst_210 = arith.constant dense<0.000000e+00> : vector<32x128xf32>
    %211 = tpu.matmul %210, %197, %cst_210 {dimension_numbers = #tpu.dot_dimension_numbers<[1], [0], [0], [1], [0, 0, 1, 1], [], []>} : vector<32x128xf32>, vector<128x128xf32>, vector<32x128xf32> -> vector<32x128xf32>
    %212 = arith.maximumf %208, %211 : vector<32x128xf32>
    %cst_211 = arith.constant 0.000000e+00 : f32
    %213 = vector.broadcast %cst_211 : f32 to vector<32x128xf32>
    %214 = arith.maximumf %212, %213 : vector<32x128xf32>
    %cst_212 = arith.constant 0.000000e+00 : f32
    %215 = vector.broadcast %cst_212 : f32 to vector<2x128xf32>
    %216 = vector.extract_strided_slice %214 {offsets = [0, 0], sizes = [2, 128], strides = [1, 1]} : vector<32x128xf32> to vector<2x128xf32>
    %217 = arith.truncf %216 : vector<2x128xf32> to vector<2x128xbf16>
    %c0_213 = arith.constant 0 : index
    %c0_214 = arith.constant 0 : index
    %c0_215 = arith.constant 0 : index
    %218 = vector.load %arg6[%c0_213, %c0_214, %c0_215] : memref<16x128x128xbf16, #tpu.memory_space<vmem>>, vector<1x128x128xbf16>
    %219 = vector.shape_cast %218 : vector<1x128x128xbf16> to vector<128x128xbf16>
    %cst_216 = arith.constant dense<0.000000e+00> : vector<2x128xf32>
    %220 = tpu.matmul %217, %219, %cst_216 {dimension_numbers = #tpu.dot_dimension_numbers<[1], [0], [0], [1], [0, 0, 1, 1], [], []>} : vector<2x128xbf16>, vector<128x128xbf16>, vector<2x128xf32> -> vector<2x128xf32>
    %221 = arith.addf %215, %220 : vector<2x128xf32>
    %222 = vector.extract_strided_slice %214 {offsets = [2, 0], sizes = [2, 128], strides = [1, 1]} : vector<32x128xf32> to vector<2x128xf32>
    %223 = arith.truncf %222 : vector<2x128xf32> to vector<2x128xbf16>
    %c1_217 = arith.constant 1 : index
    %c0_218 = arith.constant 0 : index
    %c0_219 = arith.constant 0 : index
    %224 = vector.load %arg6[%c1_217, %c0_218, %c0_219] : memref<16x128x128xbf16, #tpu.memory_space<vmem>>, vector<1x128x128xbf16>
    %225 = vector.shape_cast %224 : vector<1x128x128xbf16> to vector<128x128xbf16>
    %cst_220 = arith.constant dense<0.000000e+00> : vector<2x128xf32>
    %226 = tpu.matmul %223, %225, %cst_220 {dimension_numbers = #tpu.dot_dimension_numbers<[1], [0], [0], [1], [0, 0, 1, 1], [], []>} : vector<2x128xbf16>, vector<128x128xbf16>, vector<2x128xf32> -> vector<2x128xf32>
    %227 = arith.addf %221, %226 : vector<2x128xf32>
    %228 = vector.extract_strided_slice %214 {offsets = [4, 0], sizes = [2, 128], strides = [1, 1]} : vector<32x128xf32> to vector<2x128xf32>
    %229 = arith.truncf %228 : vector<2x128xf32> to vector<2x128xbf16>
    %c2_221 = arith.constant 2 : index
    %c0_222 = arith.constant 0 : index
    %c0_223 = arith.constant 0 : index
    %230 = vector.load %arg6[%c2_221, %c0_222, %c0_223] : memref<16x128x128xbf16, #tpu.memory_space<vmem>>, vector<1x128x128xbf16>
    %231 = vector.shape_cast %230 : vector<1x128x128xbf16> to vector<128x128xbf16>
    %cst_224 = arith.constant dense<0.000000e+00> : vector<2x128xf32>
    %232 = tpu.matmul %229, %231, %cst_224 {dimension_numbers = #tpu.dot_dimension_numbers<[1], [0], [0], [1], [0, 0, 1, 1], [], []>} : vector<2x128xbf16>, vector<128x128xbf16>, vector<2x128xf32> -> vector<2x128xf32>
    %233 = arith.addf %227, %232 : vector<2x128xf32>
    %234 = vector.extract_strided_slice %214 {offsets = [6, 0], sizes = [2, 128], strides = [1, 1]} : vector<32x128xf32> to vector<2x128xf32>
    %235 = arith.truncf %234 : vector<2x128xf32> to vector<2x128xbf16>
    %c3_225 = arith.constant 3 : index
    %c0_226 = arith.constant 0 : index
    %c0_227 = arith.constant 0 : index
    %236 = vector.load %arg6[%c3_225, %c0_226, %c0_227] : memref<16x128x128xbf16, #tpu.memory_space<vmem>>, vector<1x128x128xbf16>
    %237 = vector.shape_cast %236 : vector<1x128x128xbf16> to vector<128x128xbf16>
    %cst_228 = arith.constant dense<0.000000e+00> : vector<2x128xf32>
    %238 = tpu.matmul %235, %237, %cst_228 {dimension_numbers = #tpu.dot_dimension_numbers<[1], [0], [0], [1], [0, 0, 1, 1], [], []>} : vector<2x128xbf16>, vector<128x128xbf16>, vector<2x128xf32> -> vector<2x128xf32>
    %239 = arith.addf %233, %238 : vector<2x128xf32>
    %240 = vector.extract_strided_slice %214 {offsets = [8, 0], sizes = [2, 128], strides = [1, 1]} : vector<32x128xf32> to vector<2x128xf32>
    %241 = arith.truncf %240 : vector<2x128xf32> to vector<2x128xbf16>
    %c4_229 = arith.constant 4 : index
    %c0_230 = arith.constant 0 : index
    %c0_231 = arith.constant 0 : index
    %242 = vector.load %arg6[%c4_229, %c0_230, %c0_231] : memref<16x128x128xbf16, #tpu.memory_space<vmem>>, vector<1x128x128xbf16>
    %243 = vector.shape_cast %242 : vector<1x128x128xbf16> to vector<128x128xbf16>
    %cst_232 = arith.constant dense<0.000000e+00> : vector<2x128xf32>
    %244 = tpu.matmul %241, %243, %cst_232 {dimension_numbers = #tpu.dot_dimension_numbers<[1], [0], [0], [1], [0, 0, 1, 1], [], []>} : vector<2x128xbf16>, vector<128x128xbf16>, vector<2x128xf32> -> vector<2x128xf32>
    %245 = arith.addf %239, %244 : vector<2x128xf32>
    %246 = vector.extract_strided_slice %214 {offsets = [10, 0], sizes = [2, 128], strides = [1, 1]} : vector<32x128xf32> to vector<2x128xf32>
    %247 = arith.truncf %246 : vector<2x128xf32> to vector<2x128xbf16>
    %c5_233 = arith.constant 5 : index
    %c0_234 = arith.constant 0 : index
    %c0_235 = arith.constant 0 : index
    %248 = vector.load %arg6[%c5_233, %c0_234, %c0_235] : memref<16x128x128xbf16, #tpu.memory_space<vmem>>, vector<1x128x128xbf16>
    %249 = vector.shape_cast %248 : vector<1x128x128xbf16> to vector<128x128xbf16>
    %cst_236 = arith.constant dense<0.000000e+00> : vector<2x128xf32>
    %250 = tpu.matmul %247, %249, %cst_236 {dimension_numbers = #tpu.dot_dimension_numbers<[1], [0], [0], [1], [0, 0, 1, 1], [], []>} : vector<2x128xbf16>, vector<128x128xbf16>, vector<2x128xf32> -> vector<2x128xf32>
    %251 = arith.addf %245, %250 : vector<2x128xf32>
    %252 = vector.extract_strided_slice %214 {offsets = [12, 0], sizes = [2, 128], strides = [1, 1]} : vector<32x128xf32> to vector<2x128xf32>
    %253 = arith.truncf %252 : vector<2x128xf32> to vector<2x128xbf16>
    %c6_237 = arith.constant 6 : index
    %c0_238 = arith.constant 0 : index
    %c0_239 = arith.constant 0 : index
    %254 = vector.load %arg6[%c6_237, %c0_238, %c0_239] : memref<16x128x128xbf16, #tpu.memory_space<vmem>>, vector<1x128x128xbf16>
    %255 = vector.shape_cast %254 : vector<1x128x128xbf16> to vector<128x128xbf16>
    %cst_240 = arith.constant dense<0.000000e+00> : vector<2x128xf32>
    %256 = tpu.matmul %253, %255, %cst_240 {dimension_numbers = #tpu.dot_dimension_numbers<[1], [0], [0], [1], [0, 0, 1, 1], [], []>} : vector<2x128xbf16>, vector<128x128xbf16>, vector<2x128xf32> -> vector<2x128xf32>
    %257 = arith.addf %251, %256 : vector<2x128xf32>
    %258 = vector.extract_strided_slice %214 {offsets = [14, 0], sizes = [2, 128], strides = [1, 1]} : vector<32x128xf32> to vector<2x128xf32>
    %259 = arith.truncf %258 : vector<2x128xf32> to vector<2x128xbf16>
    %c7_241 = arith.constant 7 : index
    %c0_242 = arith.constant 0 : index
    %c0_243 = arith.constant 0 : index
    %260 = vector.load %arg6[%c7_241, %c0_242, %c0_243] : memref<16x128x128xbf16, #tpu.memory_space<vmem>>, vector<1x128x128xbf16>
    %261 = vector.shape_cast %260 : vector<1x128x128xbf16> to vector<128x128xbf16>
    %cst_244 = arith.constant dense<0.000000e+00> : vector<2x128xf32>
    %262 = tpu.matmul %259, %261, %cst_244 {dimension_numbers = #tpu.dot_dimension_numbers<[1], [0], [0], [1], [0, 0, 1, 1], [], []>} : vector<2x128xbf16>, vector<128x128xbf16>, vector<2x128xf32> -> vector<2x128xf32>
    %263 = arith.addf %257, %262 : vector<2x128xf32>
    %264 = vector.extract_strided_slice %214 {offsets = [16, 0], sizes = [2, 128], strides = [1, 1]} : vector<32x128xf32> to vector<2x128xf32>
    %265 = arith.truncf %264 : vector<2x128xf32> to vector<2x128xbf16>
    %c8_245 = arith.constant 8 : index
    %c0_246 = arith.constant 0 : index
    %c0_247 = arith.constant 0 : index
    %266 = vector.load %arg6[%c8_245, %c0_246, %c0_247] : memref<16x128x128xbf16, #tpu.memory_space<vmem>>, vector<1x128x128xbf16>
    %267 = vector.shape_cast %266 : vector<1x128x128xbf16> to vector<128x128xbf16>
    %cst_248 = arith.constant dense<0.000000e+00> : vector<2x128xf32>
    %268 = tpu.matmul %265, %267, %cst_248 {dimension_numbers = #tpu.dot_dimension_numbers<[1], [0], [0], [1], [0, 0, 1, 1], [], []>} : vector<2x128xbf16>, vector<128x128xbf16>, vector<2x128xf32> -> vector<2x128xf32>
    %269 = arith.addf %263, %268 : vector<2x128xf32>
    %270 = vector.extract_strided_slice %214 {offsets = [18, 0], sizes = [2, 128], strides = [1, 1]} : vector<32x128xf32> to vector<2x128xf32>
    %271 = arith.truncf %270 : vector<2x128xf32> to vector<2x128xbf16>
    %c9_249 = arith.constant 9 : index
    %c0_250 = arith.constant 0 : index
    %c0_251 = arith.constant 0 : index
    %272 = vector.load %arg6[%c9_249, %c0_250, %c0_251] : memref<16x128x128xbf16, #tpu.memory_space<vmem>>, vector<1x128x128xbf16>
    %273 = vector.shape_cast %272 : vector<1x128x128xbf16> to vector<128x128xbf16>
    %cst_252 = arith.constant dense<0.000000e+00> : vector<2x128xf32>
    %274 = tpu.matmul %271, %273, %cst_252 {dimension_numbers = #tpu.dot_dimension_numbers<[1], [0], [0], [1], [0, 0, 1, 1], [], []>} : vector<2x128xbf16>, vector<128x128xbf16>, vector<2x128xf32> -> vector<2x128xf32>
    %275 = arith.addf %269, %274 : vector<2x128xf32>
    %276 = vector.extract_strided_slice %214 {offsets = [20, 0], sizes = [2, 128], strides = [1, 1]} : vector<32x128xf32> to vector<2x128xf32>
    %277 = arith.truncf %276 : vector<2x128xf32> to vector<2x128xbf16>
    %c10_253 = arith.constant 10 : index
    %c0_254 = arith.constant 0 : index
    %c0_255 = arith.constant 0 : index
    %278 = vector.load %arg6[%c10_253, %c0_254, %c0_255] : memref<16x128x128xbf16, #tpu.memory_space<vmem>>, vector<1x128x128xbf16>
    %279 = vector.shape_cast %278 : vector<1x128x128xbf16> to vector<128x128xbf16>
    %cst_256 = arith.constant dense<0.000000e+00> : vector<2x128xf32>
    %280 = tpu.matmul %277, %279, %cst_256 {dimension_numbers = #tpu.dot_dimension_numbers<[1], [0], [0], [1], [0, 0, 1, 1], [], []>} : vector<2x128xbf16>, vector<128x128xbf16>, vector<2x128xf32> -> vector<2x128xf32>
    %281 = arith.addf %275, %280 : vector<2x128xf32>
    %282 = vector.extract_strided_slice %214 {offsets = [22, 0], sizes = [2, 128], strides = [1, 1]} : vector<32x128xf32> to vector<2x128xf32>
    %283 = arith.truncf %282 : vector<2x128xf32> to vector<2x128xbf16>
    %c11_257 = arith.constant 11 : index
    %c0_258 = arith.constant 0 : index
    %c0_259 = arith.constant 0 : index
    %284 = vector.load %arg6[%c11_257, %c0_258, %c0_259] : memref<16x128x128xbf16, #tpu.memory_space<vmem>>, vector<1x128x128xbf16>
    %285 = vector.shape_cast %284 : vector<1x128x128xbf16> to vector<128x128xbf16>
    %cst_260 = arith.constant dense<0.000000e+00> : vector<2x128xf32>
    %286 = tpu.matmul %283, %285, %cst_260 {dimension_numbers = #tpu.dot_dimension_numbers<[1], [0], [0], [1], [0, 0, 1, 1], [], []>} : vector<2x128xbf16>, vector<128x128xbf16>, vector<2x128xf32> -> vector<2x128xf32>
    %287 = arith.addf %281, %286 : vector<2x128xf32>
    %288 = vector.extract_strided_slice %214 {offsets = [24, 0], sizes = [2, 128], strides = [1, 1]} : vector<32x128xf32> to vector<2x128xf32>
    %289 = arith.truncf %288 : vector<2x128xf32> to vector<2x128xbf16>
    %c12_261 = arith.constant 12 : index
    %c0_262 = arith.constant 0 : index
    %c0_263 = arith.constant 0 : index
    %290 = vector.load %arg6[%c12_261, %c0_262, %c0_263] : memref<16x128x128xbf16, #tpu.memory_space<vmem>>, vector<1x128x128xbf16>
    %291 = vector.shape_cast %290 : vector<1x128x128xbf16> to vector<128x128xbf16>
    %cst_264 = arith.constant dense<0.000000e+00> : vector<2x128xf32>
    %292 = tpu.matmul %289, %291, %cst_264 {dimension_numbers = #tpu.dot_dimension_numbers<[1], [0], [0], [1], [0, 0, 1, 1], [], []>} : vector<2x128xbf16>, vector<128x128xbf16>, vector<2x128xf32> -> vector<2x128xf32>
    %293 = arith.addf %287, %292 : vector<2x128xf32>
    %294 = vector.extract_strided_slice %214 {offsets = [26, 0], sizes = [2, 128], strides = [1, 1]} : vector<32x128xf32> to vector<2x128xf32>
    %295 = arith.truncf %294 : vector<2x128xf32> to vector<2x128xbf16>
    %c13_265 = arith.constant 13 : index
    %c0_266 = arith.constant 0 : index
    %c0_267 = arith.constant 0 : index
    %296 = vector.load %arg6[%c13_265, %c0_266, %c0_267] : memref<16x128x128xbf16, #tpu.memory_space<vmem>>, vector<1x128x128xbf16>
    %297 = vector.shape_cast %296 : vector<1x128x128xbf16> to vector<128x128xbf16>
    %cst_268 = arith.constant dense<0.000000e+00> : vector<2x128xf32>
    %298 = tpu.matmul %295, %297, %cst_268 {dimension_numbers = #tpu.dot_dimension_numbers<[1], [0], [0], [1], [0, 0, 1, 1], [], []>} : vector<2x128xbf16>, vector<128x128xbf16>, vector<2x128xf32> -> vector<2x128xf32>
    %299 = arith.addf %293, %298 : vector<2x128xf32>
    %300 = vector.extract_strided_slice %214 {offsets = [28, 0], sizes = [2, 128], strides = [1, 1]} : vector<32x128xf32> to vector<2x128xf32>
    %301 = arith.truncf %300 : vector<2x128xf32> to vector<2x128xbf16>
    %c14_269 = arith.constant 14 : index
    %c0_270 = arith.constant 0 : index
    %c0_271 = arith.constant 0 : index
    %302 = vector.load %arg6[%c14_269, %c0_270, %c0_271] : memref<16x128x128xbf16, #tpu.memory_space<vmem>>, vector<1x128x128xbf16>
    %303 = vector.shape_cast %302 : vector<1x128x128xbf16> to vector<128x128xbf16>
    %cst_272 = arith.constant dense<0.000000e+00> : vector<2x128xf32>
    %304 = tpu.matmul %301, %303, %cst_272 {dimension_numbers = #tpu.dot_dimension_numbers<[1], [0], [0], [1], [0, 0, 1, 1], [], []>} : vector<2x128xbf16>, vector<128x128xbf16>, vector<2x128xf32> -> vector<2x128xf32>
    %305 = arith.addf %299, %304 : vector<2x128xf32>
    %306 = vector.extract_strided_slice %214 {offsets = [30, 0], sizes = [2, 128], strides = [1, 1]} : vector<32x128xf32> to vector<2x128xf32>
    %307 = arith.truncf %306 : vector<2x128xf32> to vector<2x128xbf16>
    %c15_273 = arith.constant 15 : index
    %c0_274 = arith.constant 0 : index
    %c0_275 = arith.constant 0 : index
    %308 = vector.load %arg6[%c15_273, %c0_274, %c0_275] : memref<16x128x128xbf16, #tpu.memory_space<vmem>>, vector<1x128x128xbf16>
    %309 = vector.shape_cast %308 : vector<1x128x128xbf16> to vector<128x128xbf16>
    %cst_276 = arith.constant dense<0.000000e+00> : vector<2x128xf32>
    %310 = tpu.matmul %307, %309, %cst_276 {dimension_numbers = #tpu.dot_dimension_numbers<[1], [0], [0], [1], [0, 0, 1, 1], [], []>} : vector<2x128xbf16>, vector<128x128xbf16>, vector<2x128xf32> -> vector<2x128xf32>
    %311 = arith.addf %305, %310 : vector<2x128xf32>
    %c0_277 = arith.constant 0 : index
    %c0_278 = arith.constant 0 : index
    %312 = vector.load %arg7[%c0_277, %c0_278] : memref<1x128xf32, #tpu.memory_space<vmem>>, vector<1x128xf32>
    %313 = vector.broadcast %312 : vector<1x128xf32> to vector<2x128xf32>
    %314 = arith.addf %311, %313 : vector<2x128xf32>
    %cst_279 = arith.constant 0.000000e+00 : f32
    %315 = vector.broadcast %cst_279 : f32 to vector<2x128xf32>
    %316 = arith.maximumf %314, %315 : vector<2x128xf32>
    %317 = arith.truncf %316 : vector<2x128xf32> to vector<2x128xbf16>
    %c0_280 = arith.constant 0 : index
    %c0_281 = arith.constant 0 : index
    %318 = vector.load %arg8[%c0_280, %c0_281] : memref<128x128xbf16, #tpu.memory_space<vmem>>, vector<128x128xbf16>
    %cst_282 = arith.constant dense<0.000000e+00> : vector<2x128xf32>
    %319 = tpu.matmul %317, %318, %cst_282 {dimension_numbers = #tpu.dot_dimension_numbers<[1], [0], [0], [1], [0, 0, 1, 1], [], []>} : vector<2x128xbf16>, vector<128x128xbf16>, vector<2x128xf32> -> vector<2x128xf32>
    %c0_283 = arith.constant 0 : index
    %c0_284 = arith.constant 0 : index
    %320 = vector.load %arg9[%c0_283, %c0_284] : memref<1x128xf32, #tpu.memory_space<vmem>>, vector<1x128xf32>
    %321 = vector.broadcast %320 : vector<1x128xf32> to vector<2x128xf32>
    %322 = arith.addf %319, %321 : vector<2x128xf32>
    %323 = tpu.iota {dimensions = array<i32: 1>} : vector<2x128xi32>
    %c3_i32 = arith.constant 3 : i32
    %324 = vector.broadcast %c3_i32 : i32 to vector<2x128xi32>
    %325 = arith.cmpi slt, %323, %324 : vector<2x128xi32>
    %cst_285 = arith.constant -1.000000e+30 : f32
    %326 = vector.broadcast %cst_285 : f32 to vector<2x128xf32>
    %327 = arith.select %325, %322, %326 : vector<2x128xi1>, vector<2x128xf32>
    %cst_286 = arith.constant dense<0xFF800000> : vector<2xf32>
    %328 = vector.multi_reduction <maximumf>, %327, %cst_286 [1] : vector<2x128xf32> to vector<2xf32>
    %329 = vector.shape_cast %328 : vector<2xf32> to vector<2x1xf32>
    %330 = vector.broadcast %329 : vector<2x1xf32> to vector<2x128xf32>
    %331 = arith.subf %327, %330 : vector<2x128xf32>
    %332 = math.exp %331 : vector<2x128xf32>
    %cst_287 = arith.constant dense<0.000000e+00> : vector<2xf32>
    %333 = vector.multi_reduction <add>, %332, %cst_287 [1] : vector<2x128xf32> to vector<2xf32>
    %334 = vector.shape_cast %333 : vector<2xf32> to vector<2x1xf32>
    %335 = math.log %334 : vector<2x1xf32>
    %336 = vector.broadcast %335 : vector<2x1xf32> to vector<2x128xf32>
    %337 = arith.subf %331, %336 : vector<2x128xf32>
    %c0_288 = arith.constant 0 : index
    %c0_289 = arith.constant 0 : index
    %338 = vector.load %arg10[%c0_288, %c0_289] : memref<2x128xf32, #tpu.memory_space<vmem>>, vector<2x128xf32>
    tpu.vector_store %arg10[%c0_288, %c0_289], %337 {strides = array<i32>} : memref<2x128xf32, #tpu.memory_space<vmem>>, vector<2x128xf32>,
    return
  }
}

</mosaic_0001>

<bundles_post_ra>
// kernel: forward.1
= control target key start
LH: loop header
LB: loop body
LE: loop exit
PB: predicated region body
PF: predicated region fallthrough
CT: control target
= control target key end

     0   :  { %vm293_vm0 = vcmask 1043456   ;;  %vm294_vm1 = vcmask 1044480   ;;  %v10240_v3 = vmov 65535   ;;  %s13097_s0 = inlined_call_operand.vmem [shape: bf16[1536,25], index: 0, kind: input, shape index: {}]   ;;  %s13098_s1 = inlined_call_operand.vmem [shape: bf16[25,128], index: 1, kind: input, shape index: {}]   ;;  %s13099_s2 = inlined_call_operand.vmem [shape: f32[1,128], index: 2, kind: input, shape index: {}]   ;;  %s13100_s3 = inlined_call_operand.vmem [shape: bf16[25,128,128], index: 3, kind: input, shape index: {}]   ;;  %s13101_s4 = inlined_call_operand.vmem [shape: f32[1,128], index: 4, kind: input, shape index: {}]   ;;  %s13102_s5 = inlined_call_operand.vmem [shape: f32[4,32,128], index: 5, kind: input, shape index: {}]   ;;  %s13103_s6 = inlined_call_operand.vmem [shape: bf16[16,128,128], index: 6, kind: input, shape index: {}]   ;;  %s13104_s7 = inlined_call_operand.vmem [shape: f32[1,128], index: 7, kind: input, shape index: {}]   ;;  %s13105_s8 = inlined_call_operand.vmem [shape: bf16[128,128], index: 8, kind: input, shape index: {}]   ;;  %s13106_s9 = inlined_call_operand.vmem [shape: f32[1,128], index: 9, kind: input, shape index: {}]   ;;  %s13107_s10 = inlined_call_operand.hbm [shape: f32[2,128], index: 10, kind: output, shape index: {}]  }
   0x1   :  { %v7337_v0 = vld [vmem:[%s13098_s1 + $0x8] sm:$0xf]  ;;  %v9704_v1 = vld [vmem:[%s13098_s1 + $0x8] sm:$0x10]  ;;  %v295_v4 = vsel %vm293_vm0, 4294967295, %v10240_v3 }
   0x2   :  { %v7338_v2 = vor.u32 %v9704_v1, %v7337_v0  ;;  %v296_v5 = vsel %vm294_vm1, %v295_v4, 0 }
   0x4   :  { %v298_v6 = vand.u32 %v7338_v2, %v296_v5 }
   0x5   :  { %15 = vsyncpa [#allocation4], 0  ;;  %v9703_v7 = vld [vmem:[%s13098_s1] sm:$0xff]  ;;  %v9728_v9 = vld [vmem:[%s13097_s0 + $0xb8] sm:$0xff]  ;;  %vm220_vm2 = vcmask 203776   ;;  %vm7205_vm4 = vcmask 1041408  }
   0x6   :  { %306 = vmatpush.bf16.msra.mxu0 %v298_v6  ;;  %10137 = vmatpush.bf16.msra.mxu1 %v298_v6  ;;  %v9705_v8 = vld [vmem:[%s13097_s0] sm:$0xff]  ;;  %v9706_v12 = vld [vmem:[%s13097_s0 + $0x8] sm:$0xff]  ;;  %v9707_v16 = vld [vmem:[%s13097_s0 + $0x10] sm:$0xff] }
   0x7   :  { %1092 = vmatpush.bf16.msra.mxu2 %v298_v6  ;;  %1509 = vmatpush.bf16.msra.mxu3 %v298_v6  ;;  %v9753_v10 = vld [vmem:[%s13097_s0 + $0x180] sm:$0xff]  ;;  %v9754_v14 = vld [vmem:[%s13097_s0 + $0x188] sm:$0xff]  ;;  %v9755_v18 = vld [vmem:[%s13097_s0 + $0x190] sm:$0xff] }
   0x8   :  { %v9777_v11 = vld [vmem:[%s13097_s0 + $0x240] sm:$0xff]  ;;  %v9778_v15 = vld [vmem:[%s13097_s0 + $0x248] sm:$0xff]  ;;  %v9779_v19 = vld [vmem:[%s13097_s0 + $0x250] sm:$0xff] }
   0x9   :  { %v9729_v13 = vld [vmem:[%s13097_s0 + $0xc0] sm:$0xff]  ;;  %v9730_v17 = vld [vmem:[%s13097_s0 + $0xc8] sm:$0xff]  ;;  %v9708_v20 = vld [vmem:[%s13097_s0 + $0x18] sm:$0xff] }
   0xa   :  { %307 = vmatpush.bf16.msra.mxu0 %v9703_v7  ;;  %10138 = vmatpush.bf16.msra.mxu1 %v9703_v7  ;;  %v9731_v21 = vld [vmem:[%s13097_s0 + $0xd0] sm:$0xff]  ;;  %v9756_v22 = vld [vmem:[%s13097_s0 + $0x198] sm:$0xff]  ;;  %v9709_v24 = vld [vmem:[%s13097_s0 + $0x20] sm:$0xff] }
   0xb   :  { %1093 = vmatpush.bf16.msra.mxu2 %v9703_v7  ;;  %1510 = vmatpush.bf16.msra.mxu3 %v9703_v7  ;;  %v9780_v23 = vld [vmem:[%s13097_s0 + $0x258] sm:$0xff]  ;;  %v9757_v26 = vld [vmem:[%s13097_s0 + $0x1a0] sm:$0xff]  ;;  %v9710_v29 = vld [vmem:[%s13097_s0 + $0x28] sm:$0xff] }
   0xc   :  { %v9732_v25 = vld [vmem:[%s13097_s0 + $0xd8] sm:$0xff]  ;;  %v9781_v27 = vld [vmem:[%s13097_s0 + $0x260] sm:$0xff]  ;;  %v9758_v31 = vld [vmem:[%s13097_s0 + $0x1a8] sm:$0xff] }
   0xd   :  { %7339 = vmatmul.msk.bf16.vlgmr.msra.gmra.mxu0 %vm220_vm2, %v9705_v8  ;;  %7362 = vmatmul.msk.bf16.vlgmr.msra.gmra.mxu1 %vm220_vm2, %v9728_v9  ;;  %v9816_v28 = vld [vmem:[%s13100_s3 + $0x78] sm:$0xff]  ;;  %v9733_v30 = vld [vmem:[%s13097_s0 + $0xe0] sm:$0xff]  ;;  %v9782_v32 = vld [vmem:[%s13097_s0 + $0x268] sm:$0xff] }
   0xe   :  { %675 = vmatpush.bf16.msrb.mxu1 %v298_v6  ;;  %7579 = vmatmul.msk.bf16.vlgmr.msra.gmra.mxu2 %vm220_vm2, %v9753_v10  ;;  %v9711_v33 = vld [vmem:[%s13097_s0 + $0x30] sm:$0xff]  ;;  %v9734_v34 = vld [vmem:[%s13097_s0 + $0xe8] sm:$0xff]  ;;  %v9712_v37 = vld [vmem:[%s13097_s0 + $0x38] sm:$0xff] }
   0xf   :  { %7699 = vmatmul.msk.bf16.vlgmr.msra.gmra.mxu3 %vm220_vm2, %v9777_v11  ;;  %1957 = vmatpush.bf16.msrb.mxu0 %v9816_v28  ;;  %v9759_v35 = vld [vmem:[%s13097_s0 + $0x1b0] sm:$0xff]  ;;  %v9760_v39 = vld [vmem:[%s13097_s0 + $0x1b8] sm:$0xff]  ;;  %v9713_v42 = vld [vmem:[%s13097_s0 + $0x40] sm:$0xff] }
  0x10   :  { %v9783_v36 = vld [vmem:[%s13097_s0 + $0x270] sm:$0xff]  ;;  %v9784_v40 = vld [vmem:[%s13097_s0 + $0x278] sm:$0xff]  ;;  %v9761_v46 = vld [vmem:[%s13097_s0 + $0x1c0] sm:$0xff] }
  0x11   :  { %v9735_v38 = vld [vmem:[%s13097_s0 + $0xf0] sm:$0xff]  ;;  %v9736_v43 = vld [vmem:[%s13097_s0 + $0xf8] sm:$0xff]  ;;  %v9785_v47 = vld [vmem:[%s13097_s0 + $0x280] sm:$0xff] }
  0x12   :  { %676 = vmatpush.bf16.msrb.mxu1 %v9703_v7  ;;  %v9815_v41 = vld [vmem:[%s13100_s3 + $0x70] sm:$0xff]  ;;  %v9714_v54 = vld [vmem:[%s13097_s0 + $0x48] sm:$0xff]  ;;  %v9737_v55 = vld [vmem:[%s13097_s0 + $0x100] sm:$0xff] }
  0x13   :  { %1958 = vmatpush.bf16.msrb.mxu0 %v9815_v41  ;;  %v9762_v58 = vld [vmem:[%s13097_s0 + $0x1c8] sm:$0xff]  ;;  %v10475_v62 = vld [vmem:[%s13099_s2] ss:$0 sm:$0xff] }
  0x14   :  { %v9786_v59 = vld [vmem:[%s13097_s0 + $0x288] sm:$0xff] }
  0x1d   :  { %7340 = vmatmul.msk.bf16.gmra.mxu0 %vm220_vm2, %v9706_v12  ;;  %7459 = vmatmul.msk.bf16.vlgmr.msrb.gmra.mxu1 %vm220_vm2, %v9729_v13  ;;  %v9715_v12 = vld [vmem:[%s13097_s0 + $0x50] sm:$0xff]  ;;  %v9738_v13 = vld [vmem:[%s13097_s0 + $0x108] sm:$0xff] }
  0x1e   :  { %7580 = vmatmul.msk.bf16.gmra.mxu2 %vm220_vm2, %v9754_v14 }
  0x1f   :  { %7700 = vmatmul.msk.bf16.gmra.mxu3 %vm220_vm2, %v9778_v15 }
  0x2d   :  { %7341 = vmatmul.msk.bf16.gmra.mxu0 %vm220_vm2, %v9707_v16  ;;  %7460 = vmatmul.msk.bf16.gmra.mxu1 %vm220_vm2, %v9730_v17  ;;  %v9763_v16 = vld [vmem:[%s13097_s0 + $0x1d0] sm:$0xff] }
  0x2e   :  { %7581 = vmatmul.msk.bf16.gmra.mxu2 %vm220_vm2, %v9755_v18  ;;  %v9787_v17 = vld [vmem:[%s13097_s0 + $0x290] sm:$0xff] }
  0x2f   :  { %7701 = vmatmul.msk.bf16.gmra.mxu3 %vm220_vm2, %v9779_v19 }
  0x3d   :  { %7342 = vmatmul.msk.bf16.gmra.mxu0 %vm220_vm2, %v9708_v20  ;;  %7461 = vmatmul.msk.bf16.gmra.mxu1 %vm220_vm2, %v9731_v21 }
  0x3e   :  { %7582 = vmatmul.msk.bf16.gmra.mxu2 %vm220_vm2, %v9756_v22 }
  0x3f   :  { %7702 = vmatmul.msk.bf16.gmra.mxu3 %vm220_vm2, %v9780_v23 }
  0x4d   :  { %7343 = vmatmul.msk.bf16.gmra.mxu0 %vm220_vm2, %v9709_v24  ;;  %7462 = vmatmul.msk.bf16.gmra.mxu1 %vm220_vm2, %v9732_v25 }
  0x4e   :  { %7583 = vmatmul.msk.bf16.gmra.mxu2 %vm220_vm2, %v9757_v26 }
  0x4f   :  { %7703 = vmatmul.msk.bf16.gmra.mxu3 %vm220_vm2, %v9781_v27 }
  0x5d   :  { %7344 = vmatmul.msk.bf16.gmra.mxu0 %vm220_vm2, %v9710_v29  ;;  %7463 = vmatmul.msk.bf16.gmra.mxu1 %vm220_vm2, %v9733_v30  ;;  %v9814_v30 = vld [vmem:[%s13100_s3 + $0x68] sm:$0xff] }
  0x5e   :  { %7584 = vmatmul.msk.bf16.gmra.mxu2 %vm220_vm2, %v9758_v31  ;;  %1959 = vmatpush.bf16.msrb.mxu0 %v9814_v30 }
  0x5f   :  { %7704 = vmatmul.msk.bf16.gmra.mxu3 %vm220_vm2, %v9782_v32 }
  0x6d   :  { %7345 = vmatmul.msk.bf16.gmra.mxu0 %vm220_vm2, %v9711_v33  ;;  %7464 = vmatmul.msk.bf16.gmra.mxu1 %vm220_vm2, %v9734_v34 }
  0x6e   :  { %7585 = vmatmul.msk.bf16.gmra.mxu2 %vm220_vm2, %v9759_v35  ;;  %v9716_v35 = vld [vmem:[%s13097_s0 + $0x58] sm:$0xff] }
  0x6f   :  { %7705 = vmatmul.msk.bf16.gmra.mxu3 %vm220_vm2, %v9783_v36  ;;  %v9739_v36 = vld [vmem:[%s13097_s0 + $0x110] sm:$0xff] }
  0x7d   :  { %7346 = vmatmul.msk.bf16.gmra.mxu0 %vm220_vm2, %v9712_v37  ;;  %7465 = vmatmul.msk.bf16.gmra.mxu1 %vm220_vm2, %v9735_v38 }
  0x7e   :  { %7586 = vmatmul.msk.bf16.gmra.mxu2 %vm220_vm2, %v9760_v39  ;;  %v9764_v39 = vld [vmem:[%s13097_s0 + $0x1d8] sm:$0xff] }
  0x7f   :  { %7706 = vmatmul.msk.bf16.gmra.mxu3 %vm220_vm2, %v9784_v40  ;;  %v9788_v40 = vld [vmem:[%s13097_s0 + $0x298] sm:$0xff] }
  0x8a   :  { %v309_v44 = vpop.f32.mrf.mxu0  ;;  %v10446_v45 = vpop.f32.mrf.mxu1 }
  0x8d   :  { %7347 = vmatmul.msk.bf16.gmra.mxu0 %vm220_vm2, %v9713_v42  ;;  %7466 = vmatmul.msk.bf16.gmra.mxu1 %vm220_vm2, %v9736_v43 }
  0x8e   :  { %7587 = vmatmul.msk.bf16.gmra.mxu2 %vm220_vm2, %v9761_v46  ;;  %v9832_v46 = vld [vmem:[%s13100_s3 + $0xf8] sm:$0xff] }
  0x8f   :  { %7707 = vmatmul.msk.bf16.gmra.mxu3 %vm220_vm2, %v9785_v47  ;;  %v9808_v47 = vld [vmem:[%s13100_s3 + $0x38] sm:$0xff] }
  0x90   :  { %2346 = vmatpush.bf16.msrb.mxu3 %v9832_v46  ;;  %2054 = vmatpush.bf16.msra.mxu1 %v9808_v47 }
  0x91   :  { %v1095_v48 = vpop.f32.mrf.mxu2 }
  0x92   :  { %v1512_v49 = vpop.f32.mrf.mxu3  ;;  %v311_v50 = vpop.f32.mrf.mxu0 }
  0x93   :  { %v10458_v51 = vpop.f32.mrf.mxu1 }
  0x99   :  { %v1097_v52 = vpop.f32.mrf.mxu2 }
  0x9a   :  { %v1514_v53 = vpop.f32.mrf.mxu3  ;;  %v314_v56 = vpop.f32.mrf.mxu0 }
  0x9b   :  { %v678_v57 = vpop.f32.mrf.mxu1 }
  0x9c   :  { %v798_v60 = vmax.f32 %v309_v44, %v678_v57  ;;  %v9824_v44 = vld [vmem:[%s13100_s3 + $0xb8] sm:$0xff] }
  0x9d   :  { %7348 = vmatmul.msk.bf16.gmra.mxu0 %vm220_vm2, %v9714_v54  ;;  %7467 = vmatmul.msk.bf16.gmra.mxu1 %vm220_vm2, %v9737_v55 }
  0x9e   :  { %v1215_v61 = vmax.f32 %v798_v60, %v1095_v48  ;;  %7588 = vmatmul.msk.bf16.gmra.mxu2 %vm220_vm2, %v9762_v58 }
  0x9f   :  { %7708 = vmatmul.msk.bf16.gmra.mxu3 %vm220_vm2, %v9786_v59  ;;  %2192 = vmatpush.bf16.msrb.mxu2 %v9824_v44 }
  0xa0   :  { %v1632_v63 = vmax.f32 %v1215_v61, %v1512_v49 }
  0xa1   :  { %v1100_v1 = vpop.f32.mrf.mxu2 }
  0xa2   :  { %v1684_v0 = vadd.f32 %v10475_v62, %v1632_v63  ;;  %v1517_v2 = vpop.f32.mrf.mxu3  ;;  %v316_v3 = vpop.f32.mrf.mxu0  ;;  %v9717_v63 = vld [vmem:[%s13097_s0 + $0x60] sm:$0xff] }
  0xa3   :  { %v680_v4 = vpop.f32.mrf.mxu1 }
  0xa4   :  { %v1732_v5 = vmax.f32 %v1684_v0, 0.0  ;;  %v799_v6 = vmax.f32 %v311_v50, %v680_v4  ;;  %v9740_v0 = vld [vmem:[%s13097_s0 + $0x118] sm:$0xff]  ;;  %v9789_v4 = vld [vmem:[%s13097_s0 + $0x2a0] sm:$0xff] }
  0xa6   :  { %1780 = vst [vmem:[#allocation2] sm:$0xff] %v1732_v5  ;;  %v1216_v7 = vmax.f32 %v799_v6, %v1097_v52 }
  0xa8   :  { %v1633_v8 = vmax.f32 %v1216_v7, %v1514_v53 }
  0xa9   :  { %v1102_v10 = vpop.f32.mrf.mxu2 }
  0xaa   :  { %v1685_v9 = vadd.f32 %v10475_v62, %v1633_v8  ;;  %v1519_v11 = vpop.f32.mrf.mxu3  ;;  %v319_v14 = vpop.f32.mrf.mxu0 }
  0xab   :  { %v683_v15 = vpop.f32.mrf.mxu1 }
  0xac   :  { %v1733_v18 = vmax.f32 %v1685_v9, 0.0  ;;  %v800_v19 = vmax.f32 %v314_v56, %v683_v15 }
  0xad   :  { %7349 = vmatmul.msk.bf16.gmra.mxu0 %vm220_vm2, %v9715_v12  ;;  %7468 = vmatmul.msk.bf16.gmra.mxu1 %vm220_vm2, %v9738_v13 }
  0xae   :  { %1781 = vst [vmem:[#allocation2 + $0x8] sm:$0xff] %v1733_v18  ;;  %v1217_v20 = vmax.f32 %v800_v19, %v1100_v1  ;;  %7589 = vmatmul.msk.bf16.gmra.mxu2 %vm220_vm2, %v9763_v16 }
  0xaf   :  { %7709 = vmatmul.msk.bf16.gmra.mxu3 %vm220_vm2, %v9787_v17 }
  0xb0   :  { %v1634_v21 = vmax.f32 %v1217_v20, %v1517_v2 }
  0xb1   :  { %v1105_v23 = vpop.f32.mrf.mxu2 }
  0xb2   :  { %v1686_v22 = vadd.f32 %v10475_v62, %v1634_v21  ;;  %v1522_v24 = vpop.f32.mrf.mxu3  ;;  %v321_v25 = vpop.f32.mrf.mxu0 }
  0xb3   :  { %v685_v26 = vpop.f32.mrf.mxu1 }
  0xb4   :  { %v1734_v27 = vmax.f32 %v1686_v22, 0.0  ;;  %v801_v28 = vmax.f32 %v316_v3, %v685_v26  ;;  %v9765_v3 = vld [vmem:[%s13097_s0 + $0x1e0] sm:$0xff]  ;;  %v9822_v26 = vld [vmem:[%s13100_s3 + $0xa8] sm:$0xff] }
  0xb6   :  { %1782 = vst [vmem:[#allocation2 + $0x10] sm:$0xff] %v1734_v27  ;;  %v1218_v29 = vmax.f32 %v801_v28, %v1102_v10 }
  0xb8   :  { %v1635_v31 = vmax.f32 %v1218_v29, %v1519_v11 }
  0xb9   :  { %v1107_v33 = vpop.f32.mrf.mxu2 }
  0xba   :  { %v1687_v32 = vadd.f32 %v10475_v62, %v1635_v31  ;;  %v1524_v34 = vpop.f32.mrf.mxu3  ;;  %v324_v37 = vpop.f32.mrf.mxu0 }
  0xbb   :  { %v688_v38 = vpop.f32.mrf.mxu1 }
  0xbc   :  { %v1735_v41 = vmax.f32 %v1687_v32, 0.0  ;;  %v802_v42 = vmax.f32 %v319_v14, %v688_v38  ;;  %v9790_v38 = vld [vmem:[%s13097_s0 + $0x2a8] sm:$0xff] }
  0xbd   :  { %7350 = vmatmul.msk.bf16.gmra.mxu0 %vm220_vm2, %v9716_v35  ;;  %7469 = vmatmul.msk.bf16.gmra.mxu1 %vm220_vm2, %v9739_v36  ;;  %v10545_v8 = vld [vmem:[#allocation2 + $0x10] sm:$0xff] }
  0xbe   :  { %1783 = vst [vmem:[#allocation2 + $0x18] sm:$0xff] %v1735_v41  ;;  %v1219_v43 = vmax.f32 %v802_v42, %v1105_v23  ;;  %7590 = vmatmul.msk.bf16.gmra.mxu2 %vm220_vm2, %v9764_v39  ;;  %v9813_v42 = vld [vmem:[%s13100_s3 + $0x60] sm:$0xff] }
  0xbf   :  { %7710 = vmatmul.msk.bf16.gmra.mxu3 %vm220_vm2, %v9788_v40  ;;  %1960 = vmatpush.bf16.msrb.mxu0 %v9813_v42 }
  0xc0   :  { %v1636_v48 = vmax.f32 %v1219_v43, %v1522_v24 }
  0xc1   :  { %v1110_v50 = vpop.f32.mrf.mxu2 }
  0xc2   :  { %v1688_v49 = vadd.f32 %v10475_v62, %v1636_v48  ;;  %v1527_v52 = vpop.f32.mrf.mxu3  ;;  %v326_v53 = vpop.f32.mrf.mxu0 }
  0xc3   :  { %v690_v54 = vpop.f32.mrf.mxu1 }
  0xc4   :  { %v1736_v55 = vmax.f32 %v1688_v49, 0.0  ;;  %v803_v56 = vmax.f32 %v321_v25, %v690_v54 }
  0xc5   :  { %v10554_v19 = vld [vmem:[#allocation2 + $0x11] sm:$0xff] }
  0xc6   :  { %1784 = vst [vmem:[#allocation2 + $0x20] sm:$0xff] %v1736_v55  ;;  %v1220_v57 = vmax.f32 %v803_v56, %v1107_v33  ;;  %v10558_v21 = vld [vmem:[#allocation2 + $0x12] sm:$0xff]  ;;  %v9718_v33 = vld [vmem:[%s13097_s0 + $0x68] sm:$0xff] }
  0xc7   :  { %v10562_v24 = vld [vmem:[#allocation2 + $0x14] sm:$0xff] }
  0xc8   :  { %v1637_v58 = vmax.f32 %v1220_v57, %v1524_v34  ;;  %13192 = vst [vmem:[#allocation6_spill] sm:$0xff] %v10562_v24  ;;  %v9741_v34 = vld [vmem:[%s13097_s0 + $0x120] sm:$0xff] }
  0xc9   :  { %v1112_v60 = vpop.f32.mrf.mxu2 }
  0xca   :  { %v1689_v59 = vadd.f32 %v10475_v62, %v1637_v58  ;;  %v1529_v61 = vpop.f32.mrf.mxu3  ;;  %v329_v1 = vpop.f32.mrf.mxu0 }
  0xcb   :  { %v693_v2 = vpop.f32.mrf.mxu1 }
  0xcc   :  { %v1737_v5 = vmax.f32 %v1689_v59, 0.0  ;;  %v804_v6 = vmax.f32 %v324_v37, %v693_v2  ;;  %v9766_v37 = vld [vmem:[%s13097_s0 + $0x1e8] sm:$0xff]  ;;  %v9767_v2 = vld [vmem:[%s13097_s0 + $0x1f0] sm:$0xff] }
  0xcd   :  { %7351 = vmatmul.msk.bf16.gmra.mxu0 %vm220_vm2, %v9717_v63  ;;  %7470 = vmatmul.msk.bf16.gmra.mxu1 %vm220_vm2, %v9740_v0  ;;  %v10547_v9 = vld [vmem:[#allocation2 + $0x20] sm:$0xff]  ;;  %v9742_v63 = vld [vmem:[%s13097_s0 + $0x128] sm:$0xff] }
  0xce   :  { %1785 = vst [vmem:[#allocation2 + $0x28] sm:$0xff] %v1737_v5  ;;  %v1221_v7 = vmax.f32 %v804_v6, %v1110_v50  ;;  %7591 = vmatmul.msk.bf16.gmra.mxu2 %vm220_vm2, %v9765_v3  ;;  %v9791_v3 = vld [vmem:[%s13097_s0 + $0x2b0] sm:$0xff] }
  0xcf   :  { %7711 = vmatmul.msk.bf16.gmra.mxu3 %vm220_vm2, %v9789_v4 }
  0xd0   :  { %v1638_v11 = vmax.f32 %v1221_v7, %v1527_v52 }
  0xd1   :  { %v1115_v13 = vpop.f32.mrf.mxu2 }
  0xd2   :  { %v1690_v12 = vadd.f32 %v10475_v62, %v1638_v11  ;;  %v1532_v14 = vpop.f32.mrf.mxu3  ;;  %v331_v15 = vpop.f32.mrf.mxu0  ;;  %v9823_v11 = vld [vmem:[%s13100_s3 + $0xb0] sm:$0xff] }
  0xd3   :  { %v695_v16 = vpop.f32.mrf.mxu1  ;;  %2193 = vmatpush.bf16.msrb.mxu2 %v9823_v11 }
  0xd4   :  { %v1738_v17 = vmax.f32 %v1690_v12, 0.0  ;;  %v805_v18 = vmax.f32 %v326_v53, %v695_v16  ;;  %v9831_v12 = vld [vmem:[%s13100_s3 + $0xf0] sm:$0xff] }
  0xd5   :  { %v10556_v20 = vld [vmem:[#allocation2 + $0x21] sm:$0xff]  ;;  %2347 = vmatpush.bf16.msrb.mxu3 %v9831_v12 }
  0xd6   :  { %v10560_v22 = vld [vmem:[#allocation2 + $0x22] sm:$0xff]  ;;  %1786 = vst [vmem:[#allocation2 + $0x30] sm:$0xff] %v1738_v17  ;;  %v1222_v23 = vmax.f32 %v805_v18, %v1112_v60 }
  0xd7   :  { %v10564_v25 = vld [vmem:[#allocation2 + $0x24] sm:$0xff]  ;;  %2194 = vmatpush.bf16.msrb.mxu2 %v9822_v26 }
  0xd8   :  { %13193 = vst [vmem:[#allocation7_spill] sm:$0xff] %v10564_v25  ;;  %v1639_v29 = vmax.f32 %v1222_v23, %v1529_v61  ;;  %v10593_v54 = vld [vmem:[#allocation2 + $0x23] sm:$0xff]  ;;  %v9719_v61 = vld [vmem:[%s13097_s0 + $0x70] sm:$0xff] }
  0xd9   :  { %v1117_v31 = vpop.f32.mrf.mxu2  ;;  %13194 = vst [vmem:[#allocation8_spill] sm:$0xff] %v10593_v54 }
  0xda   :  { %v1691_v30 = vadd.f32 %v10475_v62, %v1639_v29  ;;  %v1534_v32 = vpop.f32.mrf.mxu3  ;;  %v334_v35 = vpop.f32.mrf.mxu0 }
  0xdb   :  { %v698_v36 = vpop.f32.mrf.mxu1 }
  0xdc   :  { %v1739_v39 = vmax.f32 %v1691_v30, 0.0  ;;  %v806_v40 = vmax.f32 %v329_v1, %v698_v36 }
  0xdd   :  { %7352 = vmatmul.msk.bf16.gmra.mxu0 %vm220_vm2, %v9718_v33  ;;  %7471 = vmatmul.msk.bf16.gmra.mxu1 %vm220_vm2, %v9741_v34  ;;  %v10614_v6 = vld [vmem:[#allocation2 + $0x30] sm:$0xff] }
  0xde   :  { %1787 = vst [vmem:[#allocation2 + $0x38] sm:$0xff] %v1739_v39  ;;  %v1223_v41 = vmax.f32 %v806_v40, %v1115_v13  ;;  %7592 = vmatmul.msk.bf16.gmra.mxu2 %vm220_vm2, %v9766_v37  ;;  %v9807_v13 = vld [vmem:[%s13100_s3 + $0x30] sm:$0xff] }
  0xdf   :  { %7712 = vmatmul.msk.bf16.gmra.mxu3 %vm220_vm2, %v9790_v38  ;;  %2055 = vmatpush.bf16.msra.mxu1 %v9807_v13 }
  0xe0   :  { %v1640_v43 = vmax.f32 %v1223_v41, %v1532_v14 }
  0xe1   :  { %v1120_v46 = vpop.f32.mrf.mxu2 }
  0xe2   :  { %v1692_v44 = vadd.f32 %v10475_v62, %v1640_v43  ;;  %v1537_v47 = vpop.f32.mrf.mxu3  ;;  %v336_v48 = vpop.f32.mrf.mxu0  ;;  %v9745_v43 = vld [vmem:[%s13097_s0 + $0x140] sm:$0xff] }
  0xe3   :  { %v700_v49 = vpop.f32.mrf.mxu1 }
  0xe4   :  { %v1740_v50 = vmax.f32 %v1692_v44, 0.0  ;;  %v807_v52 = vmax.f32 %v331_v15, %v700_v49  ;;  %v10631_v15 = vld [vmem:[#allocation2 + $0x30] sm:$0xff] }
  0xe5   :  { %v10595_v55 = vld [vmem:[#allocation2 + $0x33] sm:$0xff]  ;;  %13196 = vst [vmem:[#allocation10_spill] sm:$0xff] %v10631_v15 }
  0xe6   :  { %1788 = vst [vmem:[#allocation2 + $0x40] sm:$0xff] %v1740_v50  ;;  %v1224_v53 = vmax.f32 %v807_v52, %v1117_v31  ;;  %v10640_v36 = vld [vmem:[#allocation2 + $0x31] sm:$0xff] }
  0xe7   :  { %13195 = vst [vmem:[#allocation9_spill] sm:$0xff] %v10595_v55  ;;  %v10644_v38 = vld [vmem:[#allocation2 + $0x32] sm:$0xff] }
  0xe8   :  { %v1641_v57 = vmax.f32 %v1224_v53, %v1534_v32  ;;  %v10648_v41 = vld [vmem:[#allocation2 + $0x34] sm:$0xff] }
  0xe9   :  { %v1122_v59 = vpop.f32.mrf.mxu2  ;;  %13198 = vst [vmem:[#allocation12_spill] sm:$0xff] %v10648_v41  ;;  %v10662_v49 = vld [vmem:[#allocation2 + $0x34] sm:$0xff] }
  0xea   :  { %v1693_v58 = vadd.f32 %v10475_v62, %v1641_v57  ;;  %v1539_v60 = vpop.f32.mrf.mxu3  ;;  %v10606_v0 = vpop.f32.mrf.mxu0  ;;  %13202 = vst [vmem:[#allocation16_spill] sm:$0xff] %v10662_v49 }
  0xeb   :  { %v703_v1 = vpop.f32.mrf.mxu1 }
  0xec   :  { %v1741_v4 = vmax.f32 %v1693_v58, 0.0  ;;  %v808_v5 = vmax.f32 %v334_v35, %v703_v1  ;;  %v9743_v1 = vld [vmem:[%s13097_s0 + $0x130] sm:$0xff] }
  0xed   :  { %7353 = vmatmul.msk.bf16.gmra.mxu0 %vm220_vm2, %v9719_v61  ;;  %7472 = vmatmul.msk.bf16.gmra.mxu1 %vm220_vm2, %v9742_v63  ;;  %v10629_v14 = vld [vmem:[#allocation2 + $0x40] sm:$0xff]  ;;  %v9720_v63 = vld [vmem:[%s13097_s0 + $0x78] sm:$0xff] }
  0xee   :  { %1789 = vst [vmem:[#allocation2 + $0x48] sm:$0xff] %v1741_v4  ;;  %v1225_v7 = vmax.f32 %v808_v5, %v1120_v46  ;;  %7593 = vmatmul.msk.bf16.gmra.mxu2 %vm220_vm2, %v9767_v2  ;;  %v10633_v16 = vld [vmem:[#allocation2 + $0x40] sm:$0xff]  ;;  %v10656_v46 = vld [vmem:[#allocation2 + $0x32] sm:$0xff] }
  0xef   :  { %7713 = vmatmul.msk.bf16.gmra.mxu3 %vm220_vm2, %v9791_v3  ;;  %13197 = vst [vmem:[#allocation11_spill] sm:$0xff] %v10633_v16  ;;  %v9768_v3 = vld [vmem:[%s13097_s0 + $0x1f8] sm:$0xff] }
  0xf0   :  { %v1642_v17 = vmax.f32 %v1225_v7, %v1537_v47  ;;  %13200 = vst [vmem:[#allocation14_spill] sm:$0xff] %v10656_v46  ;;  %v9792_v4 = vld [vmem:[%s13097_s0 + $0x2b8] sm:$0xff] }
  0xf1   :  { %v1125_v30 = vpop.f32.mrf.mxu2 }
  0xf2   :  { %v1694_v29 = vadd.f32 %v10475_v62, %v1642_v17  ;;  %v1542_v31 = vpop.f32.mrf.mxu3  ;;  %v341_v32 = vpop.f32.mrf.mxu0 }
  0xf3   :  { %v705_v33 = vpop.f32.mrf.mxu1 }
  0xf4   :  { %v1742_v34 = vmax.f32 %v1694_v29, 0.0  ;;  %v809_v35 = vmax.f32 %v336_v48, %v705_v33 }
  0xf5   :  { %v10642_v37 = vld [vmem:[#allocation2 + $0x41] sm:$0xff] }
  0xf6   :  { %v10646_v39 = vld [vmem:[#allocation2 + $0x42] sm:$0xff]  ;;  %1790 = vst [vmem:[#allocation2 + $0x50] sm:$0xff] %v1742_v34  ;;  %v1226_v40 = vmax.f32 %v809_v35, %v1122_v59 }
  0xf7   :  { %v10650_v42 = vld [vmem:[#allocation2 + $0x44] sm:$0xff] }
  0xf8   :  { %13199 = vst [vmem:[#allocation13_spill] sm:$0xff] %v10650_v42  ;;  %v10660_v48 = vld [vmem:[#allocation2 + $0x42] sm:$0xff]  ;;  %v1643_v52 = vmax.f32 %v1226_v40, %v1539_v60 }
  0xf9   :  { %13201 = vst [vmem:[#allocation15_spill] sm:$0xff] %v10660_v48  ;;  %v10664_v50 = vld [vmem:[#allocation2 + $0x44] sm:$0xff]  ;;  %v1127_v59 = vpop.f32.mrf.mxu2 }
  0xfa   :  { %13203 = vst [vmem:[#allocation17_spill] sm:$0xff] %v10664_v50  ;;  %v1695_v58 = vadd.f32 %v10475_v62, %v1643_v52  ;;  %v1544_v61 = vpop.f32.mrf.mxu3  ;;  %v344_v2 = vpop.f32.mrf.mxu0  ;;  %v9837_v42 = vld [vmem:[%s13100_s3 + $0x120] sm:$0xff] }
  0xfb   :  { %v708_v60 = vpop.f32.mrf.mxu1 }
  0xfc   :  { %v1743_v5 = vmax.f32 %v1695_v58, 0.0  ;;  %v810_v7 = vmax.f32 %v10606_v0, %v708_v60  ;;  %v10699_v60 = vld [vmem:[#allocation2 + $0x43] sm:$0xff] }
  0xfd   :  { %7354 = vmatmul.msk.bf16.gmra.mxu0 %vm220_vm2, %v9720_v63  ;;  %7473 = vmatmul.msk.bf16.gmra.mxu1 %vm220_vm2, %v9743_v1  ;;  %v10695_v63 = vld [vmem:[#allocation2 + $0x41] sm:$0xff]  ;;  %13208 = vst [vmem:[#allocation22_spill] sm:$0xff] %v10699_v60 }
  0xfe   :  { %1791 = vst [vmem:[#allocation2 + $0x58] sm:$0xff] %v1743_v5  ;;  %v1227_v11 = vmax.f32 %v810_v7, %v1125_v30  ;;  %7594 = vmatmul.msk.bf16.gmra.mxu2 %vm220_vm2, %v9768_v3  ;;  %v10689_v30 = vld [vmem:[#allocation2 + $0x43] sm:$0xff] }
  0xff   :  { %7714 = vmatmul.msk.bf16.gmra.mxu3 %vm220_vm2, %v9792_v4  ;;  %13204 = vst [vmem:[#allocation18_spill] sm:$0xff] %v10689_v30 }
 0x100   :  { %v1644_v12 = vmax.f32 %v1227_v11, %v1542_v31  ;;  %13206 = vst [vmem:[#allocation20_spill] sm:$0xff] %v10695_v63  ;;  %v9721_v11 = vld [vmem:[%s13097_s0 + $0x80] sm:$0xff]  ;;  %v9830_v63 = vld [vmem:[%s13100_s3 + $0xe8] sm:$0xff] }
 0x101   :  { %v1130_v17 = vpop.f32.mrf.mxu2  ;;  %2348 = vmatpush.bf16.msrb.mxu3 %v9830_v63 }
 0x102   :  { %v1696_v13 = vadd.f32 %v10475_v62, %v1644_v12  ;;  %v1547_v29 = vpop.f32.mrf.mxu3  ;;  %v346_v33 = vpop.f32.mrf.mxu0 }
 0x103   :  { %v710_v34 = vpop.f32.mrf.mxu1 }
 0x104   :  { %v1744_v35 = vmax.f32 %v1696_v13, 0.0  ;;  %v811_v40 = vmax.f32 %v341_v32, %v710_v34  ;;  %v9769_v34 = vld [vmem:[%s13097_s0 + $0x200] sm:$0xff]  ;;  %v9812_v32 = vld [vmem:[%s13100_s3 + $0x58] sm:$0xff] }
 0x105   :  { %v10691_v52 = vld [vmem:[#allocation2 + $0x53] sm:$0xff]  ;;  %1961 = vmatpush.bf16.msrb.mxu0 %v9812_v32 }
 0x106   :  { %1792 = vst [vmem:[#allocation2 + $0x60] sm:$0xff] %v1744_v35  ;;  %v1228_v0 = vmax.f32 %v811_v40, %v1127_v59  ;;  %v10697_v31 = vld [vmem:[#allocation2 + $0x51] sm:$0xff]  ;;  %v9793_v35 = vld [vmem:[%s13097_s0 + $0x2c0] sm:$0xff] }
 0x107   :  { %13205 = vst [vmem:[#allocation19_spill] sm:$0xff] %v10691_v52  ;;  %v10701_v3 = vld [vmem:[#allocation2 + $0x53] sm:$0xff] }
 0x108   :  { %13207 = vst [vmem:[#allocation21_spill] sm:$0xff] %v10697_v31  ;;  %v1645_v1 = vmax.f32 %v1228_v0, %v1544_v61  ;;  %v9744_v61 = vld [vmem:[%s13097_s0 + $0x138] sm:$0xff]  ;;  %v10725_v59 = vld [vmem:[#allocation2 + $0x50] sm:$0xff]  ;;  %v9806_v31 = vld [vmem:[%s13100_s3 + $0x28] sm:$0xff] }
 0x109   :  { %13209 = vst [vmem:[#allocation23_spill] sm:$0xff] %v10701_v3  ;;  %v1132_v5 = vpop.f32.mrf.mxu2  ;;  %v10740_v56 = vld [vmem:[#allocation2 + $0x51] sm:$0xff]  ;;  %2056 = vmatpush.bf16.msra.mxu1 %v9806_v31 }
 0x10a   :  { %v1697_v4 = vadd.f32 %v10475_v62, %v1645_v1  ;;  %v1549_v7 = vpop.f32.mrf.mxu3  ;;  %v349_v12 = vpop.f32.mrf.mxu0  ;;  %v10744_v47 = vld [vmem:[#allocation2 + $0x52] sm:$0xff] }
 0x10b   :  { %v713_v13 = vpop.f32.mrf.mxu1  ;;  %v10748_v32 = vld [vmem:[#allocation2 + $0x54] sm:$0xff] }
 0x10c   :  { %v1745_v40 = vmax.f32 %v1697_v4, 0.0  ;;  %v812_v0 = vmax.f32 %v344_v2, %v713_v13  ;;  %13212 = vst [vmem:[#allocation26_spill] sm:$0xff] %v10748_v32  ;;  %v10762_v2 = vld [vmem:[#allocation2 + $0x54] sm:$0xff] }
 0x10d   :  { %7355 = vmatmul.msk.bf16.gmra.mxu0 %vm220_vm2, %v9721_v11  ;;  %7474 = vmatmul.msk.bf16.gmra.mxu1 %vm220_vm2, %v9744_v61  ;;  %v10727_v57 = vld [vmem:[#allocation2 + $0x60] sm:$0xff]  ;;  %13216 = vst [vmem:[#allocation30_spill] sm:$0xff] %v10762_v2 }
 0x10e   :  { %1793 = vst [vmem:[#allocation2 + $0x68] sm:$0xff] %v1745_v40  ;;  %v1229_v1 = vmax.f32 %v812_v0, %v1130_v17  ;;  %7595 = vmatmul.msk.bf16.gmra.mxu2 %vm220_vm2, %v9769_v34  ;;  %v10733_v17 = vld [vmem:[#allocation2 + $0x50] sm:$0xff]  ;;  %v10735_v4 = vld [vmem:[#allocation2 + $0x60] sm:$0xff] }
 0x10f   :  { %7715 = vmatmul.msk.bf16.gmra.mxu3 %vm220_vm2, %v9793_v35  ;;  %13210 = vst [vmem:[#allocation24_spill] sm:$0xff] %v10733_v17 }
 0x110   :  { %13211 = vst [vmem:[#allocation25_spill] sm:$0xff] %v10735_v4  ;;  %v1646_v11 = vmax.f32 %v1229_v1, %v1547_v29 }
 0x111   :  { %v1135_v40 = vpop.f32.mrf.mxu2 }
 0x112   :  { %v1698_v13 = vadd.f32 %v10475_v62, %v1646_v11  ;;  %v1552_v0 = vpop.f32.mrf.mxu3  ;;  %v351_v53 = vpop.f32.mrf.mxu0 }
 0x113   :  { %v715_v34 = vpop.f32.mrf.mxu1 }
 0x114   :  { %v1746_v58 = vmax.f32 %v1698_v13, 0.0  ;;  %v813_v35 = vmax.f32 %v346_v33, %v715_v34  ;;  %v10756_v13 = vld [vmem:[#allocation2 + $0x52] sm:$0xff]  ;;  %v9722_v34 = vld [vmem:[%s13097_s0 + $0x88] sm:$0xff] }
 0x115   :  { %v10742_v23 = vld [vmem:[#allocation2 + $0x61] sm:$0xff]  ;;  %13214 = vst [vmem:[#allocation28_spill] sm:$0xff] %v10756_v13 }
 0x116   :  { %v10746_v28 = vld [vmem:[#allocation2 + $0x62] sm:$0xff]  ;;  %1794 = vst [vmem:[#allocation2 + $0x70] sm:$0xff] %v1746_v58  ;;  %v1230_v29 = vmax.f32 %v813_v35, %v1132_v5 }
 0x117   :  { %v10750_v1 = vld [vmem:[#allocation2 + $0x64] sm:$0xff] }
 0x118   :  { %13213 = vst [vmem:[#allocation27_spill] sm:$0xff] %v10750_v1  ;;  %v10760_v61 = vld [vmem:[#allocation2 + $0x62] sm:$0xff]  ;;  %v1647_v5 = vmax.f32 %v1230_v29, %v1549_v7 }
 0x119   :  { %13215 = vst [vmem:[#allocation29_spill] sm:$0xff] %v10760_v61  ;;  %v10764_v58 = vld [vmem:[#allocation2 + $0x64] sm:$0xff]  ;;  %v1137_v18 = vpop.f32.mrf.mxu2 }
 0x11a   :  { %13217 = vst [vmem:[#allocation31_spill] sm:$0xff] %v10764_v58  ;;  %v1699_v33 = vadd.f32 %v10475_v62, %v1647_v5  ;;  %v1554_v44 = vpop.f32.mrf.mxu3  ;;  %v354_v10 = vpop.f32.mrf.mxu0  ;;  %v9770_v29 = vld [vmem:[%s13097_s0 + $0x208] sm:$0xff] }
 0x11b   :  { %v718_v7 = vpop.f32.mrf.mxu1  ;;  %v9794_v5 = vld [vmem:[%s13097_s0 + $0x2c8] sm:$0xff] }
 0x11c   :  { %v1747_v11 = vmax.f32 %v1699_v33, 0.0  ;;  %v814_v35 = vmax.f32 %v349_v12, %v718_v7  ;;  %v10797_v3 = vld [vmem:[#allocation2 + $0x63] sm:$0xff] }
 0x11d   :  { %7356 = vmatmul.msk.bf16.gmra.mxu0 %vm220_vm2, %v9722_v34  ;;  %7475 = vmatmul.msk.bf16.gmra.mxu1 %vm220_vm2, %v9745_v43  ;;  %13218 = vst [vmem:[#allocation32_spill] sm:$0xff] %v10797_v3  ;;  %v10803_v26 = vld [vmem:[#allocation2 + $0x61] sm:$0xff] }
 0x11e   :  { %1795 = vst [vmem:[#allocation2 + $0x78] sm:$0xff] %v1747_v11  ;;  %v1231_v27 = vmax.f32 %v814_v35, %v1135_v40  ;;  %7596 = vmatmul.msk.bf16.gmra.mxu2 %vm220_vm2, %v9770_v29 }
 0x11f   :  { %7716 = vmatmul.msk.bf16.gmra.mxu3 %vm220_vm2, %v9794_v5  ;;  %13220 = vst [vmem:[#allocation34_spill] sm:$0xff] %v10803_v26 }
 0x120   :  { %v1648_v12 = vmax.f32 %v1231_v27, %v1552_v0  ;;  %v10807_v0 = vld [vmem:[#allocation2 + $0x63] sm:$0xff] }
 0x121   :  { %v1140_v40 = vpop.f32.mrf.mxu2  ;;  %13222 = vst [vmem:[#allocation36_spill] sm:$0xff] %v10807_v0 }
 0x122   :  { %v1700_v43 = vadd.f32 %v10475_v62, %v1648_v12  ;;  %v1557_v11 = vpop.f32.mrf.mxu3  ;;  %v356_v33 = vpop.f32.mrf.mxu0 }
 0x123   :  { %v720_v34 = vpop.f32.mrf.mxu1 }
 0x124   :  { %v1748_v35 = vmax.f32 %v1700_v43, 0.0  ;;  %v815_v7 = vmax.f32 %v351_v53, %v720_v34  ;;  %v9723_v34 = vld [vmem:[%s13097_s0 + $0x90] sm:$0xff] }
 0x125   :  { %v10799_v13 = vld [vmem:[#allocation2 + $0x73] sm:$0xff] }
 0x126   :  { %1796 = vst [vmem:[#allocation2 + $0x80] sm:$0xff] %v1748_v35  ;;  %v1232_v60 = vmax.f32 %v815_v7, %v1137_v18  ;;  %v10805_v63 = vld [vmem:[#allocation2 + $0x71] sm:$0xff] }
 0x127   :  { %13219 = vst [vmem:[#allocation33_spill] sm:$0xff] %v10799_v13  ;;  %v10809_v29 = vld [vmem:[#allocation2 + $0x73] sm:$0xff] }
 0x128   :  { %13221 = vst [vmem:[#allocation35_spill] sm:$0xff] %v10805_v63  ;;  %v1649_v31 = vmax.f32 %v1232_v60, %v1554_v44  ;;  %v9746_v44 = vld [vmem:[%s13097_s0 + $0x148] sm:$0xff]  ;;  %v9771_v7 = vld [vmem:[%s13097_s0 + $0x210] sm:$0xff] }
 0x129   :  { %13223 = vst [vmem:[#allocation37_spill] sm:$0xff] %v10809_v29  ;;  %v1142_v12 = vpop.f32.mrf.mxu2 }
 0x12a   :  { %v1701_v5 = vadd.f32 %v10475_v62, %v1649_v31  ;;  %v1559_v43 = vpop.f32.mrf.mxu3  ;;  %v359_v60 = vpop.f32.mrf.mxu0  ;;  %v9795_v31 = vld [vmem:[%s13097_s0 + $0x2d0] sm:$0xff] }
 0x12b   :  { %v723_v35 = vpop.f32.mrf.mxu1 }
 0x12c   :  { %v1749_v53 = vmax.f32 %v1701_v5, 0.0  ;;  %v816_v18 = vmax.f32 %v354_v10, %v723_v35 }
 0x12d   :  { %7357 = vmatmul.msk.bf16.gmra.mxu0 %vm220_vm2, %v9723_v34  ;;  %7476 = vmatmul.msk.bf16.gmra.mxu1 %vm220_vm2, %v9746_v44  ;;  %v9724_v44 = vld [vmem:[%s13097_s0 + $0x98] sm:$0xff] }
 0x12e   :  { %1797 = vst [vmem:[#allocation2 + $0x88] sm:$0xff] %v1749_v53  ;;  %v1233_v27 = vmax.f32 %v816_v18, %v1140_v40  ;;  %7597 = vmatmul.msk.bf16.gmra.mxu2 %vm220_vm2, %v9771_v7  ;;  %v10833_v40 = vld [vmem:[#allocation2 + $0x72] sm:$0xff]  ;;  %v9805_v18 = vld [vmem:[%s13100_s3 + $0x20] sm:$0xff] }
 0x12f   :  { %7717 = vmatmul.msk.bf16.gmra.mxu3 %vm220_vm2, %v9795_v31  ;;  %13224 = vst [vmem:[#allocation38_spill] sm:$0xff] %v10833_v40  ;;  %v9811_v31 = vld [vmem:[%s13100_s3 + $0x50] sm:$0xff]  ;;  %2057 = vmatpush.bf16.msra.mxu1 %v9805_v18 }
 0x130   :  { %v1650_v26 = vmax.f32 %v1233_v27, %v1557_v11  ;;  %1962 = vmatpush.bf16.msrb.mxu0 %v9811_v31 }
 0x131   :  { %v1145_v0 = vpop.f32.mrf.mxu2 }
 0x132   :  { %v1702_v63 = vadd.f32 %v10475_v62, %v1650_v26  ;;  %v1562_v29 = vpop.f32.mrf.mxu3  ;;  %v361_v61 = vpop.f32.mrf.mxu0 }
 0x133   :  { %v725_v2 = vpop.f32.mrf.mxu1 }
 0x134   :  { %v1750_v58 = vmax.f32 %v1702_v63, 0.0  ;;  %v817_v5 = vmax.f32 %v356_v33, %v725_v2  ;;  %v9747_v2 = vld [vmem:[%s13097_s0 + $0x150] sm:$0xff]  ;;  %v9772_v63 = vld [vmem:[%s13097_s0 + $0x218] sm:$0xff] }
 0x135   :  { %v10835_v53 = vld [vmem:[#allocation2 + $0x82] sm:$0xff] }
 0x136   :  { %1798 = vst [vmem:[#allocation2 + $0x90] sm:$0xff] %v1750_v58  ;;  %v1234_v10 = vmax.f32 %v817_v5, %v1142_v12  ;;  %v9796_v12 = vld [vmem:[%s13097_s0 + $0x2d8] sm:$0xff] }
 0x137   :  { %13225 = vst [vmem:[#allocation39_spill] sm:$0xff] %v10835_v53 }
 0x138   :  { %v1651_v34 = vmax.f32 %v1234_v10, %v1559_v43 }
 0x139   :  { %v1147_v27 = vpop.f32.mrf.mxu2 }
 0x13a   :  { %v1703_v11 = vadd.f32 %v10475_v62, %v1651_v34  ;;  %v1564_v26 = vpop.f32.mrf.mxu3  ;;  %v364_v58 = vpop.f32.mrf.mxu0 }
 0x13b   :  { %v728_v33 = vpop.f32.mrf.mxu1 }
 0x13c   :  { %v1751_v43 = vmax.f32 %v1703_v11, 0.0  ;;  %v818_v35 = vmax.f32 %v359_v60, %v728_v33 }
 0x13d   :  { %7358 = vmatmul.msk.bf16.gmra.mxu0 %vm220_vm2, %v9724_v44  ;;  %7477 = vmatmul.msk.bf16.gmra.mxu1 %vm220_vm2, %v9747_v2 }
 0x13e   :  { %1799 = vst [vmem:[#allocation2 + $0x98] sm:$0xff] %v1751_v43  ;;  %v1235_v7 = vmax.f32 %v818_v35, %v1145_v0  ;;  %7598 = vmatmul.msk.bf16.gmra.mxu2 %vm220_vm2, %v9772_v63  ;;  %v10860_v43 = vld [vmem:[#allocation2 + $0x81] sm:$0xff] }
 0x13f   :  { %7718 = vmatmul.msk.bf16.gmra.mxu3 %vm220_vm2, %v9796_v12  ;;  %13226 = vst [vmem:[#allocation40_spill] sm:$0xff] %v10860_v43  ;;  %v9829_v63 = vld [vmem:[%s13100_s3 + $0xe0] sm:$0xff] }
 0x140   :  { %v1652_v5 = vmax.f32 %v1235_v7, %v1562_v29  ;;  %2349 = vmatpush.bf16.msrb.mxu3 %v9829_v63 }
 0x141   :  { %v1150_v34 = vpop.f32.mrf.mxu2 }
 0x142   :  { %v1704_v10 = vadd.f32 %v10475_v62, %v1652_v5  ;;  %v1567_v60 = vpop.f32.mrf.mxu3  ;;  %v366_v11 = vpop.f32.mrf.mxu0  ;;  %v9725_v5 = vld [vmem:[%s13097_s0 + $0xa0] sm:$0xff] }
 0x143   :  { %v730_v0 = vpop.f32.mrf.mxu1 }
 0x144   :  { %v1752_v33 = vmax.f32 %v1704_v10, 0.0  ;;  %v819_v44 = vmax.f32 %v361_v61, %v730_v0  ;;  %v9748_v61 = vld [vmem:[%s13097_s0 + $0x158] sm:$0xff]  ;;  %v9773_v0 = vld [vmem:[%s13097_s0 + $0x220] sm:$0xff] }
 0x145   :  { %v10862_v35 = vld [vmem:[#allocation2 + $0x91] sm:$0xff] }
 0x146   :  { %1800 = vst [vmem:[#allocation2 + $0xa0] sm:$0xff] %v1752_v33  ;;  %v1236_v2 = vmax.f32 %v819_v44, %v1147_v27 }
 0x147   :  { %13227 = vst [vmem:[#allocation41_spill] sm:$0xff] %v10862_v35 }
 0x148   :  { %v1653_v12 = vmax.f32 %v1236_v2, %v1564_v26  ;;  %v9797_v26 = vld [vmem:[%s13097_s0 + $0x2e0] sm:$0xff] }
 0x149   :  { %v1152_v7 = vpop.f32.mrf.mxu2 }
 0x14a   :  { %v1705_v29 = vadd.f32 %v10475_v62, %v1653_v12  ;;  %v1569_v31 = vpop.f32.mrf.mxu3  ;;  %v369_v27 = vpop.f32.mrf.mxu0  ;;  %v9821_v12 = vld [vmem:[%s13100_s3 + $0xa0] sm:$0xff] }
 0x14b   :  { %v733_v10 = vpop.f32.mrf.mxu1  ;;  %2195 = vmatpush.bf16.msrb.mxu2 %v9821_v12 }
 0x14c   :  { %v1753_v33 = vmax.f32 %v1705_v29, 0.0  ;;  %v820_v44 = vmax.f32 %v364_v58, %v733_v10 }
 0x14d   :  { %7359 = vmatmul.msk.bf16.gmra.mxu0 %vm220_vm2, %v9725_v5  ;;  %7478 = vmatmul.msk.bf16.gmra.mxu1 %vm220_vm2, %v9748_v61 }
 0x14e   :  { %1801 = vst [vmem:[#allocation2 + $0xa8] sm:$0xff] %v1753_v33  ;;  %v1237_v2 = vmax.f32 %v820_v44, %v1150_v34  ;;  %7599 = vmatmul.msk.bf16.gmra.mxu2 %vm220_vm2, %v9773_v0  ;;  %v9810_v0 = vld [vmem:[%s13100_s3 + $0x48] sm:$0xff] }
 0x14f   :  { %7719 = vmatmul.msk.bf16.gmra.mxu3 %vm220_vm2, %v9797_v26  ;;  %1963 = vmatpush.bf16.msrb.mxu0 %v9810_v0  ;;  %v9726_v26 = vld [vmem:[%s13097_s0 + $0xa8] sm:$0xff] }
 0x150   :  { %v1654_v58 = vmax.f32 %v1237_v2, %v1567_v60 }
 0x151   :  { %v1155_v29 = vpop.f32.mrf.mxu2 }
 0x152   :  { %v1706_v34 = vadd.f32 %v10475_v62, %v1654_v58  ;;  %v1572_v5 = vpop.f32.mrf.mxu3  ;;  %v371_v61 = vpop.f32.mrf.mxu0 }
 0x153   :  { %v735_v10 = vpop.f32.mrf.mxu1 }
 0x154   :  { %v1754_v33 = vmax.f32 %v1706_v34, 0.0  ;;  %v821_v44 = vmax.f32 %v366_v11, %v735_v10  ;;  %v9749_v11 = vld [vmem:[%s13097_s0 + $0x160] sm:$0xff]  ;;  %v9820_v10 = vld [vmem:[%s13100_s3 + $0x98] sm:$0xff] }
 0x155   :  { %2196 = vmatpush.bf16.msrb.mxu2 %v9820_v10 }
 0x156   :  { %1802 = vst [vmem:[#allocation2 + $0xb0] sm:$0xff] %v1754_v33  ;;  %v1238_v43 = vmax.f32 %v821_v44, %v1152_v7  ;;  %v9809_v7 = vld [vmem:[%s13100_s3 + $0x40] sm:$0xff]  ;;  %v9828_v33 = vld [vmem:[%s13100_s3 + $0xd8] sm:$0xff] }
 0x157   :  { %1964 = vmatpush.bf16.msrb.mxu0 %v9809_v7  ;;  %2350 = vmatpush.bf16.msrb.mxu3 %v9828_v33 }
 0x158   :  { %v1655_v35 = vmax.f32 %v1238_v43, %v1569_v31  ;;  %v9774_v43 = vld [vmem:[%s13097_s0 + $0x228] sm:$0xff] }
 0x159   :  { %v1157_v63 = vpop.f32.mrf.mxu2 }
 0x15a   :  { %v1707_v60 = vadd.f32 %v10475_v62, %v1655_v35  ;;  %v1574_v18 = vpop.f32.mrf.mxu3  ;;  %v374_v2 = vpop.f32.mrf.mxu0  ;;  %v9798_v35 = vld [vmem:[%s13097_s0 + $0x2e8] sm:$0xff] }
 0x15b   :  { %v738_v12 = vpop.f32.mrf.mxu1 }
 0x15c   :  { %v1755_v31 = vmax.f32 %v1707_v60, 0.0  ;;  %v822_v58 = vmax.f32 %v369_v27, %v738_v12  ;;  %v9819_v60 = vld [vmem:[%s13100_s3 + $0x90] sm:$0xff] }
 0x15d   :  { %7360 = vmatmul.msk.bf16.gmra.mxu0 %vm220_vm2, %v9726_v26  ;;  %7479 = vmatmul.msk.bf16.gmra.mxu1 %vm220_vm2, %v9749_v11  ;;  %v9827_v26 = vld [vmem:[%s13100_s3 + $0xd0] sm:$0xff] }
 0x15e   :  { %1803 = vst [vmem:[#allocation2 + $0xb8] sm:$0xff] %v1755_v31  ;;  %v1239_v34 = vmax.f32 %v822_v58, %v1155_v29  ;;  %7600 = vmatmul.msk.bf16.gmra.mxu2 %vm220_vm2, %v9774_v43  ;;  %2351 = vmatpush.bf16.msrb.mxu3 %v9827_v26  ;;  %v9826_v31 = vld [vmem:[%s13100_s3 + $0xc8] sm:$0xff]  ;;  %v9775_v26 = vld [vmem:[%s13097_s0 + $0x230] sm:$0xff] }
 0x15f   :  { %7720 = vmatmul.msk.bf16.gmra.mxu3 %vm220_vm2, %v9798_v35  ;;  %2197 = vmatpush.bf16.msrb.mxu2 %v9819_v60  ;;  %v9818_v35 = vld [vmem:[%s13100_s3 + $0x88] sm:$0xff] }
 0x160   :  { %v1656_v27 = vmax.f32 %v1239_v34, %v1572_v5  ;;  %v9727_v34 = vld [vmem:[%s13097_s0 + $0xb0] sm:$0xff] }
 0x161   :  { %v1160_v44 = vpop.f32.mrf.mxu2 }
 0x162   :  { %v1708_v29 = vadd.f32 %v10475_v62, %v1656_v27  ;;  %v1577_v0 = vpop.f32.mrf.mxu3  ;;  %v376_v11 = vpop.f32.mrf.mxu0  ;;  %2352 = vmatpush.bf16.msrb.mxu3 %v9826_v31  ;;  %v9817_v27 = vld [vmem:[%s13100_s3 + $0x80] sm:$0xff]  ;;  %v9804_v31 = vld [vmem:[%s13100_s3 + $0x18] sm:$0xff] }
 0x163   :  { %v740_v7 = vpop.f32.mrf.mxu1  ;;  %2198 = vmatpush.bf16.msrb.mxu2 %v9818_v35  ;;  %2058 = vmatpush.bf16.msra.mxu1 %v9804_v31 }
 0x164   :  { %v1756_v12 = vmax.f32 %v1708_v29, 0.0  ;;  %v823_v43 = vmax.f32 %v371_v61, %v740_v7  ;;  %v9799_v7 = vld [vmem:[%s13097_s0 + $0x2f0] sm:$0xff] }
 0x166   :  { %1804 = vst [vmem:[#allocation2 + $0xc0] sm:$0xff] %v1756_v12  ;;  %v1240_v5 = vmax.f32 %v823_v43, %v1157_v63  ;;  %v9750_v63 = vld [vmem:[%s13097_s0 + $0x168] sm:$0xff] }
 0x167   :  { %2199 = vmatpush.bf16.msrb.mxu2 %v9817_v27 }
 0x168   :  { %v1657_v58 = vmax.f32 %v1240_v5, %v1574_v18  ;;  %v9825_v18 = vld [vmem:[%s13100_s3 + $0xc0] sm:$0xff] }
 0x169   :  { %v1162_v10 = vpop.f32.mrf.mxu2  ;;  %2353 = vmatpush.bf16.msrb.mxu3 %v9825_v18 }
 0x16a   :  { %v1709_v61 = vadd.f32 %v10475_v62, %v1657_v58  ;;  %v1579_v33 = vpop.f32.mrf.mxu3  ;;  %v379_v29 = vpop.f32.mrf.mxu0 }
 0x16b   :  { %v743_v60 = vpop.f32.mrf.mxu1 }
 0x16c   :  { %v1757_v43 = vmax.f32 %v1709_v61, 0.0  ;;  %v824_v5 = vmax.f32 %v374_v2, %v743_v60 }
 0x16d   :  { %7361 = vmatmul.msk.bf16.gmra.mxu0 %vm220_vm2, %v9727_v34  ;;  %7480 = vmatmul.msk.bf16.gmra.mxu1 %vm220_vm2, %v9750_v63 }
 0x16e   :  { %1805 = vst [vmem:[#allocation2 + $0xc8] sm:$0xff] %v1757_v43  ;;  %v1241_v35 = vmax.f32 %v824_v5, %v1160_v44  ;;  %7601 = vmatmul.msk.bf16.gmra.mxu2 %vm220_vm2, %v9775_v26  ;;  %v9803_v44 = vld [vmem:[%s13100_s3 + $0x10] sm:$0xff] }
 0x16f   :  { %7721 = vmatmul.msk.bf16.gmra.mxu3 %vm220_vm2, %v9799_v7  ;;  %2059 = vmatpush.bf16.msra.mxu1 %v9803_v44  ;;  %v10973_v7 = vld [vmem:[%s13099_s2] ss:$0 sm:$0xff]  ;;  %v1868_v44 = vld [vmem:[#allocation2 + $0x1] sm:$0xff] }
 0x170   :  { %v1658_v58 = vmax.f32 %v1241_v35, %v1577_v0  ;;  %v9802_v0 = vld [vmem:[%s13100_s3 + $0x8] sm:$0xff] }
 0x171   :  { %v1165_v61 = vpop.f32.mrf.mxu2 }
 0x172   :  { %v1710_v2 = vadd.f32 %v10475_v62, %v1658_v58  ;;  %v1582_v27 = vpop.f32.mrf.mxu3  ;;  %v381_v34 = vpop.f32.mrf.mxu0  ;;  %v9776_v58 = vld [vmem:[%s13097_s0 + $0x238] sm:$0xff] }
 0x173   :  { %v745_v63 = vpop.f32.mrf.mxu1  ;;  %2060 = vmatpush.bf16.msra.mxu1 %v9802_v0 }
 0x174   :  { %v1758_v18 = vmax.f32 %v1710_v2, 0.0  ;;  %v825_v60 = vmax.f32 %v376_v11, %v745_v63  ;;  %v9800_v2 = vld [vmem:[%s13097_s0 + $0x2f8] sm:$0xff] }
 0x175   :  { %v1876_v32 = vld [vmem:[#allocation2 + $0xc1] sm:$0xff] }
 0x176   :  { %1806 = vst [vmem:[#allocation2 + $0xd0] sm:$0xff] %v1758_v18  ;;  %v1242_v43 = vmax.f32 %v825_v60, %v1162_v10  ;;  %v10968_v26 = vpack.c.bf16 %v1758_v18, %v1756_v12  ;;  %v9751_v10 = vld [vmem:[%s13097_s0 + $0x170] sm:$0xff]  ;;  %v9801_v12 = vld [vmem:[%s13100_s3] sm:$0xff]  ;;  %v1884_v60 = vpack.c.bf16 %v10554_v19, %v1868_v44 }
 0x177   :  { %2061 = vmatpush.bf16.msra.mxu1 %v9801_v12 }
 0x178   :  { %v1659_v62 = vmax.f32 %v1242_v43, %v1579_v33 }
 0x179   :  { %v1167_v35 = vpop.f32.mrf.mxu2 }
 0x17a   :  { %v1711_v5 = vadd.f32 %v10973_v7, %v1659_v62  ;;  %v1584_v11 = vpop.f32.mrf.mxu3  ;;  %v384_v31 = vpop.f32.mrf.mxu0 }
 0x17b   :  { %v748_v33 = vpop.f32.mrf.mxu1 }
 0x17c   :  { %v1759_v63 = vmax.f32 %v1711_v5, 0.0  ;;  %v826_v18 = vmax.f32 %v379_v29, %v748_v33 }
 0x17d   :  { %7481 = vmatmul.msk.bf16.gmra.mxu1 %vm220_vm2, %v9751_v10  ;;  %1965 = vmatmul.bf16.vlgmr.msrb.gmra.mxu0 %v1884_v60 }
 0x17e   :  { %1807 = vst [vmem:[#allocation2 + $0xd8] sm:$0xff] %v1759_v63  ;;  %v1243_v43 = vmax.f32 %v826_v18, %v1165_v61  ;;  %7602 = vmatmul.msk.bf16.gmra.mxu2 %vm220_vm2, %v9776_v58  ;;  %v9752_v58 = vld [vmem:[%s13097_s0 + $0x178] sm:$0xff] }
 0x17f   :  { %7722 = vmatmul.msk.bf16.gmra.mxu3 %vm220_vm2, %v9800_v2 }
 0x180   :  { %v1660_v0 = vmax.f32 %v1243_v43, %v1582_v27  ;;  %v2258_v27 = vld [vmem:[#allocation2 + $0x13] sm:$0xff] }
 0x181   :  { %v1170_v40 = vpop.f32.mrf.mxu2 }
 0x182   :  { %v1712_v62 = vadd.f32 %v10973_v7, %v1660_v0  ;;  %v1587_v53 = vpop.f32.mrf.mxu3  ;;  %v386_v46 = vpop.f32.mrf.mxu0  ;;  %v1885_v0 = vpack.c.bf16 %v10640_v36, %v10556_v20 }
 0x183   :  { %v750_v5 = vpop.f32.mrf.mxu1 }
 0x184   :  { %v1760_v29 = vmax.f32 %v1712_v62, 0.0  ;;  %v827_v33 = vmax.f32 %v381_v34, %v750_v5  ;;  %v2103_v34 = vld [vmem:[#allocation2 + $0x2] sm:$0xff] }
 0x185   :  { %v2257_v62 = vld [vmem:[#allocation2 + $0x3] sm:$0xff]  ;;  %v11002_v50 = vld [vmem:[#allocation2 + $0xd1] sm:$0xff] }
 0x186   :  { %1808 = vst [vmem:[#allocation2 + $0xe0] sm:$0xff] %v1760_v29  ;;  %v1244_v12 = vmax.f32 %v827_v33, %v1167_v35  ;;  %v2119_v35 = vpack.c.bf16 %v10558_v21, %v2103_v34 }
 0x188   :  { %v1661_v44 = vmax.f32 %v1244_v12, %v1584_v11  ;;  %v2273_v11 = vpack.c.bf16 %v2258_v27, %v2257_v62  ;;  %v11006_v27 = vld [vmem:[#allocation2 + $0xd2] sm:$0xff]  ;;  %v2120_v62 = vpack.c.bf16 %v10644_v38, %v10560_v22 }
 0x189   :  { %v1172_v10 = vpop.f32.mrf.mxu2 }
 0x18a   :  { %v1713_v61 = vadd.f32 %v10973_v7, %v1661_v44  ;;  %v1589_v63 = vpop.f32.mrf.mxu3  ;;  %v389_v2 = vpop.f32.mrf.mxu0 }
 0x18b   :  { %v753_v18 = vpop.f32.mrf.mxu1 }
 0x18c   :  { %v1761_v60 = vmax.f32 %v1713_v61, 0.0  ;;  %v828_v43 = vmax.f32 %v384_v31, %v753_v18 }
 0x18d   :  { %7482 = vmatmul.msk.bf16.gmra.mxu1 %vm220_vm2, %v9752_v58  ;;  %1970 = vmatmul.bf16.gmra.mxu0 %v1885_v0  ;;  %v1886_v0 = vpack.c.bf16 %v10740_v56, %v10642_v37 }
 0x18e   :  { %1809 = vst [vmem:[#allocation2 + $0xe8] sm:$0xff] %v1761_v60  ;;  %v1245_v5 = vmax.f32 %v828_v43, %v1170_v40  ;;  %2200 = vmatmul.bf16.vlgmr.msrb.gmra.mxu2 %v2119_v35 }
 0x18f   :  { %2354 = vmatmul.bf16.vlgmr.msrb.gmra.mxu3 %v2273_v11 }
 0x190   :  { %v1662_v33 = vmax.f32 %v1245_v5, %v1587_v53  ;;  %v11012_v53 = vld [vmem:[#allocation2 + $0xd4] sm:$0xff] }
 0x191   :  { %v1175_v44 = vpop.f32.mrf.mxu2 }
 0x192   :  { %v1714_v12 = vadd.f32 %v10973_v7, %v1662_v33  ;;  %v1592_v31 = vpop.f32.mrf.mxu3  ;;  %v391_v61 = vpop.f32.mrf.mxu0  ;;  %v1828_v33 = vld [vmem:[#allocation2] sm:$0xff] }
 0x193   :  { %v755_v18 = vpop.f32.mrf.mxu1  ;;  %v1844_v3 = vpack.c.bf16 %v10545_v8, %v1828_v33 }
 0x194   :  { %v1762_v48 = vmax.f32 %v1714_v12, 0.0  ;;  %v829_v49 = vmax.f32 %v386_v46, %v755_v18  ;;  %v2259_v46 = vld [vmem:[#allocation2 + $0x23] sm:$0xff] }
 0x195   :  { %v11004_v34 = vld [vmem:[#allocation2 + $0xe1] sm:$0xff] }
 0x196   :  { %v11008_v40 = vld [vmem:[#allocation2 + $0xe2] sm:$0xff]  ;;  %1810 = vst [vmem:[#allocation2 + $0xf0] sm:$0xff] %v1762_v48  ;;  %v1246_v58 = vmax.f32 %v829_v49, %v1172_v10  ;;  %v11010_v60 = vpack.c.bf16 %v1762_v48, %v1760_v29  ;;  %v2260_v48 = vld [vmem:[#allocation2 + $0x33] sm:$0xff] }
 0x197   :  { %v11014_v43 = vld [vmem:[#allocation2 + $0xe4] sm:$0xff] }
 0x198   :  { %v1663_v35 = vmax.f32 %v1246_v58, %v1589_v63  ;;  %v2274_v63 = vpack.c.bf16 %v2260_v48, %v2259_v46  ;;  %v11028_v58 = vld [vmem:[#allocation2 + $0xe0] sm:$0xff] }
 0x199   :  { %v1177_v5 = vpop.f32.mrf.mxu2  ;;  %13228 = vst [vmem:[#allocation42_spill] sm:$0xff] %v11028_v58 }
 0x19a   :  { %v1715_v11 = vadd.f32 %v10973_v7, %v1663_v35  ;;  %v1594_v49 = vpop.f32.mrf.mxu3  ;;  %v394_v29 = vpop.f32.mrf.mxu0 }
 0x19b   :  { %v758_v10 = vpop.f32.mrf.mxu1 }
 0x19c   :  { %v1763_v12 = vmax.f32 %v1715_v11, 0.0  ;;  %v830_v18 = vmax.f32 %v389_v2, %v758_v10 }
 0x19d   :  { %v11030_v35 = vld [vmem:[#allocation2 + $0xf0] sm:$0xff]  ;;  %1975 = vmatmul.bf16.gmra.mxu0 %v1886_v0  ;;  %2062 = vmatmul.bf16.vlgmr.msra.gmra.mxu1 %v1844_v3  ;;  %v2261_v3 = vld [vmem:[#allocation2 + $0x43] sm:$0xff] }
 0x19e   :  { %13229 = vst [vmem:[#allocation43_spill] sm:$0xff] %v11030_v35  ;;  %v1247_v13 = vmax.f32 %v830_v18, %v1175_v44  ;;  %2205 = vmatmul.bf16.gmra.mxu2 %v2120_v62  ;;  %v11041_v62 = vld [vmem:[#allocation2 + $0x71] sm:$0xff] }
 0x19f   :  { %1811 = vst [vmem:[#allocation2 + $0xf8] sm:$0xff] %v1763_v12  ;;  %2359 = vmatmul.bf16.gmra.mxu3 %v2274_v63  ;;  %v11035_v12 = vld [vmem:[#allocation2 + $0xe3] sm:$0xff]  ;;  %v2262_v63 = vld [vmem:[#allocation2 + $0x53] sm:$0xff] }
 0x1a0   :  { %v1664_v11 = vmax.f32 %v1247_v13, %v1592_v31  ;;  %13230 = vst [vmem:[#allocation44_spill] sm:$0xff] %v11035_v12 }
 0x1a1   :  { %v1180_v33 = vpop.f32.mrf.mxu2 }
 0x1a2   :  { %v1716_v10 = vadd.f32 %v10973_v7, %v1664_v11  ;;  %v1597_v30 = vpop.f32.mrf.mxu3  ;;  %v396_v52 = vpop.f32.mrf.mxu0 }
 0x1a3   :  { %v760_v46 = vpop.f32.mrf.mxu1 }
 0x1a4   :  { %v1764_v48 = vmax.f32 %v1716_v10, 0.0  ;;  %v831_v17 = vmax.f32 %v391_v61, %v760_v46  ;;  %v10150_v46 = vld [vmem:[#allocation2 + $0x20] sm:$0xff] }
 0x1a5   :  { %v1845_v2 = vpack.c.bf16 %v10614_v6, %v10150_v46 }
 0x1a6   :  { %1812 = vst [vmem:[#allocation2 + $0x100] sm:$0xff] %v1764_v48  ;;  %v1248_v4 = vmax.f32 %v831_v17, %v1177_v5  ;;  %v11037_v44 = vld [vmem:[#allocation2 + $0xf3] sm:$0xff]  ;;  %v1887_v5 = vpack.c.bf16 %v11041_v62, %v10742_v23 }
 0x1a7   :  { %13231 = vst [vmem:[#allocation45_spill] sm:$0xff] %v11037_v44  ;;  %v11052_v15 = vld [vmem:[#allocation2 + $0xf1] sm:$0xff] }
 0x1a8   :  { %v1665_v0 = vmax.f32 %v1248_v4, %v1594_v49  ;;  %v2121_v4 = vpack.c.bf16 %v10744_v47, %v10646_v39  ;;  %v2275_v49 = vpack.c.bf16 %v2262_v63, %v2261_v3  ;;  %13232 = vst [vmem:[#allocation46_spill] sm:$0xff] %v11052_v15  ;;  %v11056_v3 = vld [vmem:[#allocation2 + $0xf2] sm:$0xff] }
 0x1a9   :  { %v1182_v31 = vpop.f32.mrf.mxu2 }
 0x1aa   :  { %v1717_v13 = vadd.f32 %v10973_v7, %v1665_v0  ;;  %v1599_v18 = vpop.f32.mrf.mxu3  ;;  %v11044_v11 = vpop.f32.mrf.mxu0 }
 0x1ab   :  { %v763_v61 = vpop.f32.mrf.mxu1 }
 0x1ac   :  { %v1765_v10 = vmax.f32 %v1717_v13, 0.0  ;;  %v832_v17 = vmax.f32 %v394_v29, %v763_v61 }
 0x1ad   :  { %1980 = vmatmul.bf16.gmra.mxu0 %v1887_v5  ;;  %2067 = vmatmul.bf16.gmra.mxu1 %v1845_v2 }
 0x1ae   :  { %1813 = vst [vmem:[#allocation2 + $0x108] sm:$0xff] %v1765_v10  ;;  %v1249_v0 = vmax.f32 %v832_v17, %v1180_v33  ;;  %2210 = vmatmul.bf16.gmra.mxu2 %v2121_v4  ;;  %v2264_v17 = vld [vmem:[#allocation2 + $0x73] sm:$0xff]  ;;  %v10151_v4 = vld [vmem:[#allocation2 + $0x40] sm:$0xff] }
 0x1af   :  { %2364 = vmatmul.bf16.gmra.mxu3 %v2275_v49  ;;  %v2263_v49 = vld [vmem:[#allocation2 + $0x63] sm:$0xff] }
 0x1b0   :  { %v1666_v12 = vmax.f32 %v1249_v0, %v1597_v30  ;;  %v11062_v30 = vld [vmem:[#allocation2 + $0xf4] sm:$0xff] }
 0x1b1   :  { %v1185_v13 = vpop.f32.mrf.mxu2 }
 0x1b2   :  { %v1718_v29 = vadd.f32 %v10973_v7, %v1666_v12  ;;  %v1602_v61 = vpop.f32.mrf.mxu3  ;;  %v401_v44 = vpop.f32.mrf.mxu0 }
 0x1b3   :  { %v765_v54 = vpop.f32.mrf.mxu1 }
 0x1b4   :  { %v1766_v55 = vmax.f32 %v1718_v29, 0.0  ;;  %v833_v46 = vmax.f32 %v396_v52, %v765_v54  ;;  %v11070_v52 = vld [vmem:[#allocation2 + $0xf2] sm:$0xff] }
 0x1b5   :  { %v11054_v16 = vld [vmem:[#allocation2 + $0x101] sm:$0xff]  ;;  %13234 = vst [vmem:[#allocation48_spill] sm:$0xff] %v11070_v52  ;;  %v11085_v54 = vld [vmem:[#allocation2 + $0x72] sm:$0xff]  ;;  %v2276_v52 = vpack.c.bf16 %v2264_v17, %v2263_v49 }
 0x1b6   :  { %v11058_v33 = vld [vmem:[#allocation2 + $0x102] sm:$0xff]  ;;  %1814 = vst [vmem:[#allocation2 + $0x110] sm:$0xff] %v1766_v55  ;;  %v1250_v2 = vmax.f32 %v833_v46, %v1182_v31  ;;  %v11060_v63 = vpack.c.bf16 %v1766_v55, %v1764_v48  ;;  %v11076_v31 = vld [vmem:[#allocation2 + $0xf4] sm:$0xff] }
 0x1b7   :  { %v11064_v12 = vld [vmem:[#allocation2 + $0x104] sm:$0xff]  ;;  %13236 = vst [vmem:[#allocation50_spill] sm:$0xff] %v11076_v31  ;;  %v1846_v31 = vpack.c.bf16 %v10725_v59, %v10151_v4 }
 0x1b8   :  { %13233 = vst [vmem:[#allocation47_spill] sm:$0xff] %v11064_v12  ;;  %v11074_v5 = vld [vmem:[#allocation2 + $0x102] sm:$0xff]  ;;  %v1667_v48 = vmax.f32 %v1250_v2, %v1599_v18  ;;  %v1888_v2 = vpack.c.bf16 %v11002_v50, %v1876_v32  ;;  %v9840_v32 = vld [vmem:[%s13100_s3 + $0x138] sm:$0xff] }
 0x1b9   :  { %13235 = vst [vmem:[#allocation49_spill] sm:$0xff] %v11074_v5  ;;  %v11078_v55 = vld [vmem:[#allocation2 + $0x104] sm:$0xff]  ;;  %v1187_v29 = vpop.f32.mrf.mxu2  ;;  %2500 = vmatpush.bf16.msra.mxu0 %v9840_v32 }
 0x1ba   :  { %13237 = vst [vmem:[#allocation51_spill] sm:$0xff] %v11078_v55  ;;  %v1719_v0 = vadd.f32 %v10973_v7, %v1667_v48  ;;  %v1604_v46 = vpop.f32.mrf.mxu3  ;;  %v11087_v10 = vpop.f32.mrf.mxu0  ;;  %v2122_v48 = vpack.c.bf16 %v11085_v54, %v10746_v28  ;;  %v11094_v5 = vld [vmem:[#allocation2 + $0x100] sm:$0xff] }
 0x1bb   :  { %v768_v35 = vpop.f32.mrf.mxu1  ;;  %13238 = vst [vmem:[#allocation52_spill] sm:$0xff] %v11094_v5  ;;  %v11123_v32 = vld [vmem:[#allocation2 + $0x101] sm:$0xff] }
 0x1bc   :  { %v1767_v1 = vmax.f32 %v1719_v0, 0.0  ;;  %v834_v18 = vmax.f32 %v11044_v11, %v768_v35  ;;  %13242 = vst [vmem:[#allocation56_spill] sm:$0xff] %v11123_v32  ;;  %v2111_v35 = vld [vmem:[#allocation2 + $0xc2] sm:$0xff] }
 0x1bd   :  { %v11096_v55 = vld [vmem:[#allocation2 + $0x110] sm:$0xff]  ;;  %1985 = vmatmul.bf16.gmra.mxu0 %v1888_v2  ;;  %2072 = vmatmul.bf16.gmra.mxu1 %v1846_v31  ;;  %v9838_v2 = vld [vmem:[%s13100_s3 + $0x128] sm:$0xff] }
 0x1be   :  { %13239 = vst [vmem:[#allocation53_spill] sm:$0xff] %v11096_v55  ;;  %v1251_v41 = vmax.f32 %v834_v18, %v1185_v13  ;;  %2215 = vmatmul.bf16.gmra.mxu2 %v2122_v48  ;;  %v9839_v31 = vld [vmem:[%s13100_s3 + $0x130] sm:$0xff]  ;;  %v2265_v32 = vld [vmem:[#allocation2 + $0xc3] sm:$0xff] }
 0x1bf   :  { %1815 = vst [vmem:[#allocation2 + $0x118] sm:$0xff] %v1767_v1  ;;  %2369 = vmatmul.bf16.gmra.mxu3 %v2276_v52  ;;  %2501 = vmatpush.bf16.msra.mxu0 %v9839_v31 }
 0x1c0   :  { %v1668_v11 = vmax.f32 %v1251_v41, %v1602_v61  ;;  %v11114_v61 = vld [vmem:[#allocation2 + $0x103] sm:$0xff] }
 0x1c1   :  { %v1190_v4 = vpop.f32.mrf.mxu2  ;;  %13240 = vst [vmem:[#allocation54_spill] sm:$0xff] %v11114_v61 }
 0x1c2   :  { %v11104_v17 = vadd.f32 %v10973_v7, %v1668_v11  ;;  %v1607_v49 = vpop.f32.mrf.mxu3  ;;  %v11106_v1 = vpop.f32.mrf.mxu0 }
 0x1c3   :  { %v770_v13 = vpop.f32.mrf.mxu1  ;;  %2502 = vmatpush.bf16.msra.mxu0 %v9838_v2 }
 0x1c4   :  { %v13148_v52 = vmax.f32 %v11104_v17, 0.0  ;;  %v835_v0 = vmax.f32 %v401_v44, %v770_v13  ;;  %v11127_v13 = vld [vmem:[#allocation2 + $0x103] sm:$0xff] }
 0x1c5   :  { %13244 = vst [vmem:[#allocation58_spill] sm:$0xff] %v11127_v13 }
 0x1c6   :  { %1816 = vst [vmem:[#allocation2 + $0x120] sm:$0xff] %v13148_v52  ;;  %v1252_v41 = vmax.f32 %v835_v0, %v1187_v29  ;;  %v11116_v18 = vld [vmem:[#allocation2 + $0x113] sm:$0xff]  ;;  %v1889_v0 = vpack.c.bf16 %v11052_v15, %v11004_v34 }
 0x1c7   :  { %13241 = vst [vmem:[#allocation55_spill] sm:$0xff] %v11116_v18  ;;  %v11125_v44 = vld [vmem:[#allocation2 + $0x111] sm:$0xff]  ;;  %2503 = vmatpush.bf16.msra.mxu0 %v9837_v42 }
 0x1c8   :  { %v1669_v11 = vmax.f32 %v1252_v41, %v1604_v46  ;;  %13243 = vst [vmem:[#allocation57_spill] sm:$0xff] %v11125_v44  ;;  %v11129_v31 = vld [vmem:[#allocation2 + $0x113] sm:$0xff]  ;;  %v2123_v44 = vpack.c.bf16 %v11006_v27, %v2111_v35 }
 0x1c9   :  { %13245 = vst [vmem:[#allocation59_spill] sm:$0xff] %v11129_v31  ;;  %v11131_v29 = vld [vmem:[#allocation2 + $0x70] sm:$0xff]  ;;  %v1192_v52 = vpop.f32.mrf.mxu2  ;;  %v9864_v35 = vld [vmem:[%s13100_s3 + $0x1f8] sm:$0xff] }
 0x1ca   :  { %v1721_v48 = vadd.f32 %v10973_v7, %v1669_v11  ;;  %v11138_v61 = vpop.f32.mrf.mxu3  ;;  %v2266_v46 = vld [vmem:[#allocation2 + $0xd3] sm:$0xff]  ;;  %v11140_v41 = vpop.f32.mrf.mxu0  ;;  %v1847_v11 = vpack.c.bf16 %v11131_v29, %v10727_v57  ;;  %2963 = vmatpush.bf16.msra.mxu3 %v9864_v35 }
 0x1cb   :  { %v773_v18 = vpop.f32.mrf.mxu1  ;;  %v2277_v13 = vpack.c.bf16 %v2266_v46, %v2265_v32  ;;  %v11212_v55 = vld [vmem:[#allocation2 + $0x114] sm:$0xff] }
 0x1cc   :  { %v1769_v2 = vmax.f32 %v1721_v48, 0.0  ;;  %v836_v24 = vmax.f32 %v11087_v10, %v773_v18  ;;  %v9836_v10 = vld [vmem:[%s13100_s3 + $0x118] sm:$0xff]  ;;  %13251 = vst [vmem:[#allocation65_spill] sm:$0xff] %v11212_v55 }
 0x1cd   :  { %1990 = vmatmul.bf16.gmra.mxu0 %v1889_v0  ;;  %2077 = vmatmul.bf16.gmra.mxu1 %v1847_v11  ;;  %v9856_v18 = vld [vmem:[%s13100_s3 + $0x1b8] sm:$0xff] }
 0x1ce   :  { %1817 = vst [vmem:[#allocation2 + $0x128] sm:$0xff] %v1769_v2  ;;  %v1253_v31 = vmax.f32 %v836_v24, %v1190_v4  ;;  %2220 = vmatmul.bf16.gmra.mxu2 %v2123_v44  ;;  %2504 = vmatpush.bf16.msra.mxu0 %v9836_v10  ;;  %v11178_v2 = vld [vmem:[#allocation2 + $0x111] sm:$0xff] }
 0x1cf   :  { %2374 = vmatmul.bf16.gmra.mxu3 %v2277_v13  ;;  %2809 = vmatpush.bf16.msra.mxu2 %v9856_v18  ;;  %v9835_v13 = vld [vmem:[%s13100_s3 + $0x110] sm:$0xff] }
 0x1d0   :  { %v1670_v48 = vmax.f32 %v1253_v31, %v1607_v49  ;;  %v9855_v49 = vld [vmem:[%s13100_s3 + $0x1b0] sm:$0xff] }
 0x1d1   :  { %v1195_v42 = vpop.f32.mrf.mxu2  ;;  %v9863_v31 = vld [vmem:[%s13100_s3 + $0x1f0] sm:$0xff] }
 0x1d2   :  { %v11161_v24 = vadd.f32 %v10973_v7, %v1670_v48  ;;  %v11163_v4 = vpop.f32.mrf.mxu3  ;;  %v11165_v32 = vpop.f32.mrf.mxu0  ;;  %v11182_v10 = vld [vmem:[#allocation2 + $0x112] sm:$0xff]  ;;  %2505 = vmatpush.bf16.msra.mxu0 %v9835_v13  ;;  %2964 = vmatpush.bf16.msra.mxu3 %v9863_v31  ;;  %v9834_v13 = vld [vmem:[%s13100_s3 + $0x108] sm:$0xff] }
 0x1d3   :  { %v775_v44 = vpop.f32.mrf.mxu1  ;;  %13246 = vst [vmem:[#allocation60_spill] sm:$0xff] %v11182_v10  ;;  %2810 = vmatpush.bf16.msra.mxu2 %v9855_v49  ;;  %v11188_v48 = vld [vmem:[#allocation2 + $0x114] sm:$0xff]  ;;  %v9854_v49 = vld [vmem:[%s13100_s3 + $0x1a8] sm:$0xff] }
 0x1d4   :  { %v13158_v0 = vmax.f32 %v11161_v24, 0.0  ;;  %v837_v46 = vmax.f32 %v11106_v1, %v775_v44  ;;  %13247 = vst [vmem:[#allocation61_spill] sm:$0xff] %v11188_v48  ;;  %v11194_v44 = vld [vmem:[#allocation2 + $0x112] sm:$0xff] }
 0x1d5   :  { %v11180_v11 = vld [vmem:[#allocation2 + $0x121] sm:$0xff]  ;;  %13249 = vst [vmem:[#allocation63_spill] sm:$0xff] %v11194_v44 }
 0x1d6   :  { %v11184_v18 = vld [vmem:[#allocation2 + $0x122] sm:$0xff]  ;;  %1818 = vst [vmem:[#allocation2 + $0x130] sm:$0xff] %v13158_v0  ;;  %v1254_v35 = vmax.f32 %v837_v46, %v1192_v52  ;;  %2506 = vmatpush.bf16.msra.mxu0 %v9834_v13 }
 0x1d7   :  { %v11190_v25 = vld [vmem:[#allocation2 + $0x124] sm:$0xff]  ;;  %2811 = vmatpush.bf16.msra.mxu2 %v9854_v49 }
 0x1d8   :  { %13248 = vst [vmem:[#allocation62_spill] sm:$0xff] %v11190_v25  ;;  %v9862_v52 = vld [vmem:[%s13100_s3 + $0x1e8] sm:$0xff]  ;;  %v1671_v1 = vmax.f32 %v1254_v35, %v11138_v61  ;;  %v2268_v61 = vld [vmem:[#allocation2 + $0xf3] sm:$0xff]  ;;  %v9833_v13 = vld [vmem:[%s13100_s3 + $0x100] sm:$0xff] }
 0x1d9   :  { %v11210_v0 = vld [vmem:[#allocation2 + $0x122] sm:$0xff]  ;;  %v1197_v12 = vpop.f32.mrf.mxu2  ;;  %2965 = vmatpush.bf16.msra.mxu3 %v9862_v52 }
 0x1da   :  { %13250 = vst [vmem:[#allocation64_spill] sm:$0xff] %v11210_v0  ;;  %v11214_v5 = vld [vmem:[#allocation2 + $0x124] sm:$0xff]  ;;  %v1723_v31 = vadd.f32 %v10973_v7, %v1671_v1  ;;  %v11221_v46 = vpop.f32.mrf.mxu3  ;;  %v11223_v35 = vpop.f32.mrf.mxu0  ;;  %v1890_v1 = vpack.c.bf16 %v11178_v2, %v11054_v16  ;;  %v2124_v0 = vpack.c.bf16 %v11056_v3, %v11008_v40  ;;  %2507 = vmatpush.bf16.msra.mxu0 %v9833_v13  ;;  %v9847_v13 = vld [vmem:[%s13100_s3 + $0x170] sm:$0xff] }
 0x1db   :  { %13252 = vst [vmem:[#allocation66_spill] sm:$0xff] %v11214_v5  ;;  %v778_v25 = vpop.f32.mrf.mxu1  ;;  %v9853_v49 = vld [vmem:[%s13100_s3 + $0x1a0] sm:$0xff] }
 0x1dc   :  { %v1771_v15 = vmax.f32 %v1723_v31, 0.0  ;;  %v838_v58 = vmax.f32 %v11140_v41, %v778_v25  ;;  %v2267_v44 = vld [vmem:[#allocation2 + $0xe3] sm:$0xff]  ;;  %2812 = vmatpush.bf16.msra.mxu2 %v9853_v49  ;;  %v9852_v31 = vld [vmem:[%s13100_s3 + $0x198] sm:$0xff] }
 0x1dd   :  { %v9861_v52 = vld [vmem:[%s13100_s3 + $0x1e0] sm:$0xff]  ;;  %v2278_v55 = vpack.c.bf16 %v2268_v61, %v2267_v44  ;;  %v11241_v48 = vld [vmem:[#allocation2 + $0x130] sm:$0xff]  ;;  %1995 = vmatmul.bf16.gmra.mxu0 %v1890_v1  ;;  %2082 = vmatmul.bf16.gmra.mxu1 %v10968_v26  ;;  %v9848_v44 = vld [vmem:[%s13100_s3 + $0x178] sm:$0xff] }
 0x1de   :  { %v11239_v5 = vld [vmem:[#allocation2 + $0x120] sm:$0xff]  ;;  %13254 = vst [vmem:[#allocation68_spill] sm:$0xff] %v11241_v48  ;;  %v1255_v25 = vmax.f32 %v838_v58, %v1195_v42  ;;  %2225 = vmatmul.bf16.gmra.mxu2 %v2124_v0  ;;  %2966 = vmatpush.bf16.msra.mxu3 %v9861_v52  ;;  %v9859_v52 = vld [vmem:[%s13100_s3 + $0x1d0] sm:$0xff] }
 0x1df   :  { %13253 = vst [vmem:[#allocation67_spill] sm:$0xff] %v11239_v5  ;;  %2379 = vmatmul.bf16.gmra.mxu3 %v2278_v55  ;;  %2655 = vmatpush.bf16.msrb.mxu1 %v9848_v44  ;;  %v11269_v44 = vld [vmem:[#allocation2 + $0x123] sm:$0xff]  ;;  %v2270_v41 = vld [vmem:[#allocation2 + $0x113] sm:$0xff] }
 0x1e0   :  { %1819 = vst [vmem:[#allocation2 + $0x138] sm:$0xff] %v1771_v15  ;;  %v1672_v61 = vmax.f32 %v1255_v25, %v11163_v4  ;;  %v9860_v15 = vld [vmem:[%s13100_s3 + $0x1d8] sm:$0xff]  ;;  %2813 = vmatpush.bf16.msra.mxu2 %v9852_v31  ;;  %v9851_v4 = vld [vmem:[%s13100_s3 + $0x190] sm:$0xff] }
 0x1e1   :  { %v1200_v58 = vpop.f32.mrf.mxu2  ;;  %13255 = vst [vmem:[#allocation69_spill] sm:$0xff] %v11269_v44 }
 0x1e2   :  { %v1724_v26 = vadd.f32 %v10973_v7, %v1672_v61  ;;  %v1617_v55 = vpop.f32.mrf.mxu3  ;;  %v11257_v42 = vpop.f32.mrf.mxu0  ;;  %2967 = vmatpush.bf16.msra.mxu3 %v9860_v15  ;;  %v9846_v61 = vld [vmem:[%s13100_s3 + $0x168] sm:$0xff] }
 0x1e3   :  { %v780_v0 = vpop.f32.mrf.mxu1  ;;  %2656 = vmatpush.bf16.msrb.mxu1 %v9847_v13 }
 0x1e4   :  { %v1772_v49 = vmax.f32 %v1724_v26, 0.0  ;;  %v839_v1 = vmax.f32 %v11165_v32, %v780_v0  ;;  %2814 = vmatpush.bf16.msra.mxu2 %v9851_v4  ;;  %v9850_v32 = vld [vmem:[%s13100_s3 + $0x188] sm:$0xff] }
 0x1e5   :  { %v11285_v0 = vld [vmem:[#allocation2 + $0x121] sm:$0xff] }
 0x1e6   :  { %1820 = vst [vmem:[#allocation2 + $0x140] sm:$0xff] %v1772_v49  ;;  %v1256_v25 = vmax.f32 %v839_v1, %v1197_v12  ;;  %2968 = vmatpush.bf16.msra.mxu3 %v9859_v52  ;;  %v9858_v12 = vld [vmem:[%s13100_s3 + $0x1c8] sm:$0xff] }
 0x1e7   :  { %v11271_v31 = vld [vmem:[#allocation2 + $0x133] sm:$0xff]  ;;  %13257 = vst [vmem:[#allocation71_spill] sm:$0xff] %v11285_v0  ;;  %2657 = vmatpush.bf16.msrb.mxu1 %v9846_v61  ;;  %v11291_v49 = vld [vmem:[#allocation2 + $0x123] sm:$0xff] }
 0x1e8   :  { %13256 = vst [vmem:[#allocation70_spill] sm:$0xff] %v11271_v31  ;;  %v1673_v26 = vmax.f32 %v1256_v25, %v11221_v46  ;;  %v11287_v13 = vld [vmem:[#allocation2 + $0x131] sm:$0xff]  ;;  %2815 = vmatpush.bf16.msra.mxu2 %v9850_v32  ;;  %v9845_v61 = vld [vmem:[%s13100_s3 + $0x160] sm:$0xff] }
 0x1e9   :  { %13258 = vst [vmem:[#allocation72_spill] sm:$0xff] %v11287_v13  ;;  %v11289_v4 = vld [vmem:[#allocation2 + $0x131] sm:$0xff]  ;;  %v1202_v25 = vpop.f32.mrf.mxu2  ;;  %v9849_v32 = vld [vmem:[%s13100_s3 + $0x180] sm:$0xff]  ;;  %v2125_v13 = vpack.c.bf16 %v11182_v10, %v11058_v33 }
 0x1ea   :  { %13259 = vst [vmem:[#allocation73_spill] sm:$0xff] %v11289_v4  ;;  %v11293_v1 = vld [vmem:[#allocation2 + $0x133] sm:$0xff]  ;;  %v1725_v52 = vadd.f32 %v10973_v7, %v1673_v26  ;;  %v1619_v15 = vpop.f32.mrf.mxu3  ;;  %v419_v44 = vpop.f32.mrf.mxu0  ;;  %v1891_v26 = vpack.c.bf16 %v11289_v4, %v11180_v11  ;;  %v2269_v0 = vld [vmem:[#allocation2 + $0x103] sm:$0xff]  ;;  %2969 = vmatpush.bf16.msra.mxu3 %v9858_v12 }
 0x1eb   :  { %13260 = vst [vmem:[#allocation74_spill] sm:$0xff] %v11291_v49  ;;  %v783_v48 = vpop.f32.mrf.mxu1  ;;  %v9857_v31 = vld [vmem:[%s13100_s3 + $0x1c0] sm:$0xff]  ;;  %v2279_v49 = vpack.c.bf16 %v2270_v41, %v2269_v0  ;;  %2658 = vmatpush.bf16.msrb.mxu1 %v9845_v61 }
 0x1ec   :  { %13261 = vst [vmem:[#allocation75_spill] sm:$0xff] %v11293_v1  ;;  %v1773_v5 = vmax.f32 %v1725_v52, 0.0  ;;  %v840_v46 = vmax.f32 %v11223_v35, %v783_v48  ;;  %2816 = vmatpush.bf16.msra.mxu2 %v9849_v32  ;;  %v9844_v48 = vld [vmem:[%s13100_s3 + $0x158] sm:$0xff] }
 0x1ed   :  { %2000 = vmatmul.bf16.gmra.mxu0 %v1891_v26  ;;  %2087 = vmatmul.bf16.gmra.mxu1 %v11010_v60 }
 0x1ee   :  { %1821 = vst [vmem:[#allocation2 + $0x148] sm:$0xff] %v1773_v5  ;;  %v1257_v1 = vmax.f32 %v840_v46, %v1200_v58  ;;  %2230 = vmatmul.bf16.gmra.mxu2 %v2125_v13  ;;  %2970 = vmatpush.bf16.msra.mxu3 %v9857_v31  ;;  %v9843_v5 = vld [vmem:[%s13100_s3 + $0x150] sm:$0xff]  ;;  %v9842_v31 = vld [vmem:[%s13100_s3 + $0x148] sm:$0xff] }
 0x1ef   :  { %2384 = vmatmul.bf16.gmra.mxu3 %v2279_v49  ;;  %2659 = vmatpush.bf16.msrb.mxu1 %v9844_v48  ;;  %v11323_v49 = vld [vmem:[#allocation2 + $0x132] sm:$0xff] }
 0x1f0   :  { %v1674_v35 = vmax.f32 %v1257_v1, %v1617_v55  ;;  %13262 = vst [vmem:[#allocation76_spill] sm:$0xff] %v11323_v49  ;;  %v11333_v48 = vld [vmem:[#allocation2 + $0x132] sm:$0xff]  ;;  %v2271_v1 = vld [vmem:[#allocation2 + $0x123] sm:$0xff] }
 0x1f1   :  { %v1205_v52 = vpop.f32.mrf.mxu2  ;;  %13264 = vst [vmem:[#allocation78_spill] sm:$0xff] %v11333_v48 }
 0x1f2   :  { %v1726_v12 = vadd.f32 %v10973_v7, %v1674_v35  ;;  %v1622_v41 = vpop.f32.mrf.mxu3  ;;  %v421_v0 = vpop.f32.mrf.mxu0 }
 0x1f3   :  { %v785_v61 = vpop.f32.mrf.mxu1  ;;  %2660 = vmatpush.bf16.msrb.mxu1 %v9843_v5  ;;  %v9841_v5 = vld [vmem:[%s13100_s3 + $0x140] sm:$0xff] }
 0x1f4   :  { %v1774_v60 = vmax.f32 %v1726_v12, 0.0  ;;  %v841_v58 = vmax.f32 %v11257_v42, %v785_v61  ;;  %v2411_v61 = vld [vmem:[#allocation2 + $0x4] sm:$0xff] }
 0x1f5   :  { %v11325_v55 = vld [vmem:[#allocation2 + $0x142] sm:$0xff] }
 0x1f6   :  { %1822 = vst [vmem:[#allocation2 + $0x150] sm:$0xff] %v1774_v60  ;;  %v1258_v13 = vmax.f32 %v841_v58, %v1202_v25  ;;  %v2272_v25 = vld [vmem:[#allocation2 + $0x133] sm:$0xff] }
 0x1f7   :  { %13263 = vst [vmem:[#allocation77_spill] sm:$0xff] %v11325_v55  ;;  %2661 = vmatpush.bf16.msrb.mxu1 %v9842_v31  ;;  %v2126_v31 = vpack.c.bf16 %v11333_v48, %v11184_v18 }
 0x1f8   :  { %v1675_v46 = vmax.f32 %v1258_v13, %v1619_v15  ;;  %v10152_v15 = vld [vmem:[#allocation2 + $0x14] sm:$0xff] }
 0x1f9   :  { %v1207_v26 = vpop.f32.mrf.mxu2  ;;  %v2427_v13 = vpack.c.bf16 %v10152_v15, %v2411_v61 }
 0x1fa   :  { %v1727_v32 = vadd.f32 %v10973_v7, %v1675_v46  ;;  %v1624_v42 = vpop.f32.mrf.mxu3  ;;  %v11335_v12 = vpop.f32.mrf.mxu0  ;;  %v2280_v46 = vpack.c.bf16 %v2272_v25, %v2271_v1  ;;  %v11344_v1 = vld [vmem:[#allocation2 + $0x141] sm:$0xff] }
 0x1fb   :  { %v788_v35 = vpop.f32.mrf.mxu1  ;;  %2662 = vmatpush.bf16.msrb.mxu1 %v9841_v5 }
 0x1fc   :  { %v1775_v60 = vmax.f32 %v1727_v32, 0.0  ;;  %v842_v58 = vmax.f32 %v419_v44, %v788_v35 }
 0x1fd   :  { %2092 = vmatmul.bf16.gmra.mxu1 %v11060_v63  ;;  %2508 = vmatmul.bf16.vlgmr.msra.gmra.mxu0 %v2427_v13 }
 0x1fe   :  { %1823 = vst [vmem:[#allocation2 + $0x158] sm:$0xff] %v1775_v60  ;;  %v1259_v49 = vmax.f32 %v842_v58, %v1205_v52  ;;  %2235 = vmatmul.bf16.gmra.mxu2 %v2126_v31  ;;  %v10153_v31 = vld [vmem:[#allocation2 + $0x24] sm:$0xff] }
 0x1ff   :  { %2389 = vmatmul.bf16.gmra.mxu3 %v2280_v46  ;;  %v10154_v46 = vld [vmem:[#allocation2 + $0x34] sm:$0xff] }
 0x200   :  { %v1676_v55 = vmax.f32 %v1259_v49, %v1622_v41 }
 0x201   :  { %v1210_v32 = vpop.f32.mrf.mxu2 }
 0x202   :  { %v1728_v4 = vadd.f32 %v10973_v7, %v1676_v55  ;;  %v1627_v44 = vpop.f32.mrf.mxu3  ;;  %v1968_v10 = vpop.f32.mrf.mxu0 }
 0x203   :  { %v790_v35 = vpop.f32.mrf.mxu1 }
 0x204   :  { %v1776_v61 = vmax.f32 %v1728_v4, 0.0  ;;  %v843_v15 = vmax.f32 %v421_v0, %v790_v35  ;;  %v13265_v0 = vmax.f32 %v11104_v17, 0.0  ;;  %v2428_v35 = vpack.c.bf16 %v10154_v46, %v10153_v31  ;;  %v10156_v31 = vld [vmem:[#allocation2 + $0x54] sm:$0xff] }
 0x205   :  { %v11346_v25 = vld [vmem:[#allocation2 + $0x151] sm:$0xff] }
 0x206   :  { %1824 = vst [vmem:[#allocation2 + $0x160] sm:$0xff] %v1776_v61  ;;  %v1260_v48 = vmax.f32 %v843_v15, %v1207_v26  ;;  %v5055_v63 = vpack.c.bf16 %v11346_v25, %v11344_v1  ;;  %v13266_v26 = vmax.f32 %v11161_v24, 0.0 }
 0x208   :  { %v1677_v52 = vmax.f32 %v1260_v48, %v1624_v42  ;;  %v1851_v13 = vpack.c.bf16 %v13266_v26, %v13265_v0  ;;  %v13267_v42 = vpack.c.bf16 %v10556_v20, %v10554_v19  ;;  %v13268_v48 = vpack.c.bf16 %v10560_v22, %v10558_v21 }
 0x209   :  { %v1212_v49 = vpop.f32.mrf.mxu2 }
 0x20a   :  { %v1729_v41 = vadd.f32 %v10973_v7, %v1677_v52  ;;  %v1629_v55 = vpop.f32.mrf.mxu3  ;;  %v1971_v60 = vpop.f32.mrf.mxu0 }
 0x20b   :  { %v793_v5 = vpop.f32.mrf.mxu1 }
 0x20c   :  { %v1777_v58 = vmax.f32 %v1729_v41, 0.0  ;;  %v844_v4 = vmax.f32 %v10446_v45, %v793_v5 }
 0x20d   :  { %2097 = vmatmul.bf16.gmra.mxu1 %v1851_v13  ;;  %2513 = vmatmul.bf16.gmra.mxu0 %v2428_v35  ;;  %v10155_v13 = vld [vmem:[#allocation2 + $0x44] sm:$0xff] }
 0x20e   :  { %1825 = vst [vmem:[#allocation2 + $0x168] sm:$0xff] %v1777_v58  ;;  %v1261_v61 = vmax.f32 %v844_v4, %v1210_v32  ;;  %2817 = vmatmul.bf16.vlgmr.msra.gmra.mxu2 %v13267_v42  ;;  %v2429_v46 = vpack.c.bf16 %v10156_v31, %v10155_v13  ;;  %v11397_v13 = vld [vmem:[#allocation2 + $0x81] sm:$0xff] }
 0x20f   :  { %2971 = vmatmul.bf16.vlgmr.msra.gmra.mxu3 %v13268_v48 }
 0x210   :  { %v1678_v45 = vmax.f32 %v1261_v61, %v1627_v44 }
 0x211   :  { %v2201_v24 = vpop.f32.mrf.mxu2 }
 0x212   :  { %v1730_v17 = vadd.f32 %v10973_v7, %v1678_v45  ;;  %v2355_v15 = vpop.f32.mrf.mxu3  ;;  %v1973_v41 = vpop.f32.mrf.mxu0 }
 0x213   :  { %v795_v52 = vpop.f32.mrf.mxu1 }
 0x214   :  { %v1778_v5 = vmax.f32 %v1730_v17, 0.0  ;;  %v845_v32 = vmax.f32 %v10458_v51, %v795_v52  ;;  %v13269_v51 = vpack.c.bf16 %v10547_v9, %v10545_v8  ;;  %v11379_v8 = vld [vmem:[#allocation2 + $0x74] sm:$0xff] }
 0x216   :  { %1826 = vst [vmem:[#allocation2 + $0x170] sm:$0xff] %v1778_v5  ;;  %v1262_v58 = vmax.f32 %v845_v32, %v1212_v49  ;;  %v13271_v49 = vpack.c.bf16 %v10646_v39, %v10644_v38  ;;  %v10157_v32 = vld [vmem:[#allocation2 + $0x64] sm:$0xff] }
 0x217   :  { %v2430_v38 = vpack.c.bf16 %v11379_v8, %v10157_v32 }
 0x218   :  { %v1679_v4 = vmax.f32 %v1262_v58, %v1629_v55  ;;  %v13274_v58 = vpack.c.bf16 %v10746_v28, %v10744_v47  ;;  %v2419_v47 = vld [vmem:[#allocation2 + $0xc4] sm:$0xff] }
 0x219   :  { %v2203_v20 = vpop.f32.mrf.mxu2 }
 0x21a   :  { %v1731_v19 = vadd.f32 %v10973_v7, %v1679_v4  ;;  %v2357_v0 = vpop.f32.mrf.mxu3  ;;  %v1976_v26 = vpop.f32.mrf.mxu0  ;;  %v13270_v7 = vpack.c.bf16 %v10642_v37, %v10640_v36 }
 0x21b   :  { %v2063_v21 = vpop.f32.mrf.mxu1 }
 0x21c   :  { %v1779_v22 = vmax.f32 %v1731_v19, 0.0  ;;  %v2064_v44 = vadd.f32 %v2063_v21, %v11335_v12 }
 0x21d   :  { %2518 = vmatmul.bf16.gmra.mxu0 %v2429_v46  ;;  %2663 = vmatmul.bf16.vlgmr.msrb.gmra.mxu1 %v13269_v51  ;;  %v2431_v46 = vpack.c.bf16 %v11012_v53, %v2419_v47  ;;  %v9886_v47 = vld [vmem:[%s13100_s3 + $0x2a8] sm:$0xff] }
 0x21e   :  { %1827 = vst [vmem:[#allocation2 + $0x178] sm:$0xff] %v1779_v22  ;;  %v2241_v35 = vadd.f32 %v2201_v24, %v2064_v44  ;;  %2822 = vmatmul.bf16.gmra.mxu2 %v13270_v7  ;;  %v13275_v7 = vpack.c.bf16 %v10727_v57, %v10725_v59 }
 0x21f   :  { %2976 = vmatmul.bf16.gmra.mxu3 %v13271_v49  ;;  %v9872_v49 = vld [vmem:[%s13100_s3 + $0x238] sm:$0xff] }
 0x220   :  { %v11375_v55 = vadd.f32 %v2355_v15, %v2241_v35  ;;  %v13272_v15 = vpack.c.bf16 %v10629_v14, %v10614_v6  ;;  %v2739_v35 = vpack.c.bf16 %v11397_v13, %v11041_v62  ;;  %3117 = vmatpush.bf16.msrb.mxu0 %v9872_v49  ;;  %v9865_v49 = vld [vmem:[%s13100_s3 + $0x200] sm:$0xff] }
 0x221   :  { %v2206_v12 = vpop.f32.mrf.mxu2 }
 0x222   :  { %v2360_v61 = vpop.f32.mrf.mxu3  ;;  %v1978_v42 = vpop.f32.mrf.mxu0 }
 0x223   :  { %v2065_v48 = vpop.f32.mrf.mxu1 }
 0x224   :  { %v2066_v45 = vadd.f32 %v2065_v48, %v1968_v10  ;;  %v13273_v10 = vpack.c.bf16 %v10742_v23, %v10740_v56  ;;  %v2881_v56 = vld [vmem:[#allocation2 + $0x82] sm:$0xff]  ;;  %v9871_v48 = vld [vmem:[%s13100_s3 + $0x230] sm:$0xff] }
 0x225   :  { %3118 = vmatpush.bf16.msrb.mxu0 %v9871_v48  ;;  %v13279_v48 = vld [vmem:[#allocation61_spill] sm:$0xff] }
 0x226   :  { %v2242_v17 = vadd.f32 %v2203_v20, %v2066_v45  ;;  %v9870_v45 = vld [vmem:[%s13100_s3 + $0x228] sm:$0xff] }
 0x228   :  { %v11377_v24 = vadd.f32 %v2357_v0, %v2242_v17 }
 0x229   :  { %v2208_v9 = vpop.f32.mrf.mxu2  ;;  %3119 = vmatpush.bf16.msrb.mxu0 %v9870_v45 }
 0x22a   :  { %v2362_v52 = vpop.f32.mrf.mxu3  ;;  %v1981_v36 = vpop.f32.mrf.mxu0 }
 0x22b   :  { %v2068_v37 = vpop.f32.mrf.mxu1 }
 0x22c   :  { %v2069_v5 = vadd.f32 %v2068_v37, %v1971_v60 }
 0x22d   :  { %2523 = vmatmul.bf16.gmra.mxu0 %v2430_v38  ;;  %2668 = vmatmul.bf16.gmra.mxu1 %v13272_v15 }
 0x22e   :  { %v2243_v39 = vadd.f32 %v2206_v12, %v2069_v5  ;;  %2827 = vmatmul.bf16.gmra.mxu2 %v13273_v10 }
 0x22f   :  { %2981 = vmatmul.bf16.gmra.mxu3 %v13274_v58  ;;  %v13276_v58 = vpack.c.bf16 %v11004_v34, %v11002_v50 }
 0x230   :  { %v11391_v4 = vadd.f32 %v2360_v61, %v2243_v39  ;;  %v2432_v39 = vpack.c.bf16 %v11062_v30, %v11014_v43 }
 0x231   :  { %v2211_v60 = vpop.f32.mrf.mxu2 }
 0x232   :  { %v2365_v19 = vpop.f32.mrf.mxu3  ;;  %v11393_v20 = vpop.f32.mrf.mxu0 }
 0x233   :  { %v2070_v0 = vpop.f32.mrf.mxu1 }
 0x234   :  { %v2071_v21 = vadd.f32 %v2070_v0, %v1973_v41  ;;  %v2893_v41 = vpack.c.bf16 %v2881_v56, %v11085_v54 }
 0x236   :  { %v2244_v22 = vadd.f32 %v2208_v9, %v2071_v21  ;;  %v11423_v9 = vld [vmem:[#allocation2 + $0x80] sm:$0xff]  ;;  %v9867_v21 = vld [vmem:[%s13100_s3 + $0x210] sm:$0xff] }
 0x237   :  { %v2585_v15 = vpack.c.bf16 %v11423_v9, %v11131_v29  ;;  %v9888_v29 = vld [vmem:[%s13100_s3 + $0x2b8] sm:$0xff] }
 0x238   :  { %v11395_v44 = vadd.f32 %v2362_v52, %v2244_v22  ;;  %3426 = vmatpush.bf16.msrb.mxu2 %v9888_v29  ;;  %v9887_v22 = vld [vmem:[%s13100_s3 + $0x2b0] sm:$0xff] }
 0x239   :  { %v2213_v6 = vpop.f32.mrf.mxu2 }
 0x23a   :  { %v2367_v14 = vpop.f32.mrf.mxu3  ;;  %v11399_v23 = vpop.f32.mrf.mxu0 }
 0x23b   :  { %v2073_v28 = vpop.f32.mrf.mxu1 }
 0x23c   :  { %v2074_v31 = vadd.f32 %v2073_v28, %v1976_v26  ;;  %3427 = vmatpush.bf16.msrb.mxu2 %v9887_v22  ;;  %v9866_v28 = vld [vmem:[%s13100_s3 + $0x208] sm:$0xff]  ;;  %v2426_v22 = vld [vmem:[#allocation2 + $0x134] sm:$0xff] }
 0x23d   :  { %2528 = vmatmul.bf16.gmra.mxu0 %v2431_v46  ;;  %2673 = vmatmul.bf16.gmra.mxu1 %v13275_v7  ;;  %v2574_v7 = vld [vmem:[#allocation2 + $0xd0] sm:$0xff] }
 0x23e   :  { %v2245_v51 = vadd.f32 %v2211_v60, %v2074_v31  ;;  %2832 = vmatmul.bf16.gmra.mxu2 %v2739_v35  ;;  %v13277_v60 = vpack.c.bf16 %v11008_v40, %v11006_v27  ;;  %v9894_v31 = vld [vmem:[%s13100_s3 + $0x2e8] sm:$0xff] }
 0x23f   :  { %2986 = vmatmul.bf16.gmra.mxu3 %v2893_v41 }
 0x240   :  { %v11411_v26 = vadd.f32 %v2365_v19, %v2245_v51  ;;  %v9896_v19 = vld [vmem:[%s13100_s3 + $0x2f8] sm:$0xff]  ;;  %3428 = vmatpush.bf16.msrb.mxu2 %v9886_v47  ;;  %v9877_v47 = vld [vmem:[%s13100_s3 + $0x260] sm:$0xff] }
 0x241   :  { %v2216_v12 = vpop.f32.mrf.mxu2  ;;  %3580 = vmatpush.bf16.msrb.mxu3 %v9896_v19  ;;  %v9891_v19 = vld [vmem:[%s13100_s3 + $0x2d0] sm:$0xff] }
 0x242   :  { %v2370_v61 = vpop.f32.mrf.mxu3  ;;  %v11413_v62 = vpop.f32.mrf.mxu0 }
 0x243   :  { %v2075_v54 = vpop.f32.mrf.mxu1 }
 0x244   :  { %v2076_v57 = vadd.f32 %v2075_v54, %v1978_v42  ;;  %v9869_v42 = vld [vmem:[%s13100_s3 + $0x220] sm:$0xff]  ;;  %v13278_v54 = vld [vmem:[#allocation47_spill] sm:$0xff] }
 0x245   :  { %3120 = vmatpush.bf16.msrb.mxu0 %v9869_v42 }
 0x246   :  { %v2246_v59 = vadd.f32 %v2213_v6, %v2076_v57  ;;  %v9895_v6 = vld [vmem:[%s13100_s3 + $0x2f0] sm:$0xff]  ;;  %v2433_v57 = vpack.c.bf16 %v13279_v48, %v13278_v54 }
 0x247   :  { %3581 = vmatpush.bf16.msrb.mxu3 %v9895_v6 }
 0x248   :  { %v11421_v17 = vadd.f32 %v2367_v14, %v2246_v59  ;;  %v13280_v59 = vld [vmem:[#allocation42_spill] sm:$0xff] }
 0x249   :  { %v2218_v52 = vpop.f32.mrf.mxu2  ;;  %v2586_v45 = vpack.c.bf16 %v13280_v59, %v2574_v7  ;;  %v10158_v7 = vld [vmem:[#allocation2 + $0xf0] sm:$0xff] }
 0x24a   :  { %v2372_v37 = vpop.f32.mrf.mxu3  ;;  %v11425_v5 = vpop.f32.mrf.mxu0 }
 0x24b   :  { %v2078_v32 = vpop.f32.mrf.mxu1  ;;  %3582 = vmatpush.bf16.msrb.mxu3 %v9894_v31  ;;  %v9881_v31 = vld [vmem:[%s13100_s3 + $0x280] sm:$0xff] }
 0x24c   :  { %v2079_v38 = vadd.f32 %v2078_v32, %v1981_v36  ;;  %v9868_v36 = vld [vmem:[%s13100_s3 + $0x218] sm:$0xff]  ;;  %v13281_v32 = vld [vmem:[#allocation46_spill] sm:$0xff] }
 0x24d   :  { %2533 = vmatmul.bf16.gmra.mxu0 %v2432_v39  ;;  %2678 = vmatmul.bf16.gmra.mxu1 %v2585_v15  ;;  %v13282_v42 = vpack.c.bf16 %v11054_v16, %v13281_v32  ;;  %v9884_v39 = vld [vmem:[%s13100_s3 + $0x298] sm:$0xff] }
 0x24e   :  { %v2247_v10 = vadd.f32 %v2216_v12, %v2079_v38  ;;  %2837 = vmatmul.bf16.gmra.mxu2 %v13276_v58  ;;  %3121 = vmatpush.bf16.msrb.mxu0 %v9868_v36  ;;  %v9885_v12 = vld [vmem:[%s13100_s3 + $0x2a0] sm:$0xff]  ;;  %v9880_v38 = vld [vmem:[%s13100_s3 + $0x278] sm:$0xff]  ;;  %v9883_v36 = vld [vmem:[%s13100_s3 + $0x290] sm:$0xff] }
 0x24f   :  { %2991 = vmatmul.bf16.gmra.mxu3 %v13277_v60  ;;  %3429 = vmatpush.bf16.msrb.mxu2 %v9885_v12  ;;  %v9892_v15 = vld [vmem:[%s13100_s3 + $0x2d8] sm:$0xff]  ;;  %v9879_v60 = vld [vmem:[%s13100_s3 + $0x270] sm:$0xff] }
 0x250   :  { %v11449_v0 = vadd.f32 %v2370_v61, %v2247_v10  ;;  %3271 = vmatpush.bf16.msra.mxu1 %v9880_v38 }
 0x251   :  { %v2221_v50 = vpop.f32.mrf.mxu2 }
 0x252   :  { %v2375_v34 = vpop.f32.mrf.mxu3  ;;  %v11451_v27 = vpop.f32.mrf.mxu0  ;;  %3122 = vmatpush.bf16.msrb.mxu0 %v9867_v21 }
 0x253   :  { %v2080_v40 = vpop.f32.mrf.mxu1  ;;  %3430 = vmatpush.bf16.msrb.mxu2 %v9884_v39 }
 0x254   :  { %v2081_v14 = vadd.f32 %v2080_v40, %v11393_v20  ;;  %3272 = vmatpush.bf16.msra.mxu1 %v9879_v60  ;;  %v9882_v40 = vld [vmem:[%s13100_s3 + $0x288] sm:$0xff] }
 0x255   :  { %v11565_v60 = vld [vmem:[#allocation2 + $0x141] sm:$0xff] }
 0x256   :  { %v2248_v56 = vadd.f32 %v2218_v52, %v2081_v14  ;;  %3123 = vmatpush.bf16.msrb.mxu0 %v9866_v28  ;;  %v9893_v52 = vld [vmem:[%s13100_s3 + $0x2e0] sm:$0xff] }
 0x257   :  { %3583 = vmatpush.bf16.msrb.mxu3 %v9893_v52  ;;  %3431 = vmatpush.bf16.msrb.mxu2 %v9883_v36  ;;  %v2889_v36 = vld [vmem:[#allocation2 + $0x142] sm:$0xff] }
 0x258   :  { %v11472_v46 = vadd.f32 %v2372_v37, %v2248_v56 }
 0x259   :  { %v2223_v20 = vpop.f32.mrf.mxu2 }
 0x25a   :  { %v2377_v35 = vpop.f32.mrf.mxu3  ;;  %v11474_v41 = vpop.f32.mrf.mxu0  ;;  %3124 = vmatpush.bf16.msrb.mxu0 %v9865_v49  ;;  %v13285_v49 = vld [vmem:[#allocation52_spill] sm:$0xff] }
 0x25b   :  { %v2083_v51 = vpop.f32.mrf.mxu1  ;;  %3584 = vmatpush.bf16.msrb.mxu3 %v9892_v15  ;;  %3432 = vmatpush.bf16.msrb.mxu2 %v9882_v40  ;;  %v2587_v12 = vpack.c.bf16 %v13285_v49, %v10158_v7  ;;  %v9874_v15 = vld [vmem:[%s13100_s3 + $0x248] sm:$0xff] }
 0x25c   :  { %v2084_v61 = vadd.f32 %v2083_v51, %v11399_v23  ;;  %v13283_v23 = vpack.c.bf16 %v11058_v33, %v11056_v3 }
 0x25d   :  { %2538 = vmatmul.bf16.gmra.mxu0 %v2433_v57  ;;  %2683 = vmatmul.bf16.gmra.mxu1 %v2586_v45  ;;  %v13286_v45 = vpack.c.bf16 %v11180_v11, %v11178_v2  ;;  %v9875_v2 = vld [vmem:[%s13100_s3 + $0x250] sm:$0xff] }
 0x25e   :  { %v2249_v37 = vadd.f32 %v2221_v50, %v2084_v61  ;;  %2842 = vmatmul.bf16.gmra.mxu2 %v13282_v42  ;;  %v9889_v61 = vld [vmem:[%s13100_s3 + $0x2c0] sm:$0xff] }
 0x25f   :  { %2996 = vmatmul.bf16.gmra.mxu3 %v13283_v23  ;;  %3433 = vmatpush.bf16.msrb.mxu2 %v9881_v31 }
 0x260   :  { %v11504_v10 = vadd.f32 %v2375_v34, %v2249_v37  ;;  %v9878_v34 = vld [vmem:[%s13100_s3 + $0x268] sm:$0xff]  ;;  %3585 = vmatpush.bf16.msrb.mxu3 %v9891_v19  ;;  %v9876_v37 = vld [vmem:[%s13100_s3 + $0x258] sm:$0xff] }
 0x261   :  { %v2226_v16 = vpop.f32.mrf.mxu2  ;;  %3273 = vmatpush.bf16.msra.mxu1 %v9878_v34 }
 0x262   :  { %v2380_v3 = vpop.f32.mrf.mxu3  ;;  %v11506_v33 = vpop.f32.mrf.mxu0 }
 0x263   :  { %v2085_v58 = vpop.f32.mrf.mxu1 }
 0x264   :  { %v2086_v29 = vadd.f32 %v2085_v58, %v11413_v62  ;;  %v9890_v62 = vld [vmem:[%s13100_s3 + $0x2c8] sm:$0xff] }
 0x265   :  { %3586 = vmatpush.bf16.msrb.mxu3 %v9890_v62  ;;  %3274 = vmatpush.bf16.msra.mxu1 %v9877_v47  ;;  %v13289_v62 = vld [vmem:[#allocation53_spill] sm:$0xff] }
 0x266   :  { %v2250_v50 = vadd.f32 %v2223_v20, %v2086_v29  ;;  %v13291_v47 = vld [vmem:[#allocation73_spill] sm:$0xff] }
 0x267   :  { %v2743_v31 = vpack.c.bf16 %v11565_v60, %v13291_v47 }
 0x268   :  { %v11527_v21 = vadd.f32 %v2377_v35, %v2250_v50  ;;  %v13284_v35 = vld [vmem:[#allocation62_spill] sm:$0xff]  ;;  %v3028_v50 = vld [vmem:[#allocation2 + $0x13] sm:$0xff] }
 0x269   :  { %v2228_v6 = vpop.f32.mrf.mxu2  ;;  %v2434_v51 = vpack.c.bf16 %v2426_v22, %v13284_v35  ;;  %3587 = vmatpush.bf16.msrb.mxu3 %v9889_v61  ;;  %3275 = vmatpush.bf16.msra.mxu1 %v9876_v37  ;;  %v13290_v22 = vld [vmem:[#allocation67_spill] sm:$0xff] }
 0x26a   :  { %v2382_v14 = vpop.f32.mrf.mxu3  ;;  %v11529_v56 = vpop.f32.mrf.mxu0 }
 0x26b   :  { %v2088_v28 = vpop.f32.mrf.mxu1 }
 0x26c   :  { %v2089_v20 = vadd.f32 %v2088_v28, %v11425_v5  ;;  %v13287_v5 = vld [vmem:[#allocation60_spill] sm:$0xff] }
 0x26d   :  { %2543 = vmatmul.bf16.gmra.mxu0 %v2434_v51  ;;  %2688 = vmatmul.bf16.gmra.mxu1 %v2587_v12  ;;  %v13288_v52 = vpack.c.bf16 %v11184_v18, %v13287_v5 }
 0x26e   :  { %v2251_v57 = vadd.f32 %v2226_v16, %v2089_v20  ;;  %2847 = vmatmul.bf16.gmra.mxu2 %v13286_v45  ;;  %3276 = vmatpush.bf16.msra.mxu1 %v9875_v2  ;;  %v13292_v20 = vld [vmem:[#allocation78_spill] sm:$0xff] }
 0x26f   :  { %3001 = vmatmul.bf16.gmra.mxu3 %v13288_v52  ;;  %v2897_v51 = vpack.c.bf16 %v2889_v36, %v13292_v20 }
 0x270   :  { %v11552_v32 = vadd.f32 %v2380_v3, %v2251_v57 }
 0x271   :  { %v2231_v42 = vpop.f32.mrf.mxu2 }
 0x272   :  { %v2385_v23 = vpop.f32.mrf.mxu3  ;;  %v11554_v38 = vpop.f32.mrf.mxu0  ;;  %3277 = vmatpush.bf16.msra.mxu1 %v9874_v15 }
 0x273   :  { %v2090_v39 = vpop.f32.mrf.mxu1 }
 0x274   :  { %v2091_v11 = vadd.f32 %v2090_v39, %v11451_v27  ;;  %v9873_v27 = vld [vmem:[%s13100_s3 + $0x240] sm:$0xff] }
 0x275   :  { %v11583_v39 = vld [vmem:[#allocation2 + $0x140] sm:$0xff] }
 0x276   :  { %v2252_v18 = vadd.f32 %v2228_v6, %v2091_v11  ;;  %v2588_v6 = vpack.c.bf16 %v13290_v22, %v13289_v62  ;;  %3278 = vmatpush.bf16.msra.mxu1 %v9873_v27  ;;  %v3492_v11 = vld [vmem:[#allocation2 + $0x31] sm:$0xff] }
 0x277   :  { %v10162_v27 = vld [vmem:[#allocation2 + $0x30] sm:$0xff] }
 0x278   :  { %v11563_v16 = vadd.f32 %v2382_v14, %v2252_v18  ;;  %v10159_v14 = vld [vmem:[#allocation2 + $0x23] sm:$0xff] }
 0x279   :  { %v2233_v3 = vpop.f32.mrf.mxu2  ;;  %v3044_v28 = vpack.c.bf16 %v10159_v14, %v3028_v50  ;;  %v10161_v50 = vld [vmem:[#allocation2 + $0x43] sm:$0xff] }
 0x27a   :  { %v2387_v58 = vpop.f32.mrf.mxu3  ;;  %v2509_v19 = vpop.f32.mrf.mxu0 }
 0x27b   :  { %v2093_v29 = vpop.f32.mrf.mxu1  ;;  %v2549_v40 = vadd.f32 %v2509_v19, %v11375_v55 }
 0x27c   :  { %v2094_v34 = vadd.f32 %v2093_v29, %v11474_v41  ;;  %v13293_v29 = vld [vmem:[#allocation68_spill] sm:$0xff] }
 0x27d   :  { %2693 = vmatmul.bf16.gmra.mxu1 %v2588_v6  ;;  %3125 = vmatmul.bf16.vlgmr.msrb.gmra.mxu0 %v3044_v28  ;;  %v2589_v19 = vpack.c.bf16 %v11583_v39, %v13293_v29 }
 0x27e   :  { %v2253_v7 = vadd.f32 %v2231_v42, %v2094_v34  ;;  %2852 = vmatmul.bf16.gmra.mxu2 %v2743_v31 }
 0x27f   :  { %3006 = vmatmul.bf16.gmra.mxu3 %v2897_v51 }
 0x280   :  { %v11577_v12 = vadd.f32 %v2385_v23, %v2253_v7 }
 0x281   :  { %v2236_v41 = vpop.f32.mrf.mxu2 }
 0x282   :  { %v2390_v55 = vpop.f32.mrf.mxu3  ;;  %v2511_v57 = vpop.f32.mrf.mxu0 }
 0x283   :  { %v2095_v61 = vpop.f32.mrf.mxu1  ;;  %v2550_v5 = vadd.f32 %v2511_v57, %v11377_v24 }
 0x284   :  { %v2096_v45 = vadd.f32 %v2095_v61, %v11506_v33  ;;  %v10160_v33 = vld [vmem:[#allocation2 + $0x33] sm:$0xff] }
 0x285   :  { %v3045_v24 = vpack.c.bf16 %v10161_v50, %v10160_v33  ;;  %v3493_v33 = vld [vmem:[#allocation2 + $0x41] sm:$0xff] }
 0x286   :  { %v2254_v52 = vadd.f32 %v2233_v3, %v2096_v45  ;;  %v3337_v3 = vld [vmem:[#allocation2 + $0x20] sm:$0xff] }
 0x287   :  { %v3353_v34 = vpack.c.bf16 %v10162_v27, %v3337_v3  ;;  %v10165_v50 = vld [vmem:[#allocation2 + $0x40] sm:$0xff] }
 0x288   :  { %v11581_v37 = vadd.f32 %v2387_v58, %v2254_v52  ;;  %v3491_v58 = vld [vmem:[#allocation2 + $0x21] sm:$0xff] }
 0x289   :  { %v2238_v42 = vpop.f32.mrf.mxu2  ;;  %v3507_v6 = vpack.c.bf16 %v3492_v11, %v3491_v58 }
 0x28a   :  { %v2392_v2 = vpop.f32.mrf.mxu3  ;;  %v2514_v15 = vpop.f32.mrf.mxu0 }
 0x28b   :  { %v2098_v18 = vpop.f32.mrf.mxu1  ;;  %v2551_v36 = vadd.f32 %v2514_v15, %v11391_v4  ;;  %v10163_v15 = vld [vmem:[#allocation2 + $0x53] sm:$0xff] }
 0x28c   :  { %v2099_v23 = vadd.f32 %v2098_v18, %v11529_v56 }
 0x28d   :  { %2698 = vmatmul.bf16.gmra.mxu1 %v2589_v19  ;;  %3130 = vmatmul.bf16.gmra.mxu0 %v3045_v24  ;;  %v10166_v24 = vld [vmem:[#allocation2 + $0x50] sm:$0xff] }
 0x28e   :  { %v2255_v14 = vadd.f32 %v2236_v41, %v2099_v23  ;;  %3434 = vmatmul.bf16.vlgmr.msrb.gmra.mxu2 %v3353_v34  ;;  %v3494_v41 = vld [vmem:[#allocation2 + $0x51] sm:$0xff]  ;;  %v10164_v23 = vld [vmem:[#allocation2 + $0x63] sm:$0xff] }
 0x28f   :  { %3588 = vmatmul.bf16.vlgmr.msrb.gmra.mxu3 %v3507_v6  ;;  %v3046_v19 = vpack.c.bf16 %v10164_v23, %v10163_v15  ;;  %v3508_v3 = vpack.c.bf16 %v3494_v41, %v3493_v33 }
 0x290   :  { %v11589_v28 = vadd.f32 %v2390_v55, %v2255_v14 }
 0x291   :  { %v2818_v56 = vpop.f32.mrf.mxu2 }
 0x292   :  { %v2972_v4 = vpop.f32.mrf.mxu3  ;;  %v2516_v31 = vpop.f32.mrf.mxu0 }
 0x293   :  { %v2100_v47 = vpop.f32.mrf.mxu1  ;;  %v2552_v51 = vadd.f32 %v2516_v31, %v11395_v44 }
 0x294   :  { %v2101_v20 = vadd.f32 %v2100_v47, %v11554_v38  ;;  %v3354_v38 = vpack.c.bf16 %v10166_v24, %v10165_v50  ;;  %v13297_v24 = vld [vmem:[#allocation13_spill] sm:$0xff] }
 0x296   :  { %v2256_v7 = vadd.f32 %v2238_v42, %v2101_v20  ;;  %v13294_v42 = vld [vmem:[#allocation7_spill] sm:$0xff] }
 0x298   :  { %v11593_v61 = vadd.f32 %v2392_v2, %v2256_v7  ;;  %v13295_v2 = vld [vmem:[#allocation6_spill] sm:$0xff] }
 0x299   :  { %v2820_v57 = vpop.f32.mrf.mxu2  ;;  %v13296_v58 = vpack.c.bf16 %v13294_v42, %v13295_v2 }
 0x29a   :  { %v2974_v45 = vpop.f32.mrf.mxu3  ;;  %v2519_v52 = vpop.f32.mrf.mxu0 }
 0x29b   :  { %v2664_v11 = vpop.f32.mrf.mxu1  ;;  %v2553_v18 = vadd.f32 %v2519_v52, %v11411_v26  ;;  %v11606_v52 = vld [vmem:[#allocation2 + $0x70] sm:$0xff] }
 0x29c   :  { %v2704_v55 = vadd.f32 %v2664_v11, %v2549_v40  ;;  %v3496_v11 = vld [vmem:[#allocation2 + $0x71] sm:$0xff] }
 0x29d   :  { %3135 = vmatmul.bf16.gmra.mxu0 %v3046_v19  ;;  %3279 = vmatmul.bf16.vlgmr.msra.gmra.mxu1 %v13296_v58  ;;  %v10167_v19 = vld [vmem:[#allocation2 + $0x73] sm:$0xff] }
 0x29e   :  { %v2858_v44 = vadd.f32 %v2818_v56, %v2704_v55  ;;  %3439 = vmatmul.bf16.gmra.mxu2 %v3354_v38  ;;  %v11604_v56 = vld [vmem:[#allocation2 + $0x83] sm:$0xff]  ;;  %v13298_v38 = vld [vmem:[#allocation12_spill] sm:$0xff] }
 0x29f   :  { %3593 = vmatmul.bf16.gmra.mxu3 %v3508_v3  ;;  %v13299_v3 = vpack.c.bf16 %v13297_v24, %v13298_v38 }
 0x2a0   :  { %v11599_v27 = vadd.f32 %v2972_v4, %v2858_v44 }
 0x2a1   :  { %v2823_v26 = vpop.f32.mrf.mxu2 }
 0x2a2   :  { %v2977_v40 = vpop.f32.mrf.mxu3  ;;  %v2521_v34 = vpop.f32.mrf.mxu0 }
 0x2a3   :  { %v2666_v6 = vpop.f32.mrf.mxu1  ;;  %v2554_v14 = vadd.f32 %v2521_v34, %v11421_v17  ;;  %v3047_v17 = vpack.c.bf16 %v11604_v56, %v10167_v19 }
 0x2a4   :  { %v2705_v47 = vadd.f32 %v2666_v6, %v2550_v5  ;;  %v3495_v5 = vld [vmem:[#allocation2 + $0x61] sm:$0xff] }
 0x2a5   :  { %v3509_v33 = vpack.c.bf16 %v3496_v11, %v3495_v5  ;;  %v11623_v11 = vld [vmem:[#allocation2 + $0x90] sm:$0xff]  ;;  %v10169_v5 = vld [vmem:[#allocation2 + $0xe3] sm:$0xff] }
 0x2a6   :  { %v2859_v31 = vadd.f32 %v2820_v57, %v2705_v47  ;;  %v10168_v57 = vld [vmem:[#allocation2 + $0x60] sm:$0xff] }
 0x2a8   :  { %v11602_v20 = vadd.f32 %v2974_v45, %v2859_v31  ;;  %v3355_v45 = vpack.c.bf16 %v11606_v52, %v10168_v57 }
 0x2a9   :  { %v2825_v7 = vpop.f32.mrf.mxu2 }
 0x2aa   :  { %v2979_v41 = vpop.f32.mrf.mxu3  ;;  %v2524_v55 = vpop.f32.mrf.mxu0 }
 0x2ab   :  { %v2669_v4 = vpop.f32.mrf.mxu1  ;;  %v11609_v15 = vadd.f32 %v2524_v55, %v11449_v0  ;;  %v3498_v55 = vld [vmem:[#allocation2 + $0x91] sm:$0xff] }
 0x2ac   :  { %v2706_v23 = vadd.f32 %v2669_v4, %v2551_v36 }
 0x2ad   :  { %3140 = vmatmul.bf16.gmra.mxu0 %v3047_v17  ;;  %3284 = vmatmul.bf16.gmra.mxu1 %v13299_v3 }
 0x2ae   :  { %v2860_v50 = vadd.f32 %v2823_v26, %v2706_v23  ;;  %3444 = vmatmul.bf16.gmra.mxu2 %v3355_v45  ;;  %v13301_v45 = vld [vmem:[#allocation26_spill] sm:$0xff] }
 0x2af   :  { %3598 = vmatmul.bf16.gmra.mxu3 %v3509_v33 }
 0x2b0   :  { %v11616_v44 = vadd.f32 %v2977_v40, %v2860_v50  ;;  %v3036_v40 = vld [vmem:[#allocation2 + $0xd3] sm:$0xff] }
 0x2b1   :  { %v2828_v0 = vpop.f32.mrf.mxu2  ;;  %v3048_v57 = vpack.c.bf16 %v10169_v5, %v3036_v40 }
 0x2b2   :  { %v2982_v36 = vpop.f32.mrf.mxu3  ;;  %v2526_v42 = vpop.f32.mrf.mxu0 }
 0x2b3   :  { %v2671_v2 = vpop.f32.mrf.mxu1  ;;  %v11619_v58 = vadd.f32 %v2526_v42, %v11472_v46  ;;  %v3356_v46 = vpack.c.bf16 %v11623_v11, %v11423_v9 }
 0x2b4   :  { %v2707_v34 = vadd.f32 %v2671_v2, %v2552_v51  ;;  %v3510_v51 = vpack.c.bf16 %v3498_v55, %v11397_v13  ;;  %v9903_v13 = vld [vmem:[%s13100_s3 + $0x330] sm:$0xff] }
 0x2b6   :  { %v2861_v6 = vadd.f32 %v2825_v7, %v2707_v34  ;;  %v11650_v34 = vld [vmem:[#allocation2 + $0x84] sm:$0xff] }
 0x2b8   :  { %v11621_v47 = vadd.f32 %v2979_v41, %v2861_v6  ;;  %v13300_v41 = vld [vmem:[#allocation27_spill] sm:$0xff] }
 0x2b9   :  { %v2830_v26 = vpop.f32.mrf.mxu2  ;;  %v13302_v33 = vpack.c.bf16 %v13300_v41, %v13301_v45  ;;  %v13303_v41 = vld [vmem:[#allocation43_spill] sm:$0xff] }
 0x2ba   :  { %v2984_v31 = vpop.f32.mrf.mxu3  ;;  %v2529_v4 = vpop.f32.mrf.mxu0  ;;  %v13304_v45 = vpack.c.bf16 %v13303_v41, %v13280_v59  ;;  %v3501_v41 = vld [vmem:[#allocation2 + $0x101] sm:$0xff] }
 0x2bb   :  { %v2674_v23 = vpop.f32.mrf.mxu1  ;;  %v11626_v19 = vadd.f32 %v2529_v4, %v11504_v10  ;;  %v9904_v10 = vld [vmem:[%s13100_s3 + $0x338] sm:$0xff] }
 0x2bc   :  { %v2708_v17 = vadd.f32 %v2674_v23, %v2553_v18  ;;  %3734 = vmatpush.bf16.msra.mxu0 %v9904_v10  ;;  %v3500_v4 = vld [vmem:[#allocation2 + $0xf1] sm:$0xff] }
 0x2bd   :  { %3145 = vmatmul.bf16.gmra.mxu0 %v3048_v57  ;;  %3289 = vmatmul.bf16.gmra.mxu1 %v13302_v33  ;;  %v3201_v57 = vpack.c.bf16 %v11650_v34, %v11379_v8  ;;  %v9928_v8 = vld [vmem:[%s13100_s3 + $0x3f8] sm:$0xff] }
 0x2be   :  { %v2862_v7 = vadd.f32 %v2828_v0, %v2708_v17  ;;  %3449 = vmatmul.bf16.gmra.mxu2 %v3356_v46  ;;  %v10170_v17 = vld [vmem:[#allocation2 + $0xf3] sm:$0xff]  ;;  %v3499_v46 = vld [vmem:[#allocation2 + $0xe1] sm:$0xff]  ;;  %4197 = vmatpush.bf16.msra.mxu3 %v9928_v8  ;;  %v13306_v8 = vpack.c.bf16 %v11014_v43, %v11012_v53 }
 0x2bf   :  { %3603 = vmatmul.bf16.gmra.mxu3 %v3510_v51  ;;  %v3511_v51 = vpack.c.bf16 %v3500_v4, %v3499_v46  ;;  %v9898_v4 = vld [vmem:[%s13100_s3 + $0x308] sm:$0xff]  ;;  %v10172_v46 = vld [vmem:[#allocation2 + $0x113] sm:$0xff] }
 0x2c0   :  { %v11637_v18 = vadd.f32 %v2982_v36, %v2862_v7  ;;  %3735 = vmatpush.bf16.msra.mxu0 %v9903_v13  ;;  %v9902_v36 = vld [vmem:[%s13100_s3 + $0x328] sm:$0xff]  ;;  %v9919_v13 = vld [vmem:[%s13100_s3 + $0x3b0] sm:$0xff] }
 0x2c1   :  { %v2833_v50 = vpop.f32.mrf.mxu2 }
 0x2c2   :  { %v2987_v24 = vpop.f32.mrf.mxu3  ;;  %v2531_v9 = vpop.f32.mrf.mxu0 }
 0x2c3   :  { %v2676_v38 = vpop.f32.mrf.mxu1  ;;  %v11643_v3 = vadd.f32 %v2531_v9, %v11527_v21  ;;  %v9901_v21 = vld [vmem:[%s13100_s3 + $0x320] sm:$0xff] }
 0x2c4   :  { %v2709_v0 = vadd.f32 %v2676_v38, %v2554_v14  ;;  %3736 = vmatpush.bf16.msra.mxu0 %v9902_v36  ;;  %v9899_v38 = vld [vmem:[%s13100_s3 + $0x310] sm:$0xff] }
 0x2c6   :  { %v2863_v42 = vadd.f32 %v2830_v26, %v2709_v0 }
 0x2c8   :  { %v11648_v2 = vadd.f32 %v2984_v31, %v2863_v42  ;;  %v10171_v31 = vld [vmem:[#allocation2 + $0x103] sm:$0xff]  ;;  %3737 = vmatpush.bf16.msra.mxu0 %v9901_v21 }
 0x2c9   :  { %v2835_v6 = vpop.f32.mrf.mxu2  ;;  %v3049_v5 = vpack.c.bf16 %v10171_v31, %v10170_v17  ;;  %v9897_v31 = vld [vmem:[%s13100_s3 + $0x300] sm:$0xff] }
 0x2ca   :  { %v2989_v55 = vpop.f32.mrf.mxu3  ;;  %v2534_v23 = vpop.f32.mrf.mxu0 }
 0x2cb   :  { %v2679_v40 = vpop.f32.mrf.mxu1  ;;  %v11656_v14 = vadd.f32 %v2534_v23, %v11552_v32  ;;  %v9900_v32 = vld [vmem:[%s13100_s3 + $0x318] sm:$0xff]  ;;  %v9918_v23 = vld [vmem:[%s13100_s3 + $0x3a8] sm:$0xff] }
 0x2cc   :  { %v2710_v26 = vadd.f32 %v2679_v40, %v11609_v15  ;;  %v9920_v15 = vld [vmem:[%s13100_s3 + $0x3b8] sm:$0xff]  ;;  %3738 = vmatpush.bf16.msra.mxu0 %v9900_v32  ;;  %v9926_v40 = vld [vmem:[%s13100_s3 + $0x3e8] sm:$0xff] }
 0x2cd   :  { %3150 = vmatmul.bf16.gmra.mxu0 %v3049_v5  ;;  %3294 = vmatmul.bf16.gmra.mxu1 %v3201_v57  ;;  %v9917_v5 = vld [vmem:[%s13100_s3 + $0x3a0] sm:$0xff] }
 0x2ce   :  { %v2864_v7 = vadd.f32 %v2833_v50, %v2710_v26  ;;  %3454 = vmatmul.bf16.gmra.mxu2 %v13304_v45  ;;  %v9925_v45 = vld [vmem:[%s13100_s3 + $0x3e0] sm:$0xff] }
 0x2cf   :  { %3608 = vmatmul.bf16.gmra.mxu3 %v3511_v51  ;;  %4042 = vmatpush.bf16.msra.mxu2 %v9920_v15  ;;  %v13305_v51 = vld [vmem:[#allocation69_spill] sm:$0xff] }
 0x2d0   :  { %v11673_v33 = vadd.f32 %v2987_v24, %v2864_v7  ;;  %v9927_v24 = vld [vmem:[%s13100_s3 + $0x3f0] sm:$0xff]  ;;  %3739 = vmatpush.bf16.msra.mxu0 %v9899_v38  ;;  %v3050_v7 = vpack.c.bf16 %v13305_v51, %v10172_v46 }
 0x2d1   :  { %v2838_v10 = vpop.f32.mrf.mxu2  ;;  %4198 = vmatpush.bf16.msra.mxu3 %v9927_v24  ;;  %v9911_v38 = vld [vmem:[%s13100_s3 + $0x370] sm:$0xff] }
 0x2d2   :  { %v2992_v59 = vpop.f32.mrf.mxu3  ;;  %v2536_v50 = vpop.f32.mrf.mxu0 }
 0x2d3   :  { %v2681_v9 = vpop.f32.mrf.mxu1  ;;  %v11685_v0 = vadd.f32 %v2536_v50, %v11563_v16  ;;  %4043 = vmatpush.bf16.msra.mxu2 %v9919_v13  ;;  %v9916_v50 = vld [vmem:[%s13100_s3 + $0x398] sm:$0xff]  ;;  %v9915_v13 = vld [vmem:[%s13100_s3 + $0x390] sm:$0xff] }
 0x2d4   :  { %v2711_v42 = vadd.f32 %v2681_v9, %v11619_v58  ;;  %3740 = vmatpush.bf16.msra.mxu0 %v9898_v4  ;;  %v9910_v4 = vld [vmem:[%s13100_s3 + $0x368] sm:$0xff] }
 0x2d5   :  { %4199 = vmatpush.bf16.msra.mxu3 %v9926_v40  ;;  %v3043_v40 = vld [vmem:[#allocation2 + $0x143] sm:$0xff] }
 0x2d6   :  { %v2865_v36 = vadd.f32 %v2835_v6, %v2711_v42  ;;  %v3502_v6 = vld [vmem:[#allocation2 + $0x111] sm:$0xff] }
 0x2d7   :  { %4044 = vmatpush.bf16.msra.mxu2 %v9918_v23  ;;  %v3512_v32 = vpack.c.bf16 %v3502_v6, %v3501_v41  ;;  %v9923_v42 = vld [vmem:[%s13100_s3 + $0x3d0] sm:$0xff]  ;;  %v9914_v23 = vld [vmem:[%s13100_s3 + $0x388] sm:$0xff] }
 0x2d8   :  { %v11697_v16 = vadd.f32 %v2989_v55, %v2865_v36  ;;  %3741 = vmatpush.bf16.msra.mxu0 %v9897_v31 }
 0x2d9   :  { %v2840_v58 = vpop.f32.mrf.mxu2  ;;  %4200 = vmatpush.bf16.msra.mxu3 %v9925_v45  ;;  %v3503_v45 = vld [vmem:[#allocation2 + $0x121] sm:$0xff] }
 0x2da   :  { %v2994_v21 = vpop.f32.mrf.mxu3  ;;  %v2539_v26 = vpop.f32.mrf.mxu0 }
 0x2db   :  { %v2684_v17 = vpop.f32.mrf.mxu1  ;;  %v11706_v57 = vadd.f32 %v2539_v26, %v11577_v12  ;;  %4045 = vmatpush.bf16.msra.mxu2 %v9917_v5  ;;  %v13307_v12 = vpack.c.bf16 %v13289_v62, %v13285_v49  ;;  %v3504_v26 = vld [vmem:[#allocation2 + $0x131] sm:$0xff]  ;;  %v9909_v5 = vld [vmem:[%s13100_s3 + $0x360] sm:$0xff] }
 0x2dc   :  { %v2712_v55 = vadd.f32 %v2684_v17, %v11626_v19  ;;  %v9912_v19 = vld [vmem:[%s13100_s3 + $0x378] sm:$0xff] }
 0x2dd   :  { %3155 = vmatmul.bf16.gmra.mxu0 %v3050_v7  ;;  %3299 = vmatmul.bf16.gmra.mxu1 %v13306_v8  ;;  %v10173_v7 = vld [vmem:[#allocation2 + $0x133] sm:$0xff] }
 0x2de   :  { %v2866_v15 = vadd.f32 %v2838_v10, %v2712_v55  ;;  %3459 = vmatmul.bf16.gmra.mxu2 %v13307_v12  ;;  %v9924_v10 = vld [vmem:[%s13100_s3 + $0x3d8] sm:$0xff]  ;;  %3888 = vmatpush.bf16.msrb.mxu1 %v9912_v19  ;;  %v9913_v55 = vld [vmem:[%s13100_s3 + $0x380] sm:$0xff]  ;;  %v3051_v41 = vpack.c.bf16 %v3043_v40, %v10173_v7  ;;  %v13308_v12 = vpack.c.bf16 %v13278_v54, %v11062_v30 }
 0x2df   :  { %3613 = vmatmul.bf16.gmra.mxu3 %v3512_v32  ;;  %4046 = vmatpush.bf16.msra.mxu2 %v9916_v50  ;;  %v9921_v32 = vld [vmem:[%s13100_s3 + $0x3c0] sm:$0xff] }
 0x2e0   :  { %v11728_v53 = vadd.f32 %v2992_v59, %v2866_v15  ;;  %4201 = vmatpush.bf16.msra.mxu3 %v9924_v10  ;;  %v3513_v15 = vpack.c.bf16 %v3504_v26, %v3503_v45  ;;  %v11807_v45 = vld [vmem:[#allocation2 + $0x144] sm:$0xff] }
 0x2e1   :  { %v2843_v43 = vpop.f32.mrf.mxu2 }
 0x2e2   :  { %v2997_v49 = vpop.f32.mrf.mxu3  ;;  %v2541_v62 = vpop.f32.mrf.mxu0  ;;  %3889 = vmatpush.bf16.msrb.mxu1 %v9911_v38 }
 0x2e3   :  { %v2686_v9 = vpop.f32.mrf.mxu1  ;;  %v11737_v24 = vadd.f32 %v2541_v62, %v11581_v37  ;;  %4047 = vmatpush.bf16.msra.mxu2 %v9915_v13  ;;  %v9922_v37 = vld [vmem:[%s13100_s3 + $0x3c8] sm:$0xff] }
 0x2e4   :  { %v2713_v59 = vadd.f32 %v2686_v9, %v11643_v3  ;;  %4202 = vmatpush.bf16.msra.mxu3 %v9923_v42  ;;  %v3506_v42 = vld [vmem:[#allocation2 + $0x151] sm:$0xff] }
 0x2e5   :  { %v3514_v26 = vpack.c.bf16 %v3506_v42, %v11565_v60 }
 0x2e6   :  { %v2867_v36 = vadd.f32 %v2840_v58, %v2713_v59  ;;  %3890 = vmatpush.bf16.msrb.mxu1 %v9910_v4  ;;  %v11788_v59 = vld [vmem:[#allocation2 + $0x150] sm:$0xff] }
 0x2e7   :  { %4048 = vmatpush.bf16.msra.mxu2 %v9914_v23 }
 0x2e8   :  { %v11752_v3 = vadd.f32 %v2994_v21, %v2867_v36  ;;  %4203 = vmatpush.bf16.msra.mxu3 %v9922_v37  ;;  %v3645_v36 = vld [vmem:[#allocation2 + $0x22] sm:$0xff]  ;;  %v10174_v37 = vld [vmem:[#allocation2 + $0x32] sm:$0xff] }
 0x2e9   :  { %v2845_v6 = vpop.f32.mrf.mxu2  ;;  %v3661_v40 = vpack.c.bf16 %v10174_v37, %v3645_v36 }
 0x2ea   :  { %v2999_v58 = vpop.f32.mrf.mxu3  ;;  %v2544_v17 = vpop.f32.mrf.mxu0  ;;  %3891 = vmatpush.bf16.msrb.mxu1 %v9909_v5 }
 0x2eb   :  { %v2689_v31 = vpop.f32.mrf.mxu1  ;;  %v11761_v46 = vadd.f32 %v2544_v17, %v11589_v28  ;;  %4049 = vmatpush.bf16.msra.mxu2 %v9913_v55  ;;  %v13309_v28 = vpack.c.bf16 %v13293_v29, %v13290_v22  ;;  %v9907_v22 = vld [vmem:[%s13100_s3 + $0x350] sm:$0xff] }
 0x2ec   :  { %v2714_v21 = vadd.f32 %v2689_v31, %v11656_v14  ;;  %v9908_v14 = vld [vmem:[%s13100_s3 + $0x358] sm:$0xff]  ;;  %4204 = vmatpush.bf16.msra.mxu3 %v9921_v32  ;;  %v13310_v31 = vpack.c.bf16 %v13284_v35, %v13279_v48 }
 0x2ed   :  { %3160 = vmatmul.bf16.gmra.mxu0 %v3051_v41  ;;  %3304 = vmatmul.bf16.gmra.mxu1 %v13308_v12 }
 0x2ee   :  { %v2868_v8 = vadd.f32 %v2843_v43, %v2714_v21  ;;  %3464 = vmatmul.bf16.gmra.mxu2 %v13309_v28  ;;  %3892 = vmatpush.bf16.msrb.mxu1 %v9908_v14  ;;  %v10175_v14 = vld [vmem:[#allocation2 + $0x42] sm:$0xff] }
 0x2ef   :  { %3618 = vmatmul.bf16.gmra.mxu3 %v3513_v15 }
 0x2f0   :  { %v11776_v19 = vadd.f32 %v2997_v49, %v2868_v8  ;;  %v9906_v49 = vld [vmem:[%s13100_s3 + $0x348] sm:$0xff]  ;;  %v11809_v8 = vld [vmem:[#allocation2 + $0x134] sm:$0xff] }
 0x2f1   :  { %v2848_v50 = vpop.f32.mrf.mxu2 }
 0x2f2   :  { %v3002_v10 = vpop.f32.mrf.mxu3  ;;  %v2546_v43 = vpop.f32.mrf.mxu0  ;;  %3893 = vmatpush.bf16.msrb.mxu1 %v9907_v22  ;;  %v13311_v22 = vld [vmem:[#allocation11_spill] sm:$0xff] }
 0x2f3   :  { %v2691_v62 = vpop.f32.mrf.mxu1  ;;  %v2564_v30 = vadd.f32 %v2546_v43, %v11593_v61  ;;  %v10177_v43 = vld [vmem:[#allocation2 + $0x34] sm:$0xff] }
 0x2f4   :  { %v2715_v54 = vadd.f32 %v2691_v62, %v11685_v0 }
 0x2f6   :  { %v2869_v29 = vadd.f32 %v2845_v6, %v2715_v54  ;;  %3894 = vmatpush.bf16.msrb.mxu1 %v9906_v49  ;;  %v9905_v6 = vld [vmem:[%s13100_s3 + $0x340] sm:$0xff] }
 0x2f8   :  { %v11786_v9 = vadd.f32 %v2999_v58, %v2869_v29  ;;  %v3360_v58 = vpack.c.bf16 %v11788_v59, %v11583_v39  ;;  %v13312_v29 = vld [vmem:[#allocation10_spill] sm:$0xff] }
 0x2f9   :  { %v2850_v38 = vpop.f32.mrf.mxu2  ;;  %v13313_v49 = vpack.c.bf16 %v13311_v22, %v13312_v29  ;;  %v11837_v29 = vld [vmem:[#allocation2 + $0x74] sm:$0xff] }
 0x2fa   :  { %v3004_v13 = vpop.f32.mrf.mxu3  ;;  %v3126_v0 = vpop.f32.mrf.mxu0  ;;  %3895 = vmatpush.bf16.msrb.mxu1 %v9905_v6 }
 0x2fb   :  { %v2694_v61 = vpop.f32.mrf.mxu1  ;;  %v3166_v23 = vadd.f32 %v3126_v0, %v11599_v27 }
 0x2fc   :  { %v2716_v4 = vadd.f32 %v2694_v61, %v11706_v57 }
 0x2fd   :  { %3309 = vmatmul.bf16.gmra.mxu1 %v13310_v31  ;;  %3742 = vmatmul.bf16.vlgmr.msra.gmra.mxu0 %v3661_v40  ;;  %v10178_v31 = vld [vmem:[#allocation2 + $0x62] sm:$0xff] }
 0x2fe   :  { %v2870_v17 = vadd.f32 %v2848_v50, %v2716_v4  ;;  %3469 = vmatmul.bf16.gmra.mxu2 %v3360_v58 }
 0x2ff   :  { %3623 = vmatmul.bf16.gmra.mxu3 %v3514_v26 }
 0x300   :  { %v11801_v27 = vadd.f32 %v3002_v10, %v2870_v17  ;;  %v3953_v10 = vld [vmem:[#allocation2 + $0x24] sm:$0xff] }
 0x301   :  { %v2853_v57 = vpop.f32.mrf.mxu2  ;;  %v3969_v62 = vpack.c.bf16 %v10177_v43, %v3953_v10 }
 0x302   :  { %v3007_v5 = vpop.f32.mrf.mxu3  ;;  %v3128_v21 = vpop.f32.mrf.mxu0 }
 0x303   :  { %v2696_v55 = vpop.f32.mrf.mxu1  ;;  %v3167_v39 = vadd.f32 %v3128_v21, %v11602_v20  ;;  %v10176_v20 = vld [vmem:[#allocation2 + $0x52] sm:$0xff] }
 0x304   :  { %v2717_v7 = vadd.f32 %v2696_v55, %v11737_v24  ;;  %v3205_v24 = vpack.c.bf16 %v11807_v45, %v11809_v8  ;;  %v3662_v50 = vpack.c.bf16 %v10176_v20, %v10175_v14  ;;  %v10180_v55 = vld [vmem:[#allocation2 + $0x44] sm:$0xff]  ;;  %v10181_v21 = vld [vmem:[#allocation2 + $0x54] sm:$0xff] }
 0x306   :  { %v2871_v60 = vadd.f32 %v2850_v38, %v2717_v7  ;;  %v3970_v7 = vpack.c.bf16 %v10181_v21, %v10180_v55 }
 0x308   :  { %v11805_v41 = vadd.f32 %v3004_v13, %v2871_v60 }
 0x309   :  { %v2855_v48 = vpop.f32.mrf.mxu2 }
 0x30a   :  { %v3009_v35 = vpop.f32.mrf.mxu3  ;;  %v3131_v15 = vpop.f32.mrf.mxu0 }
 0x30b   :  { %v2699_v32 = vpop.f32.mrf.mxu1  ;;  %v3168_v28 = vadd.f32 %v3131_v15, %v11616_v44 }
 0x30c   :  { %v2718_v12 = vadd.f32 %v2699_v32, %v11761_v46  ;;  %v13318_v32 = vld [vmem:[#allocation24_spill] sm:$0xff] }
 0x30d   :  { %3314 = vmatmul.bf16.gmra.mxu1 %v3205_v24  ;;  %3747 = vmatmul.bf16.gmra.mxu0 %v3662_v50 }
 0x30e   :  { %v2872_v54 = vadd.f32 %v2853_v57, %v2718_v12  ;;  %4050 = vmatmul.bf16.vlgmr.msra.gmra.mxu2 %v3969_v62  ;;  %v10179_v57 = vld [vmem:[#allocation2 + $0x72] sm:$0xff] }
 0x30f   :  { %4205 = vmatmul.bf16.vlgmr.msra.gmra.mxu3 %v13313_v49  ;;  %v11835_v62 = vld [vmem:[#allocation2 + $0x92] sm:$0xff]  ;;  %v4113_v49 = vld [vmem:[#allocation2 + $0x80] sm:$0xff] }
 0x310   :  { %v11818_v46 = vadd.f32 %v3007_v5, %v2872_v54  ;;  %v3663_v5 = vpack.c.bf16 %v10179_v57, %v10178_v31 }
 0x311   :  { %v3435_v44 = vpop.f32.mrf.mxu2 }
 0x312   :  { %v3589_v38 = vpop.f32.mrf.mxu3  ;;  %v3133_v42 = vpop.f32.mrf.mxu0 }
 0x313   :  { %v2701_v13 = vpop.f32.mrf.mxu1  ;;  %v3169_v0 = vadd.f32 %v3133_v42, %v11621_v47  ;;  %v13315_v47 = vld [vmem:[#allocation8_spill] sm:$0xff] }
 0x314   :  { %v2719_v61 = vadd.f32 %v2701_v13, %v2564_v30  ;;  %v13314_v30 = vld [vmem:[#allocation9_spill] sm:$0xff] }
 0x316   :  { %v2873_v36 = vadd.f32 %v2855_v48, %v2719_v61  ;;  %v13316_v48 = vpack.c.bf16 %v13314_v30, %v13315_v47  ;;  %v10182_v61 = vld [vmem:[#allocation2 + $0x82] sm:$0xff]  ;;  %v11853_v47 = vld [vmem:[#allocation2 + $0x94] sm:$0xff] }
 0x318   :  { %v11821_v4 = vadd.f32 %v3009_v35, %v2873_v36  ;;  %v13317_v35 = vld [vmem:[#allocation25_spill] sm:$0xff]  ;;  %v3664_v36 = vpack.c.bf16 %v11835_v62, %v10182_v61  ;;  %v9935_v61 = vld [vmem:[%s13100_s3 + $0x430] sm:$0xff] }
 0x319   :  { %v3437_v37 = vpop.f32.mrf.mxu2  ;;  %v13319_v15 = vpack.c.bf16 %v13317_v35, %v13318_v32 }
 0x31a   :  { %v3591_v40 = vpop.f32.mrf.mxu3  ;;  %v3136_v6 = vpop.f32.mrf.mxu0 }
 0x31b   :  { %v3280_v58 = vpop.f32.mrf.mxu1  ;;  %v3170_v26 = vadd.f32 %v3136_v6, %v11637_v18  ;;  %v13320_v6 = vld [vmem:[#allocation19_spill] sm:$0xff] }
 0x31c   :  { %v3320_v17 = vadd.f32 %v3280_v58, %v3166_v23  ;;  %v13321_v58 = vld [vmem:[#allocation18_spill] sm:$0xff] }
 0x31d   :  { %3752 = vmatmul.bf16.gmra.mxu0 %v3663_v5  ;;  %3896 = vmatmul.bf16.vlgmr.msrb.gmra.mxu1 %v13316_v48  ;;  %v4115_v48 = vld [vmem:[#allocation2 + $0xa0] sm:$0xff] }
 0x31e   :  { %v3475_v60 = vadd.f32 %v3435_v44, %v3320_v17  ;;  %4055 = vmatmul.bf16.gmra.mxu2 %v3970_v7  ;;  %v13322_v17 = vpack.c.bf16 %v13320_v6, %v13321_v58  ;;  %v4117_v58 = vld [vmem:[#allocation2 + $0x100] sm:$0xff] }
 0x31f   :  { %4210 = vmatmul.bf16.gmra.mxu3 %v13319_v15  ;;  %v3653_v15 = vld [vmem:[#allocation2 + $0xe2] sm:$0xff] }
 0x320   :  { %v11830_v12 = vadd.f32 %v3589_v38, %v3475_v60 }
 0x321   :  { %v3440_v18 = vpop.f32.mrf.mxu2 }
 0x322   :  { %v3594_v23 = vpop.f32.mrf.mxu3  ;;  %v3138_v24 = vpop.f32.mrf.mxu0 }
 0x323   :  { %v3282_v14 = vpop.f32.mrf.mxu1  ;;  %v3171_v20 = vadd.f32 %v3138_v24, %v11648_v2  ;;  %v10183_v2 = vld [vmem:[#allocation2 + $0x64] sm:$0xff]  ;;  %v10184_v24 = vld [vmem:[#allocation2 + $0xf2] sm:$0xff] }
 0x324   :  { %v3321_v50 = vadd.f32 %v3282_v14, %v3167_v39  ;;  %v3971_v39 = vpack.c.bf16 %v11837_v29, %v10183_v2  ;;  %v3665_v14 = vpack.c.bf16 %v10184_v24, %v3653_v15  ;;  %v9934_v2 = vld [vmem:[%s13100_s3 + $0x428] sm:$0xff] }
 0x326   :  { %v3476_v10 = vadd.f32 %v3437_v37, %v3321_v50  ;;  %v4126_v37 = vpack.c.bf16 %v4113_v49, %v11606_v52 }
 0x328   :  { %v11833_v43 = vadd.f32 %v3591_v40, %v3476_v10  ;;  %v13323_v10 = vld [vmem:[#allocation33_spill] sm:$0xff] }
 0x329   :  { %v3442_v54 = vpop.f32.mrf.mxu2 }
 0x32a   :  { %v3596_v22 = vpop.f32.mrf.mxu3  ;;  %v3141_v44 = vpop.f32.mrf.mxu0 }
 0x32b   :  { %v3285_v38 = vpop.f32.mrf.mxu1  ;;  %v3172_v13 = vadd.f32 %v3141_v44, %v11673_v33 }
 0x32c   :  { %v3322_v42 = vadd.f32 %v3285_v38, %v3168_v28 }
 0x32d   :  { %3757 = vmatmul.bf16.gmra.mxu0 %v3664_v36  ;;  %3901 = vmatmul.bf16.gmra.mxu1 %v13322_v17 }
 0x32e   :  { %v3477_v40 = vadd.f32 %v3440_v18, %v3322_v42  ;;  %4060 = vmatmul.bf16.gmra.mxu2 %v3971_v39 }
 0x32f   :  { %4215 = vmatmul.bf16.gmra.mxu3 %v4126_v37  ;;  %v11880_v37 = vld [vmem:[#allocation2 + $0x93] sm:$0xff] }
 0x330   :  { %v11846_v31 = vadd.f32 %v3594_v23, %v3477_v40 }
 0x331   :  { %v3445_v33 = vpop.f32.mrf.mxu2 }
 0x332   :  { %v3599_v28 = vpop.f32.mrf.mxu3  ;;  %v3143_v57 = vpop.f32.mrf.mxu0 }
 0x333   :  { %v3287_v5 = vpop.f32.mrf.mxu1  ;;  %v11849_v55 = vadd.f32 %v3143_v57, %v11697_v16  ;;  %v3972_v16 = vpack.c.bf16 %v11853_v47, %v11650_v34  ;;  %v10186_v57 = vld [vmem:[#allocation2 + $0x112] sm:$0xff] }
 0x334   :  { %v3323_v21 = vadd.f32 %v3287_v5, %v3169_v0  ;;  %v4127_v0 = vpack.c.bf16 %v4115_v48, %v11623_v11  ;;  %v10187_v48 = vld [vmem:[#allocation2 + $0xf4] sm:$0xff] }
 0x336   :  { %v3478_v7 = vadd.f32 %v3442_v54, %v3323_v21  ;;  %v13324_v54 = vld [vmem:[#allocation32_spill] sm:$0xff]  ;;  %v3818_v21 = vpack.c.bf16 %v11880_v37, %v11604_v56 }
 0x337   :  { %v9960_v56 = vld [vmem:[%s13100_s3 + $0x4f8] sm:$0xff] }
 0x338   :  { %v11851_v52 = vadd.f32 %v3596_v22, %v3478_v7  ;;  %v13325_v22 = vpack.c.bf16 %v13323_v10, %v13324_v54  ;;  %v3961_v7 = vld [vmem:[#allocation2 + $0xe4] sm:$0xff]  ;;  %4813 = vmatpush.bf16.msrb.mxu3 %v9960_v56  ;;  %v9931_v54 = vld [vmem:[%s13100_s3 + $0x410] sm:$0xff]  ;;  %v9956_v56 = vld [vmem:[%s13100_s3 + $0x4d8] sm:$0xff] }
 0x339   :  { %v3447_v60 = vpop.f32.mrf.mxu2 }
 0x33a   :  { %v3601_v30 = vpop.f32.mrf.mxu3  ;;  %v3146_v35 = vpop.f32.mrf.mxu0 }
 0x33b   :  { %v3290_v32 = vpop.f32.mrf.mxu1  ;;  %v11856_v18 = vadd.f32 %v3146_v35, %v11728_v53  ;;  %v9936_v53 = vld [vmem:[%s13100_s3 + $0x438] sm:$0xff]  ;;  %v3973_v35 = vpack.c.bf16 %v10187_v48, %v3961_v7 }
 0x33c   :  { %v3324_v23 = vadd.f32 %v3290_v32, %v3170_v26  ;;  %4351 = vmatpush.bf16.msrb.mxu0 %v9936_v53  ;;  %v9959_v53 = vld [vmem:[%s13100_s3 + $0x4f0] sm:$0xff] }
 0x33d   :  { %3762 = vmatmul.bf16.gmra.mxu0 %v3665_v14  ;;  %3906 = vmatmul.bf16.gmra.mxu1 %v13325_v22  ;;  %v9951_v22 = vld [vmem:[%s13100_s3 + $0x4b0] sm:$0xff] }
 0x33e   :  { %v3479_v50 = vadd.f32 %v3445_v33, %v3324_v23  ;;  %4065 = vmatmul.bf16.gmra.mxu2 %v3972_v16  ;;  %4814 = vmatpush.bf16.msrb.mxu3 %v9959_v53  ;;  %v13327_v48 = vld [vmem:[#allocation44_spill] sm:$0xff] }
 0x33f   :  { %4220 = vmatmul.bf16.gmra.mxu3 %v4127_v0  ;;  %v9955_v53 = vld [vmem:[%s13100_s3 + $0x4d0] sm:$0xff] }
 0x340   :  { %v11867_v26 = vadd.f32 %v3599_v28, %v3479_v50  ;;  %4352 = vmatpush.bf16.msrb.mxu0 %v9935_v61  ;;  %v10185_v28 = vld [vmem:[#allocation2 + $0x102] sm:$0xff] }
 0x341   :  { %v3450_v49 = vpop.f32.mrf.mxu2  ;;  %v3666_v5 = vpack.c.bf16 %v10186_v57, %v10185_v28  ;;  %v4119_v61 = vld [vmem:[#allocation2 + $0x120] sm:$0xff]  ;;  %v4118_v28 = vld [vmem:[#allocation2 + $0x110] sm:$0xff] }
 0x342   :  { %v3604_v44 = vpop.f32.mrf.mxu3  ;;  %v3148_v34 = vpop.f32.mrf.mxu0  ;;  %v9949_v57 = vld [vmem:[%s13100_s3 + $0x4a0] sm:$0xff] }
 0x343   :  { %v3292_v38 = vpop.f32.mrf.mxu1  ;;  %v11870_v11 = vadd.f32 %v3148_v34, %v11752_v3 }
 0x344   :  { %v3325_v42 = vadd.f32 %v3292_v38, %v3171_v20  ;;  %4353 = vmatpush.bf16.msrb.mxu0 %v9934_v2 }
 0x346   :  { %v3480_v36 = vadd.f32 %v3447_v60, %v3325_v42  ;;  %v4116_v60 = vld [vmem:[#allocation2 + $0xf0] sm:$0xff] }
 0x347   :  { %v4128_v32 = vpack.c.bf16 %v4117_v58, %v4116_v60 }
 0x348   :  { %v11878_v39 = vadd.f32 %v3601_v30, %v3480_v36  ;;  %v9933_v30 = vld [vmem:[%s13100_s3 + $0x420] sm:$0xff] }
 0x349   :  { %v3452_v40 = vpop.f32.mrf.mxu2  ;;  %4354 = vmatpush.bf16.msrb.mxu0 %v9933_v30  ;;  %v13326_v30 = vld [vmem:[#allocation45_spill] sm:$0xff] }
 0x34a   :  { %v3606_v6 = vpop.f32.mrf.mxu3  ;;  %v3151_v3 = vpop.f32.mrf.mxu0 }
 0x34b   :  { %v3295_v20 = vpop.f32.mrf.mxu1  ;;  %v11883_v17 = vadd.f32 %v3151_v3, %v11776_v19  ;;  %v9952_v19 = vld [vmem:[%s13100_s3 + $0x4b8] sm:$0xff]  ;;  %v10188_v3 = vld [vmem:[#allocation2 + $0x122] sm:$0xff] }
 0x34c   :  { %v3326_v33 = vadd.f32 %v3295_v20, %v3172_v13  ;;  %v9932_v13 = vld [vmem:[%s13100_s3 + $0x418] sm:$0xff]  ;;  %4659 = vmatpush.bf16.msrb.mxu2 %v9952_v19 }
 0x34d   :  { %3767 = vmatmul.bf16.gmra.mxu0 %v3666_v5  ;;  %3911 = vmatmul.bf16.gmra.mxu1 %v3818_v21  ;;  %v10189_v20 = vld [vmem:[#allocation2 + $0x132] sm:$0xff]  ;;  %v10190_v5 = vld [vmem:[#allocation2 + $0x104] sm:$0xff] }
 0x34e   :  { %v3481_v15 = vadd.f32 %v3450_v49, %v3326_v33  ;;  %4070 = vmatmul.bf16.gmra.mxu2 %v3973_v35  ;;  %4355 = vmatpush.bf16.msrb.mxu0 %v9932_v13  ;;  %v3667_v33 = vpack.c.bf16 %v10189_v20, %v10188_v3  ;;  %v10191_v21 = vld [vmem:[#allocation2 + $0x114] sm:$0xff]  ;;  %v13328_v35 = vpack.c.bf16 %v13326_v30, %v13327_v48 }
 0x34f   :  { %4225 = vmatmul.bf16.gmra.mxu3 %v4128_v32  ;;  %v3974_v7 = vpack.c.bf16 %v10191_v21, %v10190_v5  ;;  %v9944_v32 = vld [vmem:[%s13100_s3 + $0x478] sm:$0xff]  ;;  %v10193_v5 = vld [vmem:[#allocation2 + $0x124] sm:$0xff] }
 0x350   :  { %v11899_v23 = vadd.f32 %v3604_v44, %v3481_v15  ;;  %4660 = vmatpush.bf16.msrb.mxu2 %v9951_v22  ;;  %v9930_v44 = vld [vmem:[%s13100_s3 + $0x408] sm:$0xff]  ;;  %v9948_v15 = vld [vmem:[%s13100_s3 + $0x498] sm:$0xff]  ;;  %4505 = vmatpush.bf16.msra.mxu1 %v9944_v32  ;;  %v9947_v22 = vld [vmem:[%s13100_s3 + $0x490] sm:$0xff]  ;;  %v3975_v21 = vpack.c.bf16 %v11809_v8, %v10193_v5 }
 0x351   :  { %v3455_v24 = vpop.f32.mrf.mxu2  ;;  %v9940_v8 = vld [vmem:[%s13100_s3 + $0x458] sm:$0xff] }
 0x352   :  { %v3609_v14 = vpop.f32.mrf.mxu3  ;;  %v3153_v16 = vpop.f32.mrf.mxu0  ;;  %4356 = vmatpush.bf16.msrb.mxu0 %v9931_v54 }
 0x353   :  { %v3297_v0 = vpop.f32.mrf.mxu1  ;;  %v11902_v50 = vadd.f32 %v3153_v16, %v11786_v9  ;;  %v9950_v9 = vld [vmem:[%s13100_s3 + $0x4a8] sm:$0xff] }
 0x354   :  { %v3327_v10 = vadd.f32 %v3297_v0, %v11849_v55  ;;  %v9958_v55 = vld [vmem:[%s13100_s3 + $0x4e8] sm:$0xff]  ;;  %4661 = vmatpush.bf16.msrb.mxu2 %v9950_v9 }
 0x355   :  { %4815 = vmatpush.bf16.msrb.mxu3 %v9958_v55  ;;  %v3660_v55 = vld [vmem:[#allocation2 + $0x152] sm:$0xff] }
 0x356   :  { %v3482_v49 = vadd.f32 %v3452_v40, %v3327_v10  ;;  %4357 = vmatpush.bf16.msrb.mxu0 %v9930_v44  ;;  %v9954_v44 = vld [vmem:[%s13100_s3 + $0x4c8] sm:$0xff] }
 0x358   :  { %v11923_v34 = vadd.f32 %v3606_v6, %v3482_v49  ;;  %v9929_v6 = vld [vmem:[%s13100_s3 + $0x400] sm:$0xff]  ;;  %4662 = vmatpush.bf16.msrb.mxu2 %v9949_v57 }
 0x359   :  { %v3457_v38 = vpop.f32.mrf.mxu2  ;;  %v9945_v57 = vld [vmem:[%s13100_s3 + $0x480] sm:$0xff] }
 0x35a   :  { %v3611_v42 = vpop.f32.mrf.mxu3  ;;  %v3156_v36 = vpop.f32.mrf.mxu0  ;;  %4358 = vmatpush.bf16.msrb.mxu0 %v9929_v6  ;;  %v9941_v6 = vld [vmem:[%s13100_s3 + $0x460] sm:$0xff] }
 0x35b   :  { %v3300_v2 = vpop.f32.mrf.mxu1  ;;  %v11926_v40 = vadd.f32 %v3156_v36, %v11801_v27  ;;  %v4129_v27 = vpack.c.bf16 %v4119_v61, %v4118_v28  ;;  %v4121_v36 = vld [vmem:[#allocation2 + $0x140] sm:$0xff]  ;;  %v4120_v28 = vld [vmem:[#allocation2 + $0x130] sm:$0xff] }
 0x35c   :  { %v3328_v58 = vadd.f32 %v3300_v2, %v11856_v18  ;;  %v9957_v18 = vld [vmem:[%s13100_s3 + $0x4e0] sm:$0xff]  ;;  %4663 = vmatpush.bf16.msrb.mxu2 %v9948_v15 }
 0x35d   :  { %3772 = vmatmul.bf16.gmra.mxu0 %v3667_v33  ;;  %3916 = vmatmul.bf16.gmra.mxu1 %v13328_v35  ;;  %v10192_v33 = vld [vmem:[#allocation2 + $0x142] sm:$0xff] }
 0x35e   :  { %v3483_v60 = vadd.f32 %v3455_v24, %v3328_v58  ;;  %4075 = vmatmul.bf16.gmra.mxu2 %v3974_v7  ;;  %4816 = vmatpush.bf16.msrb.mxu3 %v9957_v18  ;;  %v4130_v7 = vpack.c.bf16 %v4121_v36, %v4120_v28  ;;  %v13330_v18 = vld [vmem:[#allocation54_spill] sm:$0xff] }
 0x35f   :  { %4230 = vmatmul.bf16.gmra.mxu3 %v4129_v27  ;;  %v13329_v27 = vld [vmem:[#allocation55_spill] sm:$0xff] }
 0x360   :  { %v11947_v19 = vadd.f32 %v3609_v14, %v3483_v60  ;;  %v9943_v14 = vld [vmem:[%s13100_s3 + $0x470] sm:$0xff]  ;;  %4664 = vmatpush.bf16.msrb.mxu2 %v9947_v22  ;;  %v13331_v60 = vpack.c.bf16 %v13329_v27, %v13330_v18  ;;  %v12031_v27 = vld [vmem:[#allocation2 + $0x143] sm:$0xff] }
 0x361   :  { %v3460_v13 = vpop.f32.mrf.mxu2  ;;  %4506 = vmatpush.bf16.msra.mxu1 %v9943_v14 }
 0x362   :  { %v3614_v24 = vpop.f32.mrf.mxu3  ;;  %v3158_v16 = vpop.f32.mrf.mxu0  ;;  %4817 = vmatpush.bf16.msrb.mxu3 %v9956_v56 }
 0x363   :  { %v3302_v0 = vpop.f32.mrf.mxu1  ;;  %v11953_v10 = vadd.f32 %v3158_v16, %v11805_v41  ;;  %v9942_v41 = vld [vmem:[%s13100_s3 + $0x468] sm:$0xff]  ;;  %v9939_v16 = vld [vmem:[%s13100_s3 + $0x450] sm:$0xff] }
 0x364   :  { %v3329_v54 = vadd.f32 %v3302_v0, %v11870_v11  ;;  %v9946_v11 = vld [vmem:[%s13100_s3 + $0x488] sm:$0xff] }
 0x365   :  { %4507 = vmatpush.bf16.msra.mxu1 %v9942_v41  ;;  %4665 = vmatpush.bf16.msrb.mxu2 %v9946_v11  ;;  %v4262_v41 = vld [vmem:[#allocation2 + $0x31] sm:$0xff] }
 0x366   :  { %v3484_v49 = vadd.f32 %v3457_v38, %v3329_v54  ;;  %4818 = vmatpush.bf16.msrb.mxu3 %v9955_v53  ;;  %v12010_v53 = vld [vmem:[#allocation2 + $0x154] sm:$0xff] }
 0x367   :  { %v3976_v36 = vpack.c.bf16 %v12010_v53, %v11807_v45 }
 0x368   :  { %v11971_v9 = vadd.f32 %v3611_v42, %v3484_v49  ;;  %v3668_v42 = vpack.c.bf16 %v3660_v55, %v10192_v33 }
 0x369   :  { %v3462_v61 = vpop.f32.mrf.mxu2  ;;  %4508 = vmatpush.bf16.msra.mxu1 %v9941_v6  ;;  %4666 = vmatpush.bf16.msrb.mxu2 %v9945_v57 }
 0x36a   :  { %v3616_v38 = vpop.f32.mrf.mxu3  ;;  %v3161_v2 = vpop.f32.mrf.mxu0  ;;  %4819 = vmatpush.bf16.msrb.mxu3 %v9954_v44  ;;  %v10194_v44 = vld [vmem:[#allocation2 + $0x41] sm:$0xff] }
 0x36b   :  { %v3305_v58 = vpop.f32.mrf.mxu1  ;;  %v11977_v3 = vadd.f32 %v3161_v2, %v11818_v46  ;;  %v9953_v46 = vld [vmem:[%s13100_s3 + $0x4c0] sm:$0xff] }
 0x36c   :  { %v3330_v20 = vadd.f32 %v3305_v58, %v11883_v17 }
 0x36d   :  { %3777 = vmatmul.bf16.gmra.mxu0 %v3668_v42  ;;  %3921 = vmatmul.bf16.gmra.mxu1 %v13331_v60 }
 0x36e   :  { %v3485_v17 = vadd.f32 %v3460_v13, %v3330_v20  ;;  %4080 = vmatmul.bf16.gmra.mxu2 %v3975_v21  ;;  %4820 = vmatpush.bf16.msrb.mxu3 %v9953_v46  ;;  %v13332_v20 = vld [vmem:[#allocation70_spill] sm:$0xff]  ;;  %v12029_v21 = vld [vmem:[#allocation2 + $0x153] sm:$0xff] }
 0x36f   :  { %4235 = vmatmul.bf16.gmra.mxu3 %v4130_v7  ;;  %4509 = vmatpush.bf16.msra.mxu1 %v9940_v8  ;;  %v13333_v33 = vpack.c.bf16 %v13332_v20, %v13305_v51  ;;  %v10195_v8 = vld [vmem:[#allocation2 + $0x51] sm:$0xff] }
 0x370   :  { %v11996_v30 = vadd.f32 %v3614_v24, %v3485_v17  ;;  %v9938_v24 = vld [vmem:[%s13100_s3 + $0x448] sm:$0xff]  ;;  %v10198_v20 = vld [vmem:[#allocation2 + $0x71] sm:$0xff] }
 0x371   :  { %v3465_v48 = vpop.f32.mrf.mxu2 }
 0x372   :  { %v3619_v35 = vpop.f32.mrf.mxu3  ;;  %v3163_v32 = vpop.f32.mrf.mxu0 }
 0x373   :  { %v3307_v15 = vpop.f32.mrf.mxu1  ;;  %v11999_v56 = vadd.f32 %v3163_v32, %v11821_v4  ;;  %4510 = vmatpush.bf16.msra.mxu1 %v9939_v16  ;;  %v4123_v4 = vld [vmem:[#allocation2 + $0x160] sm:$0xff] }
 0x374   :  { %v3331_v13 = vadd.f32 %v3307_v15, %v11902_v50  ;;  %v4131_v2 = vpack.c.bf16 %v4123_v4, %v11788_v59  ;;  %v10197_v32 = vld [vmem:[#allocation2 + $0x43] sm:$0xff]  ;;  %v13334_v16 = vld [vmem:[#allocation17_spill] sm:$0xff] }
 0x376   :  { %v3486_v0 = vadd.f32 %v3462_v61, %v3331_v13  ;;  %v4278_v61 = vpack.c.bf16 %v10194_v44, %v4262_v41 }
 0x377   :  { %4511 = vmatpush.bf16.msra.mxu1 %v9938_v24 }
 0x378   :  { %v12008_v54 = vadd.f32 %v3616_v38, %v3486_v0  ;;  %v9937_v38 = vld [vmem:[%s13100_s3 + $0x440] sm:$0xff]  ;;  %v13335_v0 = vld [vmem:[#allocation16_spill] sm:$0xff] }
 0x379   :  { %v3467_v14 = vpop.f32.mrf.mxu2  ;;  %v13336_v24 = vpack.c.bf16 %v13334_v16, %v13335_v0  ;;  %v12060_v16 = vld [vmem:[#allocation2 + $0x83] sm:$0xff] }
 0x37a   :  { %v3621_v22 = vpop.f32.mrf.mxu3  ;;  %v3743_v50 = vpop.f32.mrf.mxu0  ;;  %v4729_v0 = vld [vmem:[#allocation2 + $0x84] sm:$0xff] }
 0x37b   :  { %v3310_v49 = vpop.f32.mrf.mxu1  ;;  %v3783_v55 = vadd.f32 %v3743_v50, %v11830_v12  ;;  %4512 = vmatpush.bf16.msra.mxu1 %v9937_v38 }
 0x37c   :  { %v3332_v11 = vadd.f32 %v3310_v49, %v11926_v40 }
 0x37d   :  { %3926 = vmatmul.bf16.gmra.mxu1 %v13333_v33  ;;  %4359 = vmatmul.bf16.vlgmr.msrb.gmra.mxu0 %v4278_v61  ;;  %v10199_v33 = vld [vmem:[#allocation2 + $0x81] sm:$0xff] }
 0x37e   :  { %v3487_v58 = vadd.f32 %v3465_v48, %v3332_v11  ;;  %4085 = vmatmul.bf16.gmra.mxu2 %v3976_v36 }
 0x37f   :  { %4240 = vmatmul.bf16.gmra.mxu3 %v4131_v2 }
 0x380   :  { %v12023_v12 = vadd.f32 %v3619_v35, %v3487_v58  ;;  %v4570_v35 = vld [vmem:[#allocation2 + $0x33] sm:$0xff] }
 0x381   :  { %v3470_v40 = vpop.f32.mrf.mxu2  ;;  %v4586_v15 = vpack.c.bf16 %v10197_v32, %v4570_v35  ;;  %v12058_v32 = vld [vmem:[#allocation2 + $0xa1] sm:$0xff] }
 0x382   :  { %v3624_v42 = vpop.f32.mrf.mxu3  ;;  %v3745_v6 = vpop.f32.mrf.mxu0 }
 0x383   :  { %v3312_v28 = vpop.f32.mrf.mxu1  ;;  %v3784_v45 = vadd.f32 %v3745_v6, %v11833_v43  ;;  %v10196_v43 = vld [vmem:[#allocation2 + $0x61] sm:$0xff] }
 0x384   :  { %v3333_v57 = vadd.f32 %v3312_v28, %v11953_v10  ;;  %v3822_v10 = vpack.c.bf16 %v12029_v21, %v12031_v27  ;;  %v4279_v48 = vpack.c.bf16 %v10196_v43, %v10195_v8  ;;  %v10201_v28 = vld [vmem:[#allocation2 + $0x63] sm:$0xff] }
 0x386   :  { %v3488_v59 = vadd.f32 %v3467_v14, %v3333_v57 }
 0x388   :  { %v12027_v5 = vadd.f32 %v3621_v22, %v3488_v59 }
 0x389   :  { %v3472_v51 = vpop.f32.mrf.mxu2 }
 0x38a   :  { %v3626_v7 = vpop.f32.mrf.mxu3  ;;  %v3748_v17 = vpop.f32.mrf.mxu0 }
 0x38b   :  { %v3315_v46 = vpop.f32.mrf.mxu1  ;;  %v3785_v60 = vadd.f32 %v3748_v17, %v11846_v31 }
 0x38c   :  { %v3334_v18 = vadd.f32 %v3315_v46, %v11977_v3 }
 0x38d   :  { %3931 = vmatmul.bf16.gmra.mxu1 %v3822_v10  ;;  %4364 = vmatmul.bf16.gmra.mxu0 %v4279_v48 }
 0x38e   :  { %v3489_v13 = vadd.f32 %v3470_v40, %v3334_v18  ;;  %4667 = vmatmul.bf16.vlgmr.msrb.gmra.mxu2 %v4586_v15  ;;  %v4280_v40 = vpack.c.bf16 %v10199_v33, %v10198_v20 }
 0x38f   :  { %4821 = vmatmul.bf16.vlgmr.msrb.gmra.mxu3 %v13336_v24 }
 0x390   :  { %v12040_v3 = vadd.f32 %v3624_v42, %v3489_v13  ;;  %v10200_v42 = vld [vmem:[#allocation2 + $0x53] sm:$0xff] }
 0x391   :  { %v4051_v31 = vpop.f32.mrf.mxu2  ;;  %v4587_v6 = vpack.c.bf16 %v10201_v28, %v10200_v42 }
 0x392   :  { %v4206_v14 = vpop.f32.mrf.mxu3  ;;  %v3750_v4 = vpop.f32.mrf.mxu0 }
 0x393   :  { %v3317_v22 = vpop.f32.mrf.mxu1  ;;  %v3786_v50 = vadd.f32 %v3750_v4, %v11851_v52  ;;  %v13338_v52 = vld [vmem:[#allocation14_spill] sm:$0xff]  ;;  %v10202_v4 = vld [vmem:[#allocation2 + $0x91] sm:$0xff] }
 0x394   :  { %v3335_v49 = vadd.f32 %v3317_v22, %v11999_v56  ;;  %v13337_v56 = vld [vmem:[#allocation15_spill] sm:$0xff] }
 0x395   :  { %v13339_v59 = vpack.c.bf16 %v13337_v56, %v13338_v52  ;;  %v12076_v56 = vld [vmem:[#allocation2 + $0xa3] sm:$0xff] }
 0x396   :  { %v3490_v41 = vadd.f32 %v3472_v51, %v3335_v49  ;;  %v13340_v51 = vld [vmem:[#allocation31_spill] sm:$0xff]  ;;  %v4281_v49 = vpack.c.bf16 %v12058_v32, %v10202_v4 }
 0x397   :  { %v4731_v52 = vld [vmem:[#allocation2 + $0xa4] sm:$0xff] }
 0x398   :  { %v12044_v11 = vadd.f32 %v3626_v7, %v3490_v41  ;;  %v13341_v7 = vld [vmem:[#allocation30_spill] sm:$0xff]  ;;  %v4742_v41 = vpack.c.bf16 %v4729_v0, %v11837_v29 }
 0x399   :  { %v4053_v44 = vpop.f32.mrf.mxu2  ;;  %v13342_v46 = vpack.c.bf16 %v13340_v51, %v13341_v7  ;;  %v4270_v7 = vld [vmem:[#allocation2 + $0xf1] sm:$0xff] }
 0x39a   :  { %v4208_v61 = vpop.f32.mrf.mxu3  ;;  %v3753_v38 = vpop.f32.mrf.mxu0 }
 0x39b   :  { %v3897_v36 = vpop.f32.mrf.mxu1  ;;  %v3787_v2 = vadd.f32 %v3753_v38, %v11867_v26  ;;  %v13344_v38 = vld [vmem:[#allocation28_spill] sm:$0xff] }
 0x39c   :  { %v3937_v58 = vadd.f32 %v3897_v36, %v3783_v55 }
 0x39d   :  { %4369 = vmatmul.bf16.gmra.mxu0 %v4280_v40  ;;  %4513 = vmatmul.bf16.vlgmr.msra.gmra.mxu1 %v13339_v59 }
 0x39e   :  { %v4091_v57 = vadd.f32 %v4051_v31, %v3937_v58  ;;  %4672 = vmatmul.bf16.gmra.mxu2 %v4587_v6 }
 0x39f   :  { %4826 = vmatmul.bf16.gmra.mxu3 %v13342_v46 }
 0x3a0   :  { %v12053_v17 = vadd.f32 %v4206_v14, %v4091_v57 }
 0x3a1   :  { %v4056_v26 = vpop.f32.mrf.mxu2 }
 0x3a2   :  { %v4211_v55 = vpop.f32.mrf.mxu3  ;;  %v3755_v18 = vpop.f32.mrf.mxu0 }
 0x3a3   :  { %v3899_v10 = vpop.f32.mrf.mxu1  ;;  %v3788_v8 = vadd.f32 %v3755_v18, %v11878_v39  ;;  %v10203_v39 = vld [vmem:[#allocation2 + $0x73] sm:$0xff] }
 0x3a4   :  { %v3938_v43 = vadd.f32 %v3899_v10, %v3784_v45  ;;  %v4588_v45 = vpack.c.bf16 %v12060_v16, %v10203_v39 }
 0x3a6   :  { %v4092_v48 = vadd.f32 %v4053_v44, %v3938_v43  ;;  %v13346_v43 = vld [vmem:[#allocation39_spill] sm:$0xff] }
 0x3a8   :  { %v12056_v35 = vadd.f32 %v4208_v61, %v4092_v48  ;;  %v13343_v61 = vld [vmem:[#allocation29_spill] sm:$0xff]  ;;  %v13347_v48 = vld [vmem:[#allocation38_spill] sm:$0xff] }
 0x3a9   :  { %v4058_v15 = vpop.f32.mrf.mxu2  ;;  %v13345_v36 = vpack.c.bf16 %v13343_v61, %v13344_v38 }
 0x3aa   :  { %v4213_v13 = vpop.f32.mrf.mxu3  ;;  %v3758_v24 = vpop.f32.mrf.mxu0 }
 0x3ab   :  { %v3902_v31 = vpop.f32.mrf.mxu1  ;;  %v3789_v14 = vadd.f32 %v3758_v24, %v11899_v23 }
 0x3ac   :  { %v3939_v22 = vadd.f32 %v3902_v31, %v3785_v60 }
 0x3ad   :  { %4374 = vmatmul.bf16.gmra.mxu0 %v4281_v49  ;;  %4518 = vmatmul.bf16.gmra.mxu1 %v13345_v36  ;;  %v9966_v49 = vld [vmem:[%s13100_s3 + $0x528] sm:$0xff]  ;;  %v10205_v36 = vld [vmem:[#allocation2 + $0x111] sm:$0xff] }
 0x3ae   :  { %v4093_v44 = vadd.f32 %v4056_v26, %v3939_v22  ;;  %4677 = vmatmul.bf16.gmra.mxu2 %v4588_v45  ;;  %v9967_v22 = vld [vmem:[%s13100_s3 + $0x530] sm:$0xff]  ;;  %v12103_v45 = vld [vmem:[#allocation2 + $0xa2] sm:$0xff] }
 0x3af   :  { %4831 = vmatmul.bf16.gmra.mxu3 %v4742_v41 }
 0x3b0   :  { %v12069_v58 = vadd.f32 %v4211_v55, %v4093_v44  ;;  %v10204_v55 = vld [vmem:[#allocation2 + $0x101] sm:$0xff] }
 0x3b1   :  { %v4061_v23 = vpop.f32.mrf.mxu2  ;;  %v4282_v18 = vpack.c.bf16 %v10204_v55, %v4270_v7 }
 0x3b2   :  { %v4216_v60 = vpop.f32.mrf.mxu3  ;;  %v3760_v20 = vpop.f32.mrf.mxu0 }
 0x3b3   :  { %v3904_v33 = vpop.f32.mrf.mxu1  ;;  %v12072_v40 = vadd.f32 %v3760_v20, %v11923_v34  ;;  %v4589_v34 = vpack.c.bf16 %v12076_v56, %v11880_v37  ;;  %v4435_v20 = vpack.c.bf16 %v12103_v45, %v11835_v62  ;;  %v9992_v62 = vld [vmem:[%s13100_s3 + $0x5f8] sm:$0xff] }
 0x3b4   :  { %v3940_v42 = vadd.f32 %v3904_v33, %v3786_v50  ;;  %v4743_v50 = vpack.c.bf16 %v4731_v52, %v11853_v47  ;;  %v4578_v33 = vld [vmem:[#allocation2 + $0xf3] sm:$0xff]  ;;  %v13350_v52 = vld [vmem:[#allocation50_spill] sm:$0xff]  ;;  %5430 = vmatpush.bf16.msra.mxu3 %v9992_v62 }
 0x3b6   :  { %v4094_v28 = vadd.f32 %v4058_v15, %v3940_v42  ;;  %v13348_v15 = vpack.c.bf16 %v13346_v43, %v13347_v48  ;;  %v10207_v42 = vld [vmem:[#allocation2 + $0x103] sm:$0xff]  ;;  %v9963_v43 = vld [vmem:[%s13100_s3 + $0x510] sm:$0xff] }
 0x3b7   :  { %v9983_v48 = vld [vmem:[%s13100_s3 + $0x5b0] sm:$0xff] }
 0x3b8   :  { %v12074_v29 = vadd.f32 %v4213_v13, %v4094_v28  ;;  %v4590_v28 = vpack.c.bf16 %v10207_v42, %v4578_v33  ;;  %v13353_v33 = vld [vmem:[#allocation48_spill] sm:$0xff] }
 0x3b9   :  { %v4063_v6 = vpop.f32.mrf.mxu2 }
 0x3ba   :  { %v4218_v57 = vpop.f32.mrf.mxu3  ;;  %v3763_v59 = vpop.f32.mrf.mxu0 }
 0x3bb   :  { %v3907_v51 = vpop.f32.mrf.mxu1  ;;  %v12079_v46 = vadd.f32 %v3763_v59, %v11947_v19  ;;  %v9968_v19 = vld [vmem:[%s13100_s3 + $0x538] sm:$0xff] }
 0x3bc   :  { %v3941_v26 = vadd.f32 %v3907_v51, %v3787_v2  ;;  %4968 = vmatpush.bf16.msra.mxu0 %v9968_v19  ;;  %v9984_v59 = vld [vmem:[%s13100_s3 + $0x5b8] sm:$0xff] }
 0x3bd   :  { %4379 = vmatmul.bf16.gmra.mxu0 %v4282_v18  ;;  %4523 = vmatmul.bf16.gmra.mxu1 %v13348_v15  ;;  %v9964_v51 = vld [vmem:[%s13100_s3 + $0x518] sm:$0xff]  ;;  %v9991_v15 = vld [vmem:[%s13100_s3 + $0x5f0] sm:$0xff] }
 0x3be   :  { %v4095_v10 = vadd.f32 %v4061_v23, %v3941_v26  ;;  %4682 = vmatmul.bf16.gmra.mxu2 %v4589_v34  ;;  %v10206_v23 = vld [vmem:[#allocation2 + $0x121] sm:$0xff]  ;;  %5431 = vmatpush.bf16.msra.mxu3 %v9991_v15 }
 0x3bf   :  { %4836 = vmatmul.bf16.gmra.mxu3 %v4743_v50  ;;  %5276 = vmatpush.bf16.msra.mxu2 %v9984_v59  ;;  %v9988_v59 = vld [vmem:[%s13100_s3 + $0x5d8] sm:$0xff] }
 0x3c0   :  { %v12090_v2 = vadd.f32 %v4216_v60, %v4095_v10  ;;  %4969 = vmatpush.bf16.msra.mxu0 %v9967_v22  ;;  %v4283_v60 = vpack.c.bf16 %v10206_v23, %v10205_v36  ;;  %v10211_v36 = vld [vmem:[#allocation2 + $0x123] sm:$0xff] }
 0x3c1   :  { %v4066_v13 = vpop.f32.mrf.mxu2 }
 0x3c2   :  { %v4221_v0 = vpop.f32.mrf.mxu3  ;;  %v3765_v37 = vpop.f32.mrf.mxu0 }
 0x3c3   :  { %v3909_v24 = vpop.f32.mrf.mxu1  ;;  %v12093_v47 = vadd.f32 %v3765_v37, %v11971_v9  ;;  %5277 = vmatpush.bf16.msra.mxu2 %v9983_v48  ;;  %v9987_v48 = vld [vmem:[%s13100_s3 + $0x5d0] sm:$0xff] }
 0x3c4   :  { %v3942_v31 = vadd.f32 %v3909_v24, %v3788_v8  ;;  %4970 = vmatpush.bf16.msra.mxu0 %v9966_v49 }
 0x3c6   :  { %v4096_v4 = vadd.f32 %v4063_v6, %v3942_v31  ;;  %v9965_v6 = vld [vmem:[%s13100_s3 + $0x520] sm:$0xff] }
 0x3c8   :  { %v12101_v39 = vadd.f32 %v4218_v57, %v4096_v4  ;;  %4971 = vmatpush.bf16.msra.mxu0 %v9965_v6  ;;  %v13356_v6 = vld [vmem:[#allocation65_spill] sm:$0xff] }
 0x3c9   :  { %v4068_v41 = vpop.f32.mrf.mxu2 }
 0x3ca   :  { %v4223_v44 = vpop.f32.mrf.mxu3  ;;  %v3768_v61 = vpop.f32.mrf.mxu0 }
 0x3cb   :  { %v3912_v9 = vpop.f32.mrf.mxu1  ;;  %v12106_v8 = vadd.f32 %v3768_v61, %v11996_v30  ;;  %v13349_v30 = vld [vmem:[#allocation51_spill] sm:$0xff]  ;;  %v10209_v61 = vld [vmem:[#allocation2 + $0x141] sm:$0xff] }
 0x3cc   :  { %v3943_v38 = vadd.f32 %v3912_v9, %v3789_v14  ;;  %v13351_v14 = vpack.c.bf16 %v13349_v30, %v13350_v52  ;;  %4972 = vmatpush.bf16.msra.mxu0 %v9964_v51  ;;  %v9976_v30 = vld [vmem:[%s13100_s3 + $0x578] sm:$0xff] }
 0x3cd   :  { %4384 = vmatmul.bf16.gmra.mxu0 %v4283_v60  ;;  %4528 = vmatmul.bf16.gmra.mxu1 %v4435_v20  ;;  %v9981_v60 = vld [vmem:[%s13100_s3 + $0x5a0] sm:$0xff]  ;;  %v9980_v52 = vld [vmem:[%s13100_s3 + $0x598] sm:$0xff] }
 0x3ce   :  { %v4097_v57 = vadd.f32 %v4066_v13, %v3943_v38  ;;  %4687 = vmatmul.bf16.gmra.mxu2 %v4590_v28  ;;  %v9962_v13 = vld [vmem:[%s13100_s3 + $0x508] sm:$0xff]  ;;  %v10210_v38 = vld [vmem:[#allocation2 + $0x113] sm:$0xff]  ;;  %5122 = vmatpush.bf16.msrb.mxu1 %v9976_v30 }
 0x3cf   :  { %4841 = vmatmul.bf16.gmra.mxu3 %v13351_v14  ;;  %v4591_v23 = vpack.c.bf16 %v10211_v36, %v10210_v38  ;;  %v13352_v20 = vld [vmem:[#allocation49_spill] sm:$0xff]  ;;  %v13355_v28 = vld [vmem:[#allocation66_spill] sm:$0xff] }
 0x3d0   :  { %v12125_v7 = vadd.f32 %v4221_v0, %v4097_v57  ;;  %4973 = vmatpush.bf16.msra.mxu0 %v9963_v43  ;;  %v13354_v42 = vpack.c.bf16 %v13352_v20, %v13353_v33  ;;  %v13357_v57 = vpack.c.bf16 %v13355_v28, %v13356_v6  ;;  %v9979_v43 = vld [vmem:[%s13100_s3 + $0x590] sm:$0xff] }
 0x3d1   :  { %v4071_v26 = vpop.f32.mrf.mxu2  ;;  %v4736_v38 = vld [vmem:[#allocation2 + $0x134] sm:$0xff]  ;;  %v13359_v20 = vld [vmem:[#allocation63_spill] sm:$0xff] }
 0x3d2   :  { %v4226_v55 = vpop.f32.mrf.mxu3  ;;  %v3770_v18 = vpop.f32.mrf.mxu0  ;;  %v10213_v36 = vld [vmem:[#allocation2 + $0x133] sm:$0xff] }
 0x3d3   :  { %v3914_v34 = vpop.f32.mrf.mxu1  ;;  %v12128_v50 = vadd.f32 %v3770_v18, %v12008_v54  ;;  %v9982_v54 = vld [vmem:[%s13100_s3 + $0x5a8] sm:$0xff] }
 0x3d4   :  { %v3944_v10 = vadd.f32 %v3914_v34, %v12072_v40  ;;  %v9990_v40 = vld [vmem:[%s13100_s3 + $0x5e8] sm:$0xff]  ;;  %5278 = vmatpush.bf16.msra.mxu2 %v9982_v54  ;;  %4974 = vmatpush.bf16.msra.mxu0 %v9962_v13 }
 0x3d5   :  { %5432 = vmatpush.bf16.msra.mxu3 %v9990_v40  ;;  %v12202_v54 = vld [vmem:[#allocation2 + $0x161] sm:$0xff] }
 0x3d6   :  { %v4098_v19 = vadd.f32 %v4068_v41, %v3944_v10  ;;  %v10208_v41 = vld [vmem:[#allocation2 + $0x131] sm:$0xff]  ;;  %v9986_v40 = vld [vmem:[%s13100_s3 + $0x5c8] sm:$0xff] }
 0x3d7   :  { %v4284_v9 = vpack.c.bf16 %v10209_v61, %v10208_v41 }
 0x3d8   :  { %v12149_v0 = vadd.f32 %v4223_v44, %v4098_v19  ;;  %v9961_v44 = vld [vmem:[%s13100_s3 + $0x500] sm:$0xff]  ;;  %5279 = vmatpush.bf16.msra.mxu2 %v9981_v60 }
 0x3d9   :  { %v4073_v37 = vpop.f32.mrf.mxu2  ;;  %4975 = vmatpush.bf16.msra.mxu0 %v9961_v44  ;;  %v9973_v60 = vld [vmem:[%s13100_s3 + $0x560] sm:$0xff] }
 0x3da   :  { %v4228_v24 = vpop.f32.mrf.mxu3  ;;  %v3773_v31 = vpop.f32.mrf.mxu0 }
 0x3db   :  { %v3917_v22 = vpop.f32.mrf.mxu1  ;;  %v12152_v4 = vadd.f32 %v3773_v31, %v12023_v12  ;;  %v9989_v12 = vld [vmem:[%s13100_s3 + $0x5e0] sm:$0xff] }
 0x3dc   :  { %v3945_v49 = vadd.f32 %v3917_v22, %v12079_v46  ;;  %5433 = vmatpush.bf16.msra.mxu3 %v9989_v12  ;;  %5280 = vmatpush.bf16.msra.mxu2 %v9980_v52  ;;  %v4737_v31 = vld [vmem:[#allocation2 + $0x144] sm:$0xff] }
 0x3dd   :  { %4389 = vmatmul.bf16.gmra.mxu0 %v4284_v9  ;;  %4533 = vmatmul.bf16.gmra.mxu1 %v13354_v42  ;;  %v4746_v44 = vpack.c.bf16 %v4737_v31, %v4736_v38 }
 0x3de   :  { %v4099_v46 = vadd.f32 %v4071_v26, %v3945_v49  ;;  %4692 = vmatmul.bf16.gmra.mxu2 %v4591_v23  ;;  %v4592_v23 = vpack.c.bf16 %v12031_v27, %v10213_v36  ;;  %v9972_v27 = vld [vmem:[%s13100_s3 + $0x558] sm:$0xff] }
 0x3df   :  { %4846 = vmatmul.bf16.gmra.mxu3 %v13357_v57 }
 0x3e0   :  { %v12176_v14 = vadd.f32 %v4226_v55, %v4099_v46  ;;  %5434 = vmatpush.bf16.msra.mxu3 %v9988_v59  ;;  %v9975_v55 = vld [vmem:[%s13100_s3 + $0x570] sm:$0xff]  ;;  %5281 = vmatpush.bf16.msra.mxu2 %v9979_v43 }
 0x3e1   :  { %v4076_v62 = vpop.f32.mrf.mxu2  ;;  %5123 = vmatpush.bf16.msrb.mxu1 %v9975_v55  ;;  %v13358_v46 = vld [vmem:[#allocation64_spill] sm:$0xff] }
 0x3e2   :  { %v4231_v51 = vpop.f32.mrf.mxu3  ;;  %v3775_v26 = vpop.f32.mrf.mxu0  ;;  %v13360_v33 = vpack.c.bf16 %v13358_v46, %v13359_v20  ;;  %v5188_v20 = vld [vmem:[#allocation2 + $0x52] sm:$0xff] }
 0x3e3   :  { %v3919_v18 = vpop.f32.mrf.mxu1  ;;  %v12182_v34 = vadd.f32 %v3775_v26, %v12027_v5  ;;  %v9974_v5 = vld [vmem:[%s13100_s3 + $0x568] sm:$0xff] }
 0x3e4   :  { %v3946_v10 = vadd.f32 %v3919_v18, %v12093_v47  ;;  %v9978_v47 = vld [vmem:[%s13100_s3 + $0x588] sm:$0xff]  ;;  %5435 = vmatpush.bf16.msra.mxu3 %v9987_v48 }
 0x3e5   :  { %5124 = vmatpush.bf16.msrb.mxu1 %v9974_v5  ;;  %5282 = vmatpush.bf16.msra.mxu2 %v9978_v47  ;;  %v12244_v48 = vld [vmem:[#allocation2 + $0x164] sm:$0xff] }
 0x3e6   :  { %v4100_v15 = vadd.f32 %v4073_v37, %v3946_v10  ;;  %v4880_v10 = vld [vmem:[#allocation2 + $0x50] sm:$0xff]  ;;  %v4879_v5 = vld [vmem:[#allocation2 + $0x40] sm:$0xff]  ;;  %v4747_v31 = vpack.c.bf16 %v12244_v48, %v12010_v53 }
 0x3e8   :  { %v12200_v19 = vadd.f32 %v4228_v24, %v4100_v15  ;;  %v10212_v24 = vld [vmem:[#allocation2 + $0x151] sm:$0xff]  ;;  %5436 = vmatpush.bf16.msra.mxu3 %v9986_v40 }
 0x3e9   :  { %v4078_v13 = vpop.f32.mrf.mxu2  ;;  %v4285_v9 = vpack.c.bf16 %v12202_v54, %v10212_v24  ;;  %5125 = vmatpush.bf16.msrb.mxu1 %v9973_v60  ;;  %v13362_v24 = vld [vmem:[#allocation76_spill] sm:$0xff] }
 0x3ea   :  { %v4233_v37 = vpop.f32.mrf.mxu3  ;;  %v3778_v22 = vpop.f32.mrf.mxu0 }
 0x3eb   :  { %v3922_v49 = vpop.f32.mrf.mxu1  ;;  %v12208_v41 = vadd.f32 %v3778_v22, %v12040_v3  ;;  %v9977_v3 = vld [vmem:[%s13100_s3 + $0x580] sm:$0xff] }
 0x3ec   :  { %v3947_v61 = vadd.f32 %v3922_v49, %v12106_v8  ;;  %v9985_v8 = vld [vmem:[%s13100_s3 + $0x5c0] sm:$0xff]  ;;  %5283 = vmatpush.bf16.msra.mxu2 %v9977_v3 }
 0x3ed   :  { %4394 = vmatmul.bf16.gmra.mxu0 %v4285_v9  ;;  %4538 = vmatmul.bf16.gmra.mxu1 %v13360_v33  ;;  %v9969_v22 = vld [vmem:[%s13100_s3 + $0x540] sm:$0xff] }
 0x3ee   :  { %v4101_v12 = vadd.f32 %v4076_v62, %v3947_v61  ;;  %4697 = vmatmul.bf16.gmra.mxu2 %v4592_v23  ;;  %5437 = vmatpush.bf16.msra.mxu3 %v9985_v8  ;;  %v9971_v62 = vld [vmem:[%s13100_s3 + $0x550] sm:$0xff]  ;;  %v13361_v61 = vld [vmem:[#allocation77_spill] sm:$0xff]  ;;  %v12264_v3 = vld [vmem:[#allocation2 + $0x162] sm:$0xff] }
 0x3ef   :  { %4851 = vmatmul.bf16.gmra.mxu3 %v4746_v44  ;;  %5126 = vmatpush.bf16.msrb.mxu1 %v9972_v27  ;;  %v13363_v9 = vpack.c.bf16 %v13361_v61, %v13362_v24  ;;  %v4882_v8 = vld [vmem:[#allocation2 + $0x70] sm:$0xff] }
 0x3f0   :  { %v12228_v42 = vadd.f32 %v4231_v51, %v4101_v12  ;;  %v9970_v51 = vld [vmem:[%s13100_s3 + $0x548] sm:$0xff]  ;;  %v5190_v61 = vld [vmem:[#allocation2 + $0x72] sm:$0xff] }
 0x3f1   :  { %v4081_v28 = vpop.f32.mrf.mxu2 }
 0x3f2   :  { %v4236_v6 = vpop.f32.mrf.mxu3  ;;  %v3780_v57 = vpop.f32.mrf.mxu0 }
 0x3f3   :  { %v3924_v30 = vpop.f32.mrf.mxu1  ;;  %v12231_v52 = vadd.f32 %v3780_v57, %v12044_v11  ;;  %5127 = vmatpush.bf16.msrb.mxu1 %v9971_v62  ;;  %v12242_v11 = vld [vmem:[#allocation2 + $0x163] sm:$0xff] }
 0x3f4   :  { %v3948_v59 = vadd.f32 %v3924_v30, %v12128_v50 }
 0x3f6   :  { %v4102_v26 = vadd.f32 %v4078_v13, %v3948_v59  ;;  %v4895_v13 = vpack.c.bf16 %v4880_v10, %v4879_v5  ;;  %v5187_v59 = vld [vmem:[#allocation2 + $0x42] sm:$0xff] }
 0x3f7   :  { %5128 = vmatpush.bf16.msrb.mxu1 %v9970_v51  ;;  %v5203_v62 = vpack.c.bf16 %v5188_v20, %v5187_v59  ;;  %v13364_v51 = vld [vmem:[#allocation23_spill] sm:$0xff]  ;;  %v13365_v10 = vld [vmem:[#allocation22_spill] sm:$0xff]  ;;  %v13371_v20 = vld [vmem:[#allocation36_spill] sm:$0xff] }
 0x3f8   :  { %v12240_v18 = vadd.f32 %v4233_v37, %v4102_v26  ;;  %v4593_v37 = vpack.c.bf16 %v12242_v11, %v12029_v21 }
 0x3f9   :  { %v4083_v55 = vpop.f32.mrf.mxu2 }
 0x3fa   :  { %v4238_v43 = vpop.f32.mrf.mxu3  ;;  %v4360_v15 = vpop.f32.mrf.mxu0 }
 0x3fb   :  { %v3927_v50 = vpop.f32.mrf.mxu1  ;;  %v4400_v40 = vadd.f32 %v4360_v15, %v12053_v17  ;;  %5129 = vmatpush.bf16.msrb.mxu1 %v9969_v22 }
 0x3fc   :  { %v3949_v47 = vadd.f32 %v3927_v50, %v12152_v4 }
 0x3fd   :  { %4543 = vmatmul.bf16.gmra.mxu1 %v13363_v9  ;;  %4976 = vmatmul.bf16.vlgmr.msra.gmra.mxu0 %v4895_v13 }
 0x3fe   :  { %v4103_v49 = vadd.f32 %v4081_v28, %v3949_v47  ;;  %4702 = vmatmul.bf16.gmra.mxu2 %v4593_v37  ;;  %v12266_v28 = vld [vmem:[#allocation2 + $0x152] sm:$0xff] }
 0x3ff   :  { %4856 = vmatmul.bf16.gmra.mxu3 %v4747_v31  ;;  %v4884_v31 = vld [vmem:[#allocation2 + $0x90] sm:$0xff] }
 0x400   :  { %v12258_v17 = vadd.f32 %v4236_v6, %v4103_v49  ;;  %v4881_v6 = vld [vmem:[#allocation2 + $0x60] sm:$0xff] }
 0x401   :  { %v4086_v4 = vpop.f32.mrf.mxu2  ;;  %v4896_v30 = vpack.c.bf16 %v4882_v8, %v4881_v6 }
 0x402   :  { %v4241_v21 = vpop.f32.mrf.mxu3  ;;  %v4362_v36 = vpop.f32.mrf.mxu0 }
 0x403   :  { %v3929_v38 = vpop.f32.mrf.mxu1  ;;  %v4401_v23 = vadd.f32 %v4362_v36, %v12056_v35  ;;  %v4439_v35 = vpack.c.bf16 %v12264_v3, %v12266_v28 }
 0x404   :  { %v3950_v53 = vadd.f32 %v3929_v38, %v12182_v34 }
 0x406   :  { %v4104_v44 = vadd.f32 %v4083_v55, %v3950_v53  ;;  %v13366_v55 = vpack.c.bf16 %v13364_v51, %v13365_v10  ;;  %v5189_v53 = vld [vmem:[#allocation2 + $0x62] sm:$0xff] }
 0x408   :  { %v12262_v60 = vadd.f32 %v4238_v43, %v4104_v44  ;;  %v5204_v44 = vpack.c.bf16 %v5190_v61, %v5189_v53  ;;  %v5191_v61 = vld [vmem:[#allocation2 + $0x82] sm:$0xff] }
 0x409   :  { %v4088_v12 = vpop.f32.mrf.mxu2 }
 0x40a   :  { %v4243_v46 = vpop.f32.mrf.mxu3  ;;  %v4365_v27 = vpop.f32.mrf.mxu0 }
 0x40b   :  { %v3932_v33 = vpop.f32.mrf.mxu1  ;;  %v4402_v34 = vadd.f32 %v4365_v27, %v12069_v58 }
 0x40c   :  { %v3951_v57 = vadd.f32 %v3932_v33, %v12208_v41 }
 0x40d   :  { %4548 = vmatmul.bf16.gmra.mxu1 %v4439_v35  ;;  %4981 = vmatmul.bf16.gmra.mxu0 %v4896_v30 }
 0x40e   :  { %v4105_v26 = vadd.f32 %v4086_v4, %v3951_v57  ;;  %5284 = vmatmul.bf16.vlgmr.msra.gmra.mxu2 %v5203_v62  ;;  %v4883_v4 = vld [vmem:[#allocation2 + $0x80] sm:$0xff] }
 0x40f   :  { %5438 = vmatmul.bf16.vlgmr.msra.gmra.mxu3 %v13366_v55  ;;  %v4897_v36 = vpack.c.bf16 %v4884_v31, %v4883_v4  ;;  %v5192_v55 = vld [vmem:[#allocation2 + $0x92] sm:$0xff] }
 0x410   :  { %v12275_v43 = vadd.f32 %v4241_v21, %v4105_v26  ;;  %v4886_v26 = vld [vmem:[#allocation2 + $0xb0] sm:$0xff] }
 0x411   :  { %v4668_v50 = vpop.f32.mrf.mxu2 }
 0x412   :  { %v4822_v41 = vpop.f32.mrf.mxu3  ;;  %v4367_v58 = vpop.f32.mrf.mxu0 }
 0x413   :  { %v3934_v15 = vpop.f32.mrf.mxu1  ;;  %v4403_v47 = vadd.f32 %v4367_v58, %v12074_v29  ;;  %v13368_v29 = vld [vmem:[#allocation20_spill] sm:$0xff] }
 0x414   :  { %v3952_v5 = vadd.f32 %v3934_v15, %v12231_v52  ;;  %v13367_v52 = vld [vmem:[#allocation21_spill] sm:$0xff] }
 0x416   :  { %v4106_v13 = vadd.f32 %v4088_v12, %v3952_v5  ;;  %v13369_v12 = vpack.c.bf16 %v13367_v52, %v13368_v29  ;;  %v4885_v5 = vld [vmem:[#allocation2 + $0xa0] sm:$0xff]  ;;  %v4888_v52 = vld [vmem:[#allocation2 + $0x110] sm:$0xff] }
 0x417   :  { %v4898_v31 = vpack.c.bf16 %v4886_v26, %v4885_v5  ;;  %v13376_v26 = vld [vmem:[#allocation41_spill] sm:$0xff]  ;;  %v9999_v5 = vld [vmem:[%s13100_s3 + $0x630] sm:$0xff] }
 0x418   :  { %v12279_v37 = vadd.f32 %v4243_v46, %v4106_v13  ;;  %v13370_v46 = vld [vmem:[#allocation37_spill] sm:$0xff] }
 0x419   :  { %v4670_v22 = vpop.f32.mrf.mxu2  ;;  %v13372_v33 = vpack.c.bf16 %v13370_v46, %v13371_v20  ;;  %v5194_v46 = vld [vmem:[#allocation2 + $0xb2] sm:$0xff] }
 0x41a   :  { %v4824_v49 = vpop.f32.mrf.mxu3  ;;  %v4370_v24 = vpop.f32.mrf.mxu0  ;;  %v5348_v20 = vld [vmem:[#allocation2 + $0xb3] sm:$0xff] }
 0x41b   :  { %v4514_v9 = vpop.f32.mrf.mxu1  ;;  %v4404_v21 = vadd.f32 %v4370_v24, %v12090_v2  ;;  %v5205_v24 = vpack.c.bf16 %v5192_v55, %v5191_v61  ;;  %v10000_v55 = vld [vmem:[%s13100_s3 + $0x638] sm:$0xff] }
 0x41c   :  { %v4554_v38 = vadd.f32 %v4514_v9, %v4400_v40  ;;  %5584 = vmatpush.bf16.msrb.mxu0 %v10000_v55  ;;  %v5198_v55 = vld [vmem:[#allocation2 + $0x132] sm:$0xff] }
 0x41d   :  { %4986 = vmatmul.bf16.gmra.mxu0 %v4897_v36  ;;  %5130 = vmatmul.bf16.vlgmr.msrb.gmra.mxu1 %v13369_v12 }
 0x41e   :  { %v4708_v8 = vadd.f32 %v4668_v50, %v4554_v38  ;;  %5289 = vmatmul.bf16.gmra.mxu2 %v5204_v44  ;;  %v5346_v50 = vld [vmem:[#allocation2 + $0x93] sm:$0xff] }
 0x41f   :  { %5443 = vmatmul.bf16.gmra.mxu3 %v13372_v33 }
 0x420   :  { %v12288_v27 = vadd.f32 %v4822_v41, %v4708_v8  ;;  %5585 = vmatpush.bf16.msrb.mxu0 %v9999_v5 }
 0x421   :  { %v4673_v6 = vpop.f32.mrf.mxu2 }
 0x422   :  { %v4827_v57 = vpop.f32.mrf.mxu3  ;;  %v4372_v2 = vpop.f32.mrf.mxu0 }
 0x423   :  { %v4516_v40 = vpop.f32.mrf.mxu1  ;;  %v4405_v35 = vadd.f32 %v4372_v2, %v12101_v39  ;;  %v5359_v39 = vpack.c.bf16 %v5346_v50, %v12060_v16 }
 0x424   :  { %v4555_v30 = vadd.f32 %v4516_v40, %v4401_v23 }
 0x426   :  { %v4709_v59 = vadd.f32 %v4670_v22, %v4555_v30  ;;  %v13373_v22 = vld [vmem:[#allocation35_spill] sm:$0xff] }
 0x428   :  { %v12291_v62 = vadd.f32 %v4824_v49, %v4709_v59  ;;  %v13374_v49 = vld [vmem:[#allocation34_spill] sm:$0xff] }
 0x429   :  { %v4675_v51 = vpop.f32.mrf.mxu2  ;;  %v13375_v9 = vpack.c.bf16 %v13373_v22, %v13374_v49  ;;  %v5196_v49 = vld [vmem:[#allocation2 + $0x112] sm:$0xff] }
 0x42a   :  { %v4829_v10 = vpop.f32.mrf.mxu3  ;;  %v4375_v15 = vpop.f32.mrf.mxu0 }
 0x42b   :  { %v4519_v58 = vpop.f32.mrf.mxu1  ;;  %v4406_v41 = vadd.f32 %v4375_v15, %v12125_v7 }
 0x42c   :  { %v4556_v13 = vadd.f32 %v4519_v58, %v4402_v34 }
 0x42d   :  { %4991 = vmatmul.bf16.gmra.mxu0 %v4898_v31  ;;  %5135 = vmatmul.bf16.gmra.mxu1 %v13375_v9  ;;  %v9998_v31 = vld [vmem:[%s13100_s3 + $0x628] sm:$0xff] }
 0x42e   :  { %v4710_v23 = vadd.f32 %v4673_v6, %v4556_v13  ;;  %5294 = vmatmul.bf16.gmra.mxu2 %v5205_v24  ;;  %v4890_v24 = vld [vmem:[#allocation2 + $0x130] sm:$0xff]  ;;  %5586 = vmatpush.bf16.msrb.mxu0 %v9998_v31  ;;  %v13382_v31 = vld [vmem:[#allocation57_spill] sm:$0xff] }
 0x42f   :  { %5448 = vmatmul.bf16.gmra.mxu3 %v5359_v39  ;;  %v5040_v39 = vld [vmem:[#allocation2 + $0xb1] sm:$0xff] }
 0x430   :  { %v12298_v4 = vadd.f32 %v4827_v57, %v4710_v23  ;;  %v4887_v57 = vld [vmem:[#allocation2 + $0x100] sm:$0xff] }
 0x431   :  { %v4678_v38 = vpop.f32.mrf.mxu2  ;;  %v4899_v30 = vpack.c.bf16 %v4888_v52, %v4887_v57  ;;  %v9997_v52 = vld [vmem:[%s13100_s3 + $0x620] sm:$0xff] }
 0x432   :  { %v4832_v36 = vpop.f32.mrf.mxu3  ;;  %v4377_v53 = vpop.f32.mrf.mxu0  ;;  %5587 = vmatpush.bf16.msrb.mxu0 %v9997_v52 }
 0x433   :  { %v4521_v7 = vpop.f32.mrf.mxu1  ;;  %v12301_v34 = vadd.f32 %v4377_v53, %v12149_v0  ;;  %v5206_v0 = vpack.c.bf16 %v5194_v46, %v12103_v45  ;;  %v13380_v46 = vld [vmem:[#allocation58_spill] sm:$0xff] }
 0x434   :  { %v4557_v44 = vadd.f32 %v4521_v7, %v4403_v47  ;;  %v5360_v47 = vpack.c.bf16 %v5348_v20, %v12076_v56  ;;  %v5052_v7 = vpack.c.bf16 %v5040_v39, %v12058_v32 }
 0x436   :  { %v4711_v8 = vadd.f32 %v4675_v51, %v4557_v44  ;;  %v13377_v51 = vld [vmem:[#allocation40_spill] sm:$0xff]  ;;  %v5195_v44 = vld [vmem:[#allocation2 + $0x102] sm:$0xff] }
 0x438   :  { %v12303_v16 = vadd.f32 %v4829_v10, %v4711_v8  ;;  %v13378_v10 = vpack.c.bf16 %v13376_v26, %v13377_v51  ;;  %v5207_v8 = vpack.c.bf16 %v5196_v49, %v5195_v44  ;;  %v4892_v51 = vld [vmem:[#allocation2 + $0x150] sm:$0xff] }
 0x439   :  { %v4680_v29 = vpop.f32.mrf.mxu2 }
 0x43a   :  { %v4834_v12 = vpop.f32.mrf.mxu3  ;;  %v4380_v33 = vpop.f32.mrf.mxu0 }
 0x43b   :  { %v4524_v6 = vpop.f32.mrf.mxu1  ;;  %v12306_v2 = vadd.f32 %v4380_v33, %v12176_v14 }
 0x43c   :  { %v4558_v40 = vadd.f32 %v4524_v6, %v4404_v21 }
 0x43d   :  { %4996 = vmatmul.bf16.gmra.mxu0 %v4899_v30  ;;  %5140 = vmatmul.bf16.gmra.mxu1 %v13378_v10 }
 0x43e   :  { %v4712_v59 = vadd.f32 %v4678_v38, %v4558_v40  ;;  %5299 = vmatmul.bf16.gmra.mxu2 %v5206_v0  ;;  %v9995_v0 = vld [vmem:[%s13100_s3 + $0x610] sm:$0xff] }
 0x43f   :  { %5453 = vmatmul.bf16.gmra.mxu3 %v5360_v47 }
 0x440   :  { %v12316_v14 = vadd.f32 %v4832_v36, %v4712_v59  ;;  %v9994_v59 = vld [vmem:[%s13100_s3 + $0x608] sm:$0xff] }
 0x441   :  { %v4683_v21 = vpop.f32.mrf.mxu2 }
 0x442   :  { %v4837_v50 = vpop.f32.mrf.mxu3  ;;  %v4382_v45 = vpop.f32.mrf.mxu0 }
 0x443   :  { %v4526_v15 = vpop.f32.mrf.mxu1  ;;  %v12319_v56 = vadd.f32 %v4382_v45, %v12200_v19 }
 0x444   :  { %v4559_v58 = vadd.f32 %v4526_v15, %v4405_v35  ;;  %v4889_v35 = vld [vmem:[#allocation2 + $0x120] sm:$0xff] }
 0x445   :  { %v4900_v53 = vpack.c.bf16 %v4890_v24, %v4889_v35  ;;  %v13383_v24 = vld [vmem:[#allocation56_spill] sm:$0xff] }
 0x446   :  { %v4713_v13 = vadd.f32 %v4680_v29, %v4559_v58  ;;  %v5197_v58 = vld [vmem:[#allocation2 + $0x122] sm:$0xff]  ;;  %v13384_v39 = vpack.c.bf16 %v13382_v31, %v13383_v24 }
 0x447   :  { %v5208_v5 = vpack.c.bf16 %v5198_v55, %v5197_v58  ;;  %v5202_v58 = vld [vmem:[#allocation2 + $0x172] sm:$0xff]  ;;  %v5495_v24 = vld [vmem:[#allocation2 + $0x44] sm:$0xff] }
 0x448   :  { %v12327_v61 = vadd.f32 %v4834_v12, %v4713_v13  ;;  %v13379_v12 = vld [vmem:[#allocation59_spill] sm:$0xff]  ;;  %v9993_v13 = vld [vmem:[%s13100_s3 + $0x600] sm:$0xff] }
 0x449   :  { %v4685_v23 = vpop.f32.mrf.mxu2  ;;  %v13381_v20 = vpack.c.bf16 %v13379_v12, %v13380_v46  ;;  %v4893_v12 = vld [vmem:[#allocation2 + $0x160] sm:$0xff] }
 0x44a   :  { %v4839_v22 = vpop.f32.mrf.mxu3  ;;  %v4385_v19 = vpop.f32.mrf.mxu0 }
 0x44b   :  { %v4529_v9 = vpop.f32.mrf.mxu1  ;;  %v12330_v38 = vadd.f32 %v4385_v19, %v12228_v42  ;;  %v9996_v42 = vld [vmem:[%s13100_s3 + $0x618] sm:$0xff]  ;;  %s7226_s3 = sshll.u32 %s13107_s10, 4  ;;  %s7227_s3 = int_to_ptr.hbm [resolvable:$true] %s7226_s3 }
 0x44c   :  { %v4560_v36 = vadd.f32 %v4529_v9, %v4406_v41  ;;  %5588 = vmatpush.bf16.msrb.mxu0 %v9996_v42  ;;  %v5199_v42 = vld [vmem:[#allocation2 + $0x142] sm:$0xff] }
 0x44d   :  { %5001 = vmatmul.bf16.gmra.mxu0 %v4900_v53  ;;  %5145 = vmatmul.bf16.gmra.mxu1 %v5052_v7  ;;  %v4894_v53 = vld [vmem:[#allocation2 + $0x170] sm:$0xff] }
 0x44e   :  { %v4714_v29 = vadd.f32 %v4683_v21, %v4560_v36  ;;  %5304 = vmatmul.bf16.gmra.mxu2 %v5207_v8  ;;  %v5354_v8 = vld [vmem:[#allocation2 + $0x153] sm:$0xff] }
 0x44f   :  { %5458 = vmatmul.bf16.gmra.mxu3 %v13381_v20  ;;  %v4902_v20 = vpack.c.bf16 %v4894_v53, %v4893_v12 }
 0x450   :  { %v12342_v32 = vadd.f32 %v4837_v50, %v4714_v29  ;;  %5589 = vmatpush.bf16.msrb.mxu0 %v9995_v0  ;;  %v4891_v50 = vld [vmem:[#allocation2 + $0x140] sm:$0xff]  ;;  %v13389_v0 = vld [vmem:[#allocation71_spill] sm:$0xff] }
 0x451   :  { %v12344_v41 = vpop.f32.mrf.mxu2  ;;  %v4901_v15 = vpack.c.bf16 %v4892_v51, %v4891_v50  ;;  %v5496_v50 = vld [vmem:[#allocation2 + $0x54] sm:$0xff] }
 0x452   :  { %v12346_v33 = vpop.f32.mrf.mxu3  ;;  %v4387_v6 = vpop.f32.mrf.mxu0 }
 0x453   :  { %v4531_v57 = vpop.f32.mrf.mxu1  ;;  %v12349_v40 = vadd.f32 %v4387_v6, %v12240_v18  ;;  %v5353_v6 = vld [vmem:[#allocation2 + $0x143] sm:$0xff] }
 0x454   :  { %v4561_v30 = vadd.f32 %v4531_v57, %v12301_v34  ;;  %5590 = vmatpush.bf16.msrb.mxu0 %v9994_v59  ;;  %v5209_v57 = vpack.c.bf16 %v12266_v28, %v5199_v42 }
 0x456   :  { %v4715_v47 = vadd.f32 %v4685_v23, %v4561_v30  ;;  %v13385_v23 = vld [vmem:[#allocation75_spill] sm:$0xff]  ;;  %v5363_v30 = vpack.c.bf16 %v5354_v8, %v5353_v6 }
 0x458   :  { %v12358_v26 = vadd.f32 %v4839_v22, %v4715_v47  ;;  %v13386_v22 = vld [vmem:[#allocation74_spill] sm:$0xff]  ;;  %5591 = vmatpush.bf16.msrb.mxu0 %v9993_v13 }
 0x459   :  { %v12360_v10 = vpop.f32.mrf.mxu2  ;;  %v13387_v49 = vpack.c.bf16 %v13385_v23, %v13386_v22  ;;  %v5511_v22 = vpack.c.bf16 %v5496_v50, %v5495_v24 }
 0x45a   :  { %v12362_v18 = vpop.f32.mrf.mxu3  ;;  %v4390_v34 = vpop.f32.mrf.mxu0 }
 0x45b   :  { %v12364_v21 = vpop.f32.mrf.mxu1  ;;  %v4412_v45 = vadd.f32 %v4390_v34, %v12258_v17 }
 0x45d   :  { %5006 = vmatmul.bf16.gmra.mxu0 %v4901_v15  ;;  %5150 = vmatmul.bf16.gmra.mxu1 %v13384_v39 }
 0x45e   :  { %5309 = vmatmul.bf16.gmra.mxu2 %v5208_v5  ;;  %v5356_v5 = vld [vmem:[#allocation2 + $0x173] sm:$0xff] }
 0x45f   :  { %5463 = vmatmul.bf16.gmra.mxu3 %v13387_v49  ;;  %v5210_v49 = vpack.c.bf16 %v5202_v58, %v12264_v3  ;;  %v5048_v3 = vld [vmem:[#allocation2 + $0x171] sm:$0xff] }
 0x460   :  { %v5500_v58 = vld [vmem:[#allocation2 + $0x94] sm:$0xff] }
 0x461   :  { %v12376_v17 = vpop.f32.mrf.mxu2 }
 0x462   :  { %v12378_v19 = vpop.f32.mrf.mxu3  ;;  %v4392_v9 = vpop.f32.mrf.mxu0 }
 0x463   :  { %v12380_v35 = vpop.f32.mrf.mxu1  ;;  %v12383_v36 = vadd.f32 %v4392_v9, %v12262_v60  ;;  %v13388_v60 = vld [vmem:[#allocation72_spill] sm:$0xff]  ;;  %v5364_v9 = vpack.c.bf16 %v5356_v5, %v12242_v11 }
 0x464   :  { %v13390_v47 = vpack.c.bf16 %v13388_v60, %v13389_v0  ;;  %v5498_v11 = vld [vmem:[#allocation2 + $0x74] sm:$0xff] }
 0x469   :  { %v12385_v7 = vpop.f32.mrf.mxu2 }
 0x46a   :  { %v12387_v44 = vpop.f32.mrf.mxu3  ;;  %v4395_v52 = vpop.f32.mrf.mxu0 }
 0x46b   :  { %v12389_v29 = vpop.f32.mrf.mxu1  ;;  %v4414_v46 = vadd.f32 %v4395_v52, %v12275_v43 }
 0x46d   :  { %5011 = vmatmul.bf16.gmra.mxu0 %v4902_v20  ;;  %5155 = vmatmul.bf16.gmra.mxu1 %v13390_v47 }
 0x46e   :  { %5314 = vmatmul.bf16.gmra.mxu2 %v5209_v57 }
 0x46f   :  { %5468 = vmatmul.bf16.gmra.mxu3 %v5363_v30  ;;  %v5056_v30 = vpack.c.bf16 %v5048_v3, %v12202_v54 }
 0x471   :  { %v4698_v59 = vpop.f32.mrf.mxu2 }
 0x472   :  { %v4852_v51 = vpop.f32.mrf.mxu3  ;;  %v4397_v55 = vpop.f32.mrf.mxu0 }
 0x473   :  { %v12396_v34 = vpop.f32.mrf.mxu1  ;;  %v12399_v43 = vadd.f32 %v4397_v55, %v12279_v37 }
 0x479   :  { %v12401_v15 = vpop.f32.mrf.mxu2 }
 0x47a   :  { %v12403_v28 = vpop.f32.mrf.mxu3  ;;  %v4977_v31 = vpop.f32.mrf.mxu0 }
 0x47b   :  { %v4544_v13 = vpop.f32.mrf.mxu1  ;;  %v5017_v23 = vadd.f32 %v4977_v31, %v12288_v27 }
 0x47c   :  { %v4566_v39 = vadd.f32 %v4544_v13, %v4412_v45  ;;  %v5499_v13 = vld [vmem:[#allocation2 + $0x84] sm:$0xff] }
 0x47d   :  { %5160 = vmatmul.bf16.gmra.mxu1 %v5055_v63  ;;  %5592 = vmatmul.bf16.vlgmr.msrb.gmra.mxu0 %v5511_v22  ;;  %v5497_v63 = vld [vmem:[#allocation2 + $0x64] sm:$0xff] }
 0x47e   :  { %v4720_v37 = vadd.f32 %v4698_v59, %v4566_v39  ;;  %5319 = vmatmul.bf16.gmra.mxu2 %v5210_v49  ;;  %v5512_v60 = vpack.c.bf16 %v5498_v11, %v5497_v63  ;;  %v5513_v39 = vpack.c.bf16 %v5500_v58, %v5499_v13 }
 0x47f   :  { %5473 = vmatmul.bf16.gmra.mxu3 %v5364_v9 }
 0x480   :  { %v12411_v53 = vadd.f32 %v4852_v51, %v4720_v37 }
 0x481   :  { %v4703_v8 = vpop.f32.mrf.mxu2 }
 0x482   :  { %v4857_v52 = vpop.f32.mrf.mxu3  ;;  %v4979_v27 = vpop.f32.mrf.mxu0 }
 0x483   :  { %v12413_v45 = vpop.f32.mrf.mxu1  ;;  %v12416_v12 = vadd.f32 %v4979_v27, %v12291_v62  ;;  %v5502_v27 = vld [vmem:[#allocation2 + $0xb4] sm:$0xff] }
 0x489   :  { %v12418_v20 = vpop.f32.mrf.mxu2 }
 0x48a   :  { %v12420_v42 = vpop.f32.mrf.mxu3  ;;  %v4982_v25 = vpop.f32.mrf.mxu0 }
 0x48b   :  { %v4549_v1 = vpop.f32.mrf.mxu1  ;;  %v5019_v57 = vadd.f32 %v4982_v25, %v12298_v4 }
 0x48c   :  { %v4568_v6 = vadd.f32 %v4549_v1, %v4414_v46 }
 0x48d   :  { %5165 = vmatmul.bf16.gmra.mxu1 %v5056_v30  ;;  %5597 = vmatmul.bf16.gmra.mxu0 %v5512_v60 }
 0x48e   :  { %v4722_v0 = vadd.f32 %v4703_v8, %v4568_v6 }
 0x490   :  { %v12424_v62 = vadd.f32 %v4857_v52, %v4722_v0 }
 0x491   :  { %v5285_v47 = vpop.f32.mrf.mxu2 }
 0x492   :  { %v5439_v59 = vpop.f32.mrf.mxu3  ;;  %v4984_v55 = vpop.f32.mrf.mxu0 }
 0x493   :  { %v12426_v51 = vpop.f32.mrf.mxu1  ;;  %v12429_v50 = vadd.f32 %v4984_v55, %v12303_v16 }
 0x499   :  { %v12431_v46 = vpop.f32.mrf.mxu2 }
 0x49a   :  { %v12433_v4 = vpop.f32.mrf.mxu3  ;;  %v4987_v54 = vpop.f32.mrf.mxu0 }
 0x49b   :  { %v5131_v5 = vpop.f32.mrf.mxu1  ;;  %v5021_v31 = vadd.f32 %v4987_v54, %v12316_v14  ;;  %v5501_v14 = vld [vmem:[#allocation2 + $0xa4] sm:$0xff] }
 0x49c   :  { %v5171_v24 = vadd.f32 %v5131_v5, %v5017_v23  ;;  %v5514_v6 = vpack.c.bf16 %v5502_v27, %v5501_v14  ;;  %v5504_v5 = vld [vmem:[#allocation2 + $0x114] sm:$0xff] }
 0x49d   :  { %5602 = vmatmul.bf16.gmra.mxu0 %v5513_v39 }
 0x49e   :  { %v5325_v22 = vadd.f32 %v5285_v47, %v5171_v24  ;;  %v5503_v24 = vld [vmem:[#allocation2 + $0x104] sm:$0xff] }
 0x4a0   :  { %v12436_v49 = vadd.f32 %v5439_v59, %v5325_v22 }
 0x4a1   :  { %v5290_v9 = vpop.f32.mrf.mxu2 }
 0x4a2   :  { %v5444_v37 = vpop.f32.mrf.mxu3  ;;  %v4989_v16 = vpop.f32.mrf.mxu0 }
 0x4a3   :  { %v12438_v8 = vpop.f32.mrf.mxu1  ;;  %v12441_v52 = vadd.f32 %v4989_v16, %v12327_v61  ;;  %v4562_v61 = vadd.f32 %v12364_v21, %v12306_v2 }
 0x4a5   :  { %v4716_v58 = vadd.f32 %v12344_v41, %v4562_v61  ;;  %v4564_v41 = vadd.f32 %v12389_v29, %v12330_v38 }
 0x4a7   :  { %v4718_v27 = vadd.f32 %v12376_v17, %v4564_v41 }
 0x4a9   :  { %v12443_v3 = vpop.f32.mrf.mxu2  ;;  %v4872_v14 = vadd.f32 %v12378_v19, %v4718_v27 }
 0x4aa   :  { %v4992_v11 = vpop.f32.mrf.mxu0  ;;  %v12445_v23 = vpop.f32.mrf.mxu3 }
 0x4ab   :  { %v5136_v1 = vpop.f32.mrf.mxu1  ;;  %v5023_v25 = vadd.f32 %v4992_v11, %v12342_v32  ;;  %v4870_v32 = vadd.f32 %v12346_v33, %v4716_v58 }
 0x4ac   :  { %v5173_v63 = vadd.f32 %v5136_v1, %v5019_v57  ;;  %v5506_v1 = vld [vmem:[#allocation2 + $0x134] sm:$0xff] }
 0x4ad   :  { %5607 = vmatmul.bf16.gmra.mxu0 %v5514_v6 }
 0x4ae   :  { %v5327_v30 = vadd.f32 %v5290_v9, %v5173_v63  ;;  %v5515_v9 = vpack.c.bf16 %v5504_v5, %v5503_v24  ;;  %v5508_v24 = vld [vmem:[#allocation2 + $0x154] sm:$0xff] }
 0x4b0   :  { %v12448_v60 = vadd.f32 %v5444_v37, %v5327_v30  ;;  %v5505_v30 = vld [vmem:[#allocation2 + $0x124] sm:$0xff] }
 0x4b1   :  { %v5295_v59 = vpop.f32.mrf.mxu2 }
 0x4b2   :  { %v4994_v0 = vpop.f32.mrf.mxu0  ;;  %v5449_v54 = vpop.f32.mrf.mxu3 }
 0x4b3   :  { %v12452_v47 = vpop.f32.mrf.mxu1  ;;  %v5024_v55 = vadd.f32 %v4994_v0, %v12358_v26 }
 0x4b9   :  { %v12457_v37 = vpop.f32.mrf.mxu2 }
 0x4ba   :  { %v4997_v57 = vpop.f32.mrf.mxu0  ;;  %v12459_v21 = vpop.f32.mrf.mxu3 }
 0x4bb   :  { %v5141_v13 = vpop.f32.mrf.mxu1  ;;  %v5025_v39 = vadd.f32 %v4997_v57, %v4870_v32 }
 0x4bc   :  { %v5175_v22 = vadd.f32 %v5141_v13, %v5021_v31 }
 0x4bd   :  { %5612 = vmatmul.bf16.gmra.mxu0 %v5515_v9  ;;  %v5507_v9 = vld [vmem:[#allocation2 + $0x144] sm:$0xff] }
 0x4be   :  { %v5329_v2 = vadd.f32 %v5295_v59, %v5175_v22  ;;  %v5516_v59 = vpack.c.bf16 %v5506_v1, %v5505_v30  ;;  %v5517_v41 = vpack.c.bf16 %v5508_v24, %v5507_v9 }
 0x4c0   :  { %v12461_v16 = vadd.f32 %v5449_v54, %v5329_v2 }
 0x4c1   :  { %v5300_v11 = vpop.f32.mrf.mxu2 }
 0x4c2   :  { %v12465_v26 = vpop.f32.mrf.mxu0  ;;  %v5454_v31 = vpop.f32.mrf.mxu3 }
 0x4c3   :  { %v5143_v33 = vpop.f32.mrf.mxu1 }
 0x4c9   :  { %v5302_v29 = vpop.f32.mrf.mxu2 }
 0x4ca   :  { %v5002_v63 = vpop.f32.mrf.mxu0  ;;  %v5456_v32 = vpop.f32.mrf.mxu3 }
 0x4cb   :  { %v5146_v6 = vpop.f32.mrf.mxu1  ;;  %v12469_v61 = vadd.f32 %v5002_v63, %v4872_v14  ;;  %v4569_v63 = vadd.f32 %v12426_v51, %v12399_v43 }
 0x4cc   :  { %v5177_v0 = vadd.f32 %v5146_v6, %v5023_v25 }
 0x4cd   :  { %5617 = vmatmul.bf16.gmra.mxu0 %v5516_v59 }
 0x4ce   :  { %v5331_v58 = vadd.f32 %v5300_v11, %v5177_v0 }
 0x4d0   :  { %v5485_v38 = vadd.f32 %v5454_v31, %v5331_v58 }
 0x4d1   :  { %v5305_v27 = vpop.f32.mrf.mxu2 }
 0x4d2   :  { %v12471_v54 = vpop.f32.mrf.mxu0  ;;  %v5459_v1 = vpop.f32.mrf.mxu3 }
 0x4d3   :  { %v5148_v5 = vpop.f32.mrf.mxu1 }
 0x4d4   :  { %v5178_v17 = vadd.f32 %v5148_v5, %v5024_v55  ;;  %v5510_v55 = vld [vmem:[#allocation2 + $0x174] sm:$0xff] }
 0x4d6   :  { %v5332_v57 = vadd.f32 %v5302_v29, %v5178_v17  ;;  %v5172_v29 = vadd.f32 %v12438_v8, %v12416_v12 }
 0x4d8   :  { %v5486_v13 = vadd.f32 %v5456_v32, %v5332_v57  ;;  %v5326_v43 = vadd.f32 %v12431_v46, %v5172_v29  ;;  %v5176_v46 = vadd.f32 %v5143_v33, %v12441_v52 }
 0x4da   :  { %v5007_v19 = vpop.f32.mrf.mxu0 }
 0x4db   :  { %v5151_v22 = vpop.f32.mrf.mxu1  ;;  %v12474_v2 = vadd.f32 %v5007_v19, %v12411_v53  ;;  %v5518_v53 = vpack.c.bf16 %v5510_v55, %v12244_v48  ;;  %v5330_v19 = vadd.f32 %v12457_v37, %v5176_v46 }
 0x4dc   :  { %v5179_v25 = vadd.f32 %v5151_v22, %v5025_v39  ;;  %v4723_v39 = vadd.f32 %v12418_v20, %v4569_v63  ;;  %v5174_v20 = vadd.f32 %v12452_v47, %v12429_v50 }
 0x4dd   :  { %5622 = vmatmul.bf16.gmra.mxu0 %v5517_v41  ;;  %v5484_v50 = vadd.f32 %v12459_v21, %v5330_v19  ;;  %v12516_v41 = vpop.f32.mrf.mxu3 }
 0x4de   :  { %v5333_v11 = vadd.f32 %v5305_v27, %v5179_v25  ;;  %v4877_v0 = vadd.f32 %v12420_v42, %v4723_v39  ;;  %v5328_v12 = vadd.f32 %v12443_v3, %v5174_v20  ;;  %v4565_v20 = vadd.f32 %v12396_v34, %v12349_v40 }
 0x4e0   :  { %v5487_v31 = vadd.f32 %v5459_v1, %v5333_v11  ;;  %v5482_v8 = vadd.f32 %v12445_v23, %v5328_v12  ;;  %v12514_v23 = vpop.f32.mrf.mxu2  ;;  %v4563_v12 = vadd.f32 %v12380_v35, %v12319_v56  ;;  %v4719_v46 = vadd.f32 %v12385_v7, %v4565_v20 }
 0x4e2   :  { %v12476_v14 = vpop.f32.mrf.mxu0  ;;  %v4873_v40 = vadd.f32 %v12387_v44, %v4719_v46  ;;  %v8909_v46 = vld [vmem:[%s13102_s5 + $0x30] sm:$0xff] }
 0x4e3   :  { %v5153_v22 = vpop.f32.mrf.mxu1 }
 0x4e4   :  { %v5028_v56 = vadd.f32 %v12471_v54, %v4873_v40  ;;  %v12549_v54 = vld [vmem:[%s13101_s4] ss:$0 sm:$0xff]  ;;  %v10015_v40 = vld [vmem:[%s13103_s6 + $0x70] sm:$0xff] }
 0x4e5   :  { %v12522_v21 = vpop.f32.mrf.mxu3 }
 0x4e8   :  { %v5310_v33 = vpop.f32.mrf.mxu2 }
 0x4ea   :  { %v5012_v6 = vpop.f32.mrf.mxu0 }
 0x4eb   :  { %v12481_v30 = vadd.f32 %v5012_v6, %v12424_v62  ;;  %v5480_v62 = vadd.f32 %v12433_v4, %v5326_v43 }
 0x4ed   :  { %5627 = vmatmul.bf16.gmra.mxu0 %v5518_v53 }
 0x4f0   :  { %v5312_v55 = vpop.f32.mrf.mxu2 }
 0x4f2   :  { %v5014_v59 = vpop.f32.mrf.mxu0 }
 0x4f3   :  { %v5032_v58 = vadd.f32 %v5014_v59, %v4877_v0 }
 0x4f8   :  { %v5315_v53 = vpop.f32.mrf.mxu2 }
 0x4fa   :  { %v5593_v5 = vpop.f32.mrf.mxu0 }
 0x4fb   :  { %v12489_v17 = vadd.f32 %v5593_v5, %v12436_v49 }
 0x500   :  { %v5317_v59 = vpop.f32.mrf.mxu2 }
 0x502   :  { %v5595_v51 = vpop.f32.mrf.mxu0 }
 0x503   :  { %v12493_v48 = vadd.f32 %v5595_v51, %v5480_v62 }
 0x508   :  { %v5320_v62 = vpop.f32.mrf.mxu2 }
 0x50a   :  { %v5598_v42 = vpop.f32.mrf.mxu0 }
 0x50b   :  { %v12498_v32 = vadd.f32 %v5598_v42, %v12448_v60 }
 0x512   :  { %v5600_v49 = vpop.f32.mrf.mxu0 }
 0x513   :  { %v12502_v57 = vadd.f32 %v5600_v49, %v5482_v8 }
 0x51a   :  { %v5603_v4 = vpop.f32.mrf.mxu0 }
 0x51b   :  { %v12506_v24 = vadd.f32 %v5603_v4, %v12461_v16  ;;  %v5156_v16 = vpop.f32.mrf.mxu1 }
 0x522   :  { %v5605_v47 = vpop.f32.mrf.mxu0 }
 0x523   :  { %v12510_v60 = vadd.f32 %v5605_v47, %v5484_v50  ;;  %v5158_v11 = vpop.f32.mrf.mxu1  ;;  %v4717_v50 = vadd.f32 %v12360_v10, %v4563_v12  ;;  %v5181_v10 = vadd.f32 %v5156_v16, %v12469_v61  ;;  %v8908_v12 = vld [vmem:[%s13102_s5 + $0x28] sm:$0xff] }
 0x52a   :  { %v5608_v3 = vpop.f32.mrf.mxu0 }
 0x52b   :  { %v12512_v9 = vadd.f32 %v5608_v3, %v5485_v38  ;;  %v5466_v38 = vpop.f32.mrf.mxu3  ;;  %v5161_v63 = vpop.f32.mrf.mxu1 }
 0x52c   :  { %v5183_v35 = vadd.f32 %v5161_v63, %v12474_v2  ;;  %v5335_v63 = vadd.f32 %v5310_v33, %v5181_v10  ;;  %v10004_v10 = vld [vmem:[%s13103_s6 + $0x18] sm:$0xff] }
 0x52e   :  { %v5489_v33 = vadd.f32 %v12522_v21, %v5335_v63  ;;  %v10001_v63 = vld [vmem:[%s13103_s6] sm:$0xff] }
 0x532   :  { %v5610_v25 = vpop.f32.mrf.mxu0 }
 0x533   :  { %v12518_v52 = vadd.f32 %v5610_v25, %v5486_v13  ;;  %v5469_v39 = vpop.f32.mrf.mxu3  ;;  %v5163_v0 = vpop.f32.mrf.mxu1  ;;  %v5182_v25 = vadd.f32 %v5158_v11, %v5028_v56  ;;  %v10024_v56 = vld [vmem:[%s13103_s6 + $0xb8] sm:$0xff] }
 0x535   :  { %v5336_v20 = vadd.f32 %v5312_v55, %v5182_v25  ;;  %v10005_v25 = vld [vmem:[%s13103_s6 + $0x20] sm:$0xff] }
 0x537   :  { %v5490_v16 = vadd.f32 %v5466_v38, %v5336_v20  ;;  %v10011_v20 = vld [vmem:[%s13103_s6 + $0x50] sm:$0xff] }
 0x53a   :  { %v5613_v27 = vpop.f32.mrf.mxu0 }
 0x53b   :  { %v12520_v37 = vadd.f32 %v5613_v27, %v5487_v31  ;;  %v5471_v5 = vpop.f32.mrf.mxu3  ;;  %v5166_v43 = vpop.f32.mrf.mxu1  ;;  %v4567_v31 = vadd.f32 %v12413_v45, %v12383_v36  ;;  %v5337_v27 = vadd.f32 %v5315_v53, %v5183_v35  ;;  %v10014_v35 = vld [vmem:[%s13103_s6 + $0x68] sm:$0xff] }
 0x53c   :  { %v5185_v36 = vadd.f32 %v5166_v43, %v12481_v30 }
 0x53d   :  { %v4721_v42 = vadd.f32 %v12401_v15, %v4567_v31  ;;  %v5322_v15 = vpop.f32.mrf.mxu2 }
 0x53e   :  { %v5339_v3 = vadd.f32 %v5320_v62, %v5185_v36  ;;  %v8910_v36 = vld [vmem:[%s13102_s5 + $0x38] sm:$0xff] }
 0x53f   :  { %v4875_v4 = vadd.f32 %v12403_v28, %v4721_v42  ;;  %v4871_v28 = vadd.f32 %v12362_v18, %v4717_v50  ;;  %v5658_v42 = vadd.f32 %v12549_v54, %v12510_v60  ;;  %v5654_v60 = vadd.f32 %v12549_v54, %v12493_v48  ;;  %v8911_v48 = vld [vmem:[%s13102_s5 + $0x40] sm:$0xff]  ;;  %v10008_v50 = vld [vmem:[%s13103_s6 + $0x38] sm:$0xff] }
 0x541   :  { %v5030_v19 = vadd.f32 %v12476_v14, %v4875_v4  ;;  %v5026_v30 = vadd.f32 %v12465_v26, %v4871_v28  ;;  %v8913_v4 = vld [vmem:[%s13102_s5 + $0x50] sm:$0xff]  ;;  %v10013_v28 = vld [vmem:[%s13103_s6 + $0x60] sm:$0xff] }
 0x542   :  { %v12524_v1 = vpop.f32.mrf.mxu0 }
 0x543   :  { %v5474_v8 = vpop.f32.mrf.mxu3  ;;  %v5168_v49 = vpop.f32.mrf.mxu1  ;;  %v5184_v34 = vadd.f32 %v5163_v0, %v5030_v19  ;;  %v5180_v0 = vadd.f32 %v5153_v22, %v5026_v30  ;;  %v5672_v19 = vld [vmem:[%s13102_s5 + $0x18] sm:$0xff]  ;;  %v10022_v30 = vld [vmem:[%s13103_s6 + $0xa8] sm:$0xff] }
 0x544   :  { %v5186_v45 = vadd.f32 %v5168_v49, %v5032_v58  ;;  %v5493_v43 = vadd.f32 %v5474_v8, %v5339_v3  ;;  %v8912_v8 = vld [vmem:[%s13102_s5 + $0x48] sm:$0xff]  ;;  %v5671_v49 = vld [vmem:[%s13102_s5 + $0x10] sm:$0xff] }
 0x545   :  { %v5338_v14 = vadd.f32 %v5317_v59, %v5184_v34  ;;  %v5491_v59 = vadd.f32 %v5469_v39, %v5337_v27  ;;  %v5334_v61 = vadd.f32 %v12514_v23, %v5180_v0  ;;  %v10007_v34 = vld [vmem:[%s13103_s6 + $0x30] sm:$0xff]  ;;  %v10006_v3 = vld [vmem:[%s13103_s6 + $0x28] sm:$0xff]  ;;  %v10021_v27 = vld [vmem:[%s13103_s6 + $0xa0] sm:$0xff] }
 0x546   :  { %v5340_v7 = vadd.f32 %v5322_v15, %v5186_v45  ;;  %v8914_v45 = vld [vmem:[%s13102_s5 + $0x58] sm:$0xff]  ;;  %v8915_v15 = vld [vmem:[%s13102_s5 + $0x60] sm:$0xff] }
 0x547   :  { %v5492_v2 = vadd.f32 %v5471_v5, %v5338_v14  ;;  %v5488_v23 = vadd.f32 %v12516_v41, %v5334_v61  ;;  %v5660_v5 = vadd.f32 %v12549_v54, %v12518_v52  ;;  %v5656_v52 = vadd.f32 %v12549_v54, %v12502_v57  ;;  %v5669_v57 = vld [vmem:[%s13102_s5] sm:$0xff]  ;;  %v8916_v14 = vld [vmem:[%s13102_s5 + $0x68] sm:$0xff]  ;;  %v8918_v0 = vld [vmem:[%s13102_s5 + $0x78] sm:$0xff] }
 0x548   :  { %v10032_v61 = vld [vmem:[%s13103_s6 + $0xf8] sm:$0xff] }
 0x549   :  { %v5642_v21 = vadd.f32 %v12524_v1, %v5488_v23  ;;  %v10030_v23 = vld [vmem:[%s13103_s6 + $0xe8] sm:$0xff] }
 0x54a   :  { %v12526_v6 = vpop.f32.mrf.mxu0 }
 0x54b   :  { %v5476_v58 = vpop.f32.mrf.mxu3  ;;  %v5643_v38 = vadd.f32 %v12526_v6, %v5489_v33  ;;  %v5662_v1 = vadd.f32 %v12549_v54, %v5642_v21  ;;  %v5661_v6 = vadd.f32 %v12549_v54, %v12520_v37  ;;  %v5657_v37 = vadd.f32 %v12549_v54, %v12506_v24  ;;  %v10031_v33 = vld [vmem:[%s13103_s6 + $0xf0] sm:$0xff]  ;;  %v10037_v21 = vld [vmem:[%s13103_s6 + $0x120] sm:$0xff] }
 0x54c   :  { %v5494_v44 = vadd.f32 %v5476_v58, %v5340_v7  ;;  %v5653_v24 = vadd.f32 %v12549_v54, %v12489_v17  ;;  %v5670_v17 = vld [vmem:[%s13102_s5 + $0x8] sm:$0xff]  ;;  %v10023_v7 = vld [vmem:[%s13103_s6 + $0xb0] sm:$0xff]  ;;  %v10012_v58 = vld [vmem:[%s13103_s6 + $0x58] sm:$0xff] }
 0x54d   :  { %v12584_v41 = vadd.f32 %v12549_v54, %v5643_v38  ;;  %v10046_v38 = vld [vmem:[%s13103_s6 + $0x168] sm:$0xff] }
 0x552   :  { %v5620_v13 = vpop.f32.mrf.mxu0 }
 0x553   :  { %v5644_v53 = vadd.f32 %v5620_v13, %v5490_v16  ;;  %v10048_v16 = vld [vmem:[%s13103_s6 + $0x178] sm:$0xff] }
 0x555   :  { %v12578_v13 = vadd.f32 %v12549_v54, %v5644_v53  ;;  %v10047_v53 = vld [vmem:[%s13103_s6 + $0x170] sm:$0xff] }
 0x55a   :  { %v5623_v29 = vpop.f32.mrf.mxu0 }
 0x55b   :  { %v5645_v22 = vadd.f32 %v5623_v29, %v5491_v59  ;;  %v10040_v59 = vld [vmem:[%s13103_s6 + $0x138] sm:$0xff] }
 0x55d   :  { %v12571_v29 = vadd.f32 %v12549_v54, %v5645_v22  ;;  %v10039_v22 = vld [vmem:[%s13103_s6 + $0x130] sm:$0xff] }
 0x562   :  { %v5625_v51 = vpop.f32.mrf.mxu0 }
 0x563   :  { %v5646_v26 = vadd.f32 %v5625_v51, %v5492_v2  ;;  %v5659_v51 = vadd.f32 %v12549_v54, %v12512_v9  ;;  %v5655_v9 = vadd.f32 %v12549_v54, %v12498_v32  ;;  %v8907_v32 = vld [vmem:[%s13102_s5 + $0x20] sm:$0xff]  ;;  %v10002_v2 = vld [vmem:[%s13103_s6 + $0x8] sm:$0xff] }
 0x565   :  { %v12563_v39 = vadd.f32 %v12549_v54, %v5646_v26  ;;  %v10009_v26 = vld [vmem:[%s13103_s6 + $0x40] sm:$0xff] }
 0x56a   :  { %v5628_v47 = vpop.f32.mrf.mxu0 }
 0x56b   :  { %v5647_v18 = vadd.f32 %v5628_v47, %v5493_v43  ;;  %v10016_v47 = vld [vmem:[%s13103_s6 + $0x78] sm:$0xff]  ;;  %v8917_v43 = vld [vmem:[%s13102_s5 + $0x70] sm:$0xff] }
 0x56d   :  { %v12556_v55 = vadd.f32 %v12549_v54, %v5647_v18  ;;  %v10010_v18 = vld [vmem:[%s13103_s6 + $0x48] sm:$0xff] }
 0x572   :  { %v5630_v31 = vpop.f32.mrf.mxu0 }
 0x573   :  { %v5648_v11 = vadd.f32 %v5630_v31, %v5494_v44  ;;  %v10020_v44 = vld [vmem:[%s13103_s6 + $0x98] sm:$0xff]  ;;  %v10003_v31 = vld [vmem:[%s13103_s6 + $0x10] sm:$0xff] }
 0x575   :  { %v12552_v62 = vadd.f32 %v12549_v54, %v5648_v11  ;;  %v10019_v54 = vld [vmem:[%s13103_s6 + $0x90] sm:$0xff]  ;;  %v10018_v11 = vld [vmem:[%s13103_s6 + $0x88] sm:$0xff] }
 0x577   :  { %5673 = vmatpush.msra.mxu1 %v12552_v62  ;;  %5707 = vmatpush.msrb.mxu2 %v12552_v62 }
 0x578   :  { %5745 = vmatpush.msrb.mxu3 %v12552_v62 }
 0x579   :  { %5674 = vmatpush.msra.mxu1 %v12556_v55  ;;  %5708 = vmatpush.msrb.mxu2 %v12556_v55 }
 0x57a   :  { %5746 = vmatpush.msrb.mxu3 %v12556_v55 }
 0x57b   :  { %5675 = vmatpush.msra.mxu1 %v12563_v39  ;;  %5709 = vmatpush.msrb.mxu2 %v12563_v39 }
 0x57c   :  { %5747 = vmatpush.msrb.mxu3 %v12563_v39 }
 0x57d   :  { %5676 = vmatpush.msra.mxu1 %v12571_v29  ;;  %5710 = vmatpush.msrb.mxu2 %v12571_v29 }
 0x57e   :  { %5748 = vmatpush.msrb.mxu3 %v12571_v29 }
 0x57f   :  { %5677 = vmatpush.msra.mxu1 %v12578_v13  ;;  %5711 = vmatpush.msrb.mxu2 %v12578_v13 }
 0x580   :  { %5749 = vmatpush.msrb.mxu3 %v12578_v13 }
 0x581   :  { %5678 = vmatpush.msra.mxu1 %v12584_v41  ;;  %5712 = vmatpush.msrb.mxu2 %v12584_v41 }
 0x582   :  { %5750 = vmatpush.msrb.mxu3 %v12584_v41 }
 0x583   :  { %5679 = vmatpush.msra.mxu1 %v5662_v1  ;;  %5713 = vmatpush.msrb.mxu2 %v5662_v1 }
 0x584   :  { %5751 = vmatpush.msrb.mxu3 %v5662_v1 }
 0x585   :  { %5680 = vmatpush.msra.mxu1 %v5661_v6  ;;  %5714 = vmatpush.msrb.mxu2 %v5661_v6 }
 0x586   :  { %5752 = vmatpush.msrb.mxu3 %v5661_v6 }
 0x587   :  { %5681 = vmatpush.msra.mxu1 %v5660_v5  ;;  %5715 = vmatpush.msrb.mxu2 %v5660_v5 }
 0x588   :  { %5753 = vmatpush.msrb.mxu3 %v5660_v5 }
 0x589   :  { %5682 = vmatpush.msra.mxu1 %v5659_v51  ;;  %5716 = vmatpush.msrb.mxu2 %v5659_v51 }
 0x58a   :  { %5754 = vmatpush.msrb.mxu3 %v5659_v51 }
 0x58b   :  { %5683 = vmatpush.msra.mxu1 %v5658_v42  ;;  %5717 = vmatpush.msrb.mxu2 %v5658_v42 }
 0x58c   :  { %5755 = vmatpush.msrb.mxu3 %v5658_v42 }
 0x58d   :  { %5684 = vmatpush.msra.mxu1 %v5657_v37  ;;  %5718 = vmatpush.msrb.mxu2 %v5657_v37 }
 0x58e   :  { %5756 = vmatpush.msrb.mxu3 %v5657_v37 }
 0x58f   :  { %5685 = vmatpush.msra.mxu1 %v5656_v52  ;;  %5719 = vmatpush.msrb.mxu2 %v5656_v52 }
 0x590   :  { %5757 = vmatpush.msrb.mxu3 %v5656_v52 }
 0x591   :  { %5686 = vmatpush.msra.mxu1 %v5655_v9  ;;  %5720 = vmatpush.msrb.mxu2 %v5655_v9 }
 0x592   :  { %5758 = vmatpush.msrb.mxu3 %v5655_v9 }
 0x593   :  { %5687 = vmatpush.msra.mxu1 %v5654_v60  ;;  %5721 = vmatpush.msrb.mxu2 %v5654_v60 }
 0x594   :  { %5759 = vmatpush.msrb.mxu3 %v5654_v60 }
 0x595   :  { %5688 = vmatpush.msra.mxu1 %v5653_v24  ;;  %5722 = vmatpush.msrb.mxu2 %v5653_v24 }
 0x596   :  { %5760 = vmatpush.msrb.mxu3 %v5653_v24  ;;  %5689 = vmatmul.f32.vlgmr.msra.gmra.mxu1 %v5669_v57  ;;  %v10043_v57 = vld [vmem:[%s13103_s6 + $0x150] sm:$0xff] }
 0x597   :  { %5783 = vmatpush.msrb.mxu1 %v12552_v62  ;;  %5723 = vmatmul.f32.vlgmr.msrb.gmra.mxu2 %v8907_v32  ;;  %v10017_v62 = vld [vmem:[%s13103_s6 + $0x80] sm:$0xff]  ;;  %v10034_v32 = vld [vmem:[%s13103_s6 + $0x108] sm:$0xff] }
 0x598   :  { %5761 = vmatmul.f32.vlgmr.msrb.gmra.mxu3 %v8911_v48  ;;  %5905 = vmatpush.bf16.msra.mxu2 %v10016_v47  ;;  %v10066_v48 = vld [vmem:[%s13103_s6 + $0x208] sm:$0xff] }
 0x599   :  { %5784 = vmatpush.msrb.mxu1 %v12556_v55  ;;  %5966 = vmatpush.bf16.msra.mxu3 %v10008_v50  ;;  %v10072_v55 = vld [vmem:[%s13103_s6 + $0x238] sm:$0xff]  ;;  %v10102_v47 = vld [vmem:[%s13103_s6 + $0x328] sm:$0xff] }
 0x59a   :  { %6531 = vmatpush.bf16.msra.mxu0 %v10072_v55  ;;  %v10062_v55 = vld [vmem:[%s13103_s6 + $0x1e8] sm:$0xff] }
 0x59b   :  { %5785 = vmatpush.msrb.mxu1 %v12563_v39  ;;  %v10038_v39 = vld [vmem:[%s13103_s6 + $0x128] sm:$0xff] }
 0x59c   :  { %5906 = vmatpush.bf16.msra.mxu2 %v10015_v40 }
 0x59d   :  { %5786 = vmatpush.msrb.mxu1 %v12571_v29  ;;  %5967 = vmatpush.bf16.msra.mxu3 %v10007_v34  ;;  %v10071_v29 = vld [vmem:[%s13103_s6 + $0x230] sm:$0xff]  ;;  %v10101_v34 = vld [vmem:[%s13103_s6 + $0x320] sm:$0xff] }
 0x59e   :  { %5692 = vmatmul.f32.gmra.mxu1 %v5670_v17  ;;  %6532 = vmatpush.bf16.msra.mxu0 %v10071_v29  ;;  %v10026_v17 = vld [vmem:[%s13103_s6 + $0xc8] sm:$0xff]  ;;  %v10061_v29 = vld [vmem:[%s13103_s6 + $0x1e0] sm:$0xff] }
 0x59f   :  { %5787 = vmatpush.msrb.mxu1 %v12578_v13  ;;  %5726 = vmatmul.f32.gmra.mxu2 %v8908_v12  ;;  %v10070_v13 = vld [vmem:[%s13103_s6 + $0x228] sm:$0xff] }
 0x5a0   :  { %5764 = vmatmul.f32.gmra.mxu3 %v8912_v8  ;;  %5907 = vmatpush.bf16.msra.mxu2 %v10014_v35  ;;  %v10042_v12 = vld [vmem:[%s13103_s6 + $0x148] sm:$0xff]  ;;  %v10033_v8 = vld [vmem:[%s13103_s6 + $0x100] sm:$0xff] }
 0x5a1   :  { %5788 = vmatpush.msrb.mxu1 %v12584_v41  ;;  %5968 = vmatpush.bf16.msra.mxu3 %v10006_v3  ;;  %v10029_v41 = vld [vmem:[%s13103_s6 + $0xe0] sm:$0xff]  ;;  %v10100_v3 = vld [vmem:[%s13103_s6 + $0x318] sm:$0xff] }
 0x5a2   :  { %6533 = vmatpush.bf16.msra.mxu0 %v10070_v13 }
 0x5a3   :  { %5789 = vmatpush.msrb.mxu1 %v5662_v1  ;;  %v10045_v1 = vld [vmem:[%s13103_s6 + $0x160] sm:$0xff] }
 0x5a4   :  { %5908 = vmatpush.bf16.msra.mxu2 %v10013_v28 }
 0x5a5   :  { %5790 = vmatpush.msrb.mxu1 %v5661_v6  ;;  %5969 = vmatpush.bf16.msra.mxu3 %v10005_v25  ;;  %v10036_v6 = vld [vmem:[%s13103_s6 + $0x118] sm:$0xff]  ;;  %v10099_v25 = vld [vmem:[%s13103_s6 + $0x310] sm:$0xff] }
 0x5a6   :  { %5695 = vmatmul.f32.gmra.mxu1 %v5671_v49 }
 0x5a7   :  { %5791 = vmatpush.msrb.mxu1 %v5660_v5  ;;  %5729 = vmatmul.f32.gmra.mxu2 %v8909_v46  ;;  %v10028_v5 = vld [vmem:[%s13103_s6 + $0xd8] sm:$0xff]  ;;  %v10025_v46 = vld [vmem:[%s13103_s6 + $0xc0] sm:$0xff] }
 0x5a8   :  { %5767 = vmatmul.f32.gmra.mxu3 %v8913_v4  ;;  %5909 = vmatpush.bf16.msra.mxu2 %v10012_v58  ;;  %v10041_v4 = vld [vmem:[%s13103_s6 + $0x140] sm:$0xff] }
 0x5a9   :  { %5792 = vmatpush.msrb.mxu1 %v5659_v51  ;;  %5970 = vmatpush.bf16.msra.mxu3 %v10004_v10  ;;  %v10044_v51 = vld [vmem:[%s13103_s6 + $0x158] sm:$0xff] }
 0x5ab   :  { %5793 = vmatpush.msrb.mxu1 %v5658_v42  ;;  %v10069_v42 = vld [vmem:[%s13103_s6 + $0x220] sm:$0xff] }
 0x5ac   :  { %5910 = vmatpush.bf16.msra.mxu2 %v10011_v20  ;;  %6534 = vmatpush.bf16.msra.mxu0 %v10069_v42  ;;  %v10080_v20 = vld [vmem:[%s13103_s6 + $0x278] sm:$0xff] }
 0x5ad   :  { %5794 = vmatpush.msrb.mxu1 %v5657_v37  ;;  %5971 = vmatpush.bf16.msra.mxu3 %v10003_v31  ;;  %v10035_v37 = vld [vmem:[%s13103_s6 + $0x110] sm:$0xff]  ;;  %v10056_v31 = vld [vmem:[%s13103_s6 + $0x1b8] sm:$0xff] }
 0x5ae   :  { %5698 = vmatmul.f32.gmra.mxu1 %v5672_v19  ;;  %v10065_v19 = vld [vmem:[%s13103_s6 + $0x200] sm:$0xff] }
 0x5af   :  { %5795 = vmatpush.msrb.mxu1 %v5656_v52  ;;  %5732 = vmatmul.f32.gmra.mxu2 %v8910_v36  ;;  %v10068_v52 = vld [vmem:[%s13103_s6 + $0x218] sm:$0xff] }
 0x5b0   :  { %5770 = vmatmul.f32.gmra.mxu3 %v8914_v45  ;;  %5911 = vmatpush.bf16.msra.mxu2 %v10010_v18  ;;  %v10104_v36 = vld [vmem:[%s13103_s6 + $0x338] sm:$0xff]  ;;  %v10103_v45 = vld [vmem:[%s13103_s6 + $0x330] sm:$0xff]  ;;  %v10097_v18 = vld [vmem:[%s13103_s6 + $0x300] sm:$0xff] }
 0x5b1   :  { %5796 = vmatpush.msrb.mxu1 %v5655_v9  ;;  %5972 = vmatpush.bf16.msra.mxu3 %v10002_v2 }
 0x5b2   :  { %6535 = vmatpush.bf16.msra.mxu0 %v10068_v52  ;;  %v10052_v52 = vld [vmem:[%s13103_s6 + $0x198] sm:$0xff] }
 0x5b3   :  { %5797 = vmatpush.msrb.mxu1 %v5654_v60  ;;  %v10067_v60 = vld [vmem:[%s13103_s6 + $0x210] sm:$0xff] }
 0x5b4   :  { %5912 = vmatpush.bf16.msra.mxu2 %v10009_v26 }
 0x5b5   :  { %5798 = vmatpush.msrb.mxu1 %v5653_v24  ;;  %5973 = vmatpush.bf16.msra.mxu3 %v10001_v63  ;;  %v10027_v24 = vld [vmem:[%s13103_s6 + $0xd0] sm:$0xff] }
 0x5b6   :  { %5799 = vmatmul.f32.vlgmr.msrb.gmra.mxu1 %v8915_v15  ;;  %6536 = vmatpush.bf16.msra.mxu0 %v10067_v60 }
 0x5b7   :  { %6046 = vmatpush.bf16.msra.mxu1 %v10024_v56 }
 0x5b8   :  { %6127 = vmatpush.bf16.msrb.mxu2 %v10032_v61  ;;  %v10079_v61 = vld [vmem:[%s13103_s6 + $0x270] sm:$0xff] }
 0x5b9   :  { %6207 = vmatpush.bf16.msrb.mxu3 %v10040_v59 }
 0x5ba   :  { %6537 = vmatpush.bf16.msra.mxu0 %v10066_v48 }
 0x5bb   :  { %6047 = vmatpush.bf16.msra.mxu1 %v10023_v7 }
 0x5bc   :  { %6128 = vmatpush.bf16.msrb.mxu2 %v10031_v33 }
 0x5bd   :  { %6208 = vmatpush.bf16.msrb.mxu3 %v10039_v22 }
 0x5be   :  { %5802 = vmatmul.f32.gmra.mxu1 %v8916_v14  ;;  %6538 = vmatpush.bf16.msra.mxu0 %v10065_v19  ;;  %v10074_v19 = vld [vmem:[%s13103_s6 + $0x248] sm:$0xff] }
 0x5bf   :  { %6048 = vmatpush.bf16.msra.mxu1 %v10022_v30 }
 0x5c0   :  { %6129 = vmatpush.bf16.msrb.mxu2 %v10030_v23 }
 0x5c1   :  { %6209 = vmatpush.bf16.msrb.mxu3 %v10038_v39  ;;  %v10078_v39 = vld [vmem:[%s13103_s6 + $0x268] sm:$0xff] }
 0x5c2   :  { %6855 = vmatpush.bf16.msrb.mxu0 %v10104_v36 }
 0x5c3   :  { %6049 = vmatpush.bf16.msra.mxu1 %v10021_v27  ;;  %v10098_v27 = vld [vmem:[%s13103_s6 + $0x308] sm:$0xff] }
 0x5c4   :  { %6130 = vmatpush.bf16.msrb.mxu2 %v10029_v41  ;;  %v10053_v41 = vld [vmem:[%s13103_s6 + $0x1a0] sm:$0xff] }
 0x5c5   :  { %6210 = vmatpush.bf16.msrb.mxu3 %v10037_v21 }
 0x5c6   :  { %5805 = vmatmul.f32.gmra.mxu1 %v8917_v43  ;;  %6856 = vmatpush.bf16.msrb.mxu0 %v10103_v45  ;;  %v10064_v43 = vld [vmem:[%s13103_s6 + $0x1f8] sm:$0xff]  ;;  %v10057_v45 = vld [vmem:[%s13103_s6 + $0x1c0] sm:$0xff] }
 0x5c7   :  { %6050 = vmatpush.bf16.msra.mxu1 %v10020_v44 }
 0x5c8   :  { %6131 = vmatpush.bf16.msrb.mxu2 %v10028_v5 }
 0x5c9   :  { %6211 = vmatpush.bf16.msrb.mxu3 %v10036_v6 }
 0x5ca   :  { %6857 = vmatpush.bf16.msrb.mxu0 %v10102_v47  ;;  %v10049_v47 = vld [vmem:[%s13103_s6 + $0x180] sm:$0xff] }
 0x5cb   :  { %6051 = vmatpush.bf16.msra.mxu1 %v10019_v54 }
 0x5cc   :  { %6132 = vmatpush.bf16.msrb.mxu2 %v10027_v24 }
 0x5cd   :  { %6212 = vmatpush.bf16.msrb.mxu3 %v10035_v37 }
 0x5ce   :  { %5808 = vmatmul.f32.gmra.mxu1 %v8918_v0  ;;  %6858 = vmatpush.bf16.msrb.mxu0 %v10101_v34 }
 0x5cf   :  { %6052 = vmatpush.bf16.msra.mxu1 %v10018_v11  ;;  %v10063_v11 = vld [vmem:[%s13103_s6 + $0x1f0] sm:$0xff] }
 0x5d0   :  { %6133 = vmatpush.bf16.msrb.mxu2 %v10026_v17  ;;  %v10051_v17 = vld [vmem:[%s13103_s6 + $0x190] sm:$0xff] }
 0x5d1   :  { %6213 = vmatpush.bf16.msrb.mxu3 %v10034_v32 }
 0x5d2   :  { %6859 = vmatpush.bf16.msrb.mxu0 %v10100_v3 }
 0x5d3   :  { %6053 = vmatpush.bf16.msra.mxu1 %v10017_v62  ;;  %v10055_v62 = vld [vmem:[%s13103_s6 + $0x1b0] sm:$0xff] }
 0x5d4   :  { %6134 = vmatpush.bf16.msrb.mxu2 %v10025_v46 }
 0x5d5   :  { %6214 = vmatpush.bf16.msrb.mxu3 %v10033_v8 }
 0x5d6   :  { %6860 = vmatpush.bf16.msrb.mxu0 %v10099_v25  ;;  %v10087_v25 = vld [vmem:[%s13103_s6 + $0x2b0] sm:$0xff] }
 0x5d7   :  { %6289 = vmatpush.bf16.msrb.mxu1 %v10048_v16 }
 0x5da   :  { %6861 = vmatpush.bf16.msrb.mxu0 %v10098_v27  ;;  %v10110_v27 = vld [vmem:[%s13103_s6 + $0x368] sm:$0xff] }
 0x5db   :  { %6290 = vmatpush.bf16.msrb.mxu1 %v10047_v53  ;;  %v10054_v53 = vld [vmem:[%s13103_s6 + $0x1a8] sm:$0xff] }
 0x5de   :  { %6862 = vmatpush.bf16.msrb.mxu0 %v10097_v18  ;;  %v10083_v18 = vld [vmem:[%s13103_s6 + $0x290] sm:$0xff] }
 0x5df   :  { %6291 = vmatpush.bf16.msrb.mxu1 %v10046_v38 }
 0x5e3   :  { %6292 = vmatpush.bf16.msrb.mxu1 %v10045_v1  ;;  %v10077_v1 = vld [vmem:[%s13103_s6 + $0x260] sm:$0xff] }
 0x5e7   :  { %6293 = vmatpush.bf16.msrb.mxu1 %v10044_v51  ;;  %v10060_v51 = vld [vmem:[%s13103_s6 + $0x1d8] sm:$0xff] }
 0x5eb   :  { %6294 = vmatpush.bf16.msrb.mxu1 %v10043_v57  ;;  %v10059_v57 = vld [vmem:[%s13103_s6 + $0x1d0] sm:$0xff] }
 0x5ef   :  { %6295 = vmatpush.bf16.msrb.mxu1 %v10042_v12  ;;  %v10075_v12 = vld [vmem:[%s13103_s6 + $0x250] sm:$0xff] }
 0x5f3   :  { %6296 = vmatpush.bf16.msrb.mxu1 %v10041_v4  ;;  %v10050_v4 = vld [vmem:[%s13103_s6 + $0x188] sm:$0xff] }
 0x613   :  { %v5690_v9 = vpop.f32.mrf.mxu1 }
 0x61a   :  { %v5724_v40 = vpop.f32.mrf.mxu2 }
 0x61b   :  { %v5693_v49 = vpop.f32.mrf.mxu1  ;;  %v5762_v56 = vpop.f32.mrf.mxu3  ;;  %v5736_v35 = vmax.f32 %v5690_v9, %v5724_v40  ;;  %v10076_v9 = vld [vmem:[%s13103_s6 + $0x258] sm:$0xff]  ;;  %v10073_v40 = vld [vmem:[%s13103_s6 + $0x240] sm:$0xff] }
 0x61d   :  { %v5774_v28 = vmax.f32 %v5736_v35, %v5762_v56  ;;  %v10112_v56 = vld [vmem:[%s13103_s6 + $0x378] sm:$0xff]  ;;  %v10095_v35 = vld [vmem:[%s13103_s6 + $0x2f0] sm:$0xff] }
 0x622   :  { %v5727_v7 = vpop.f32.mrf.mxu2 }
 0x623   :  { %v5696_v50 = vpop.f32.mrf.mxu1  ;;  %v5765_v58 = vpop.f32.mrf.mxu3  ;;  %v5737_v0 = vmax.f32 %v5693_v49, %v5727_v7  ;;  %v10058_v49 = vld [vmem:[%s13103_s6 + $0x1c8] sm:$0xff] }
 0x625   :  { %v5775_v26 = vmax.f32 %v5737_v0, %v5765_v58  ;;  %v10094_v58 = vld [vmem:[%s13103_s6 + $0x2e8] sm:$0xff]  ;;  %v10109_v0 = vld [vmem:[%s13103_s6 + $0x360] sm:$0xff] }
 0x62a   :  { %v5730_v59 = vpop.f32.mrf.mxu2 }
 0x62b   :  { %v12845_v15 = vpop.f32.mrf.mxu1  ;;  %v5738_v22 = vmax.f32 %v5696_v50, %v5730_v59  ;;  %v5768_v33 = vpop.f32.mrf.mxu3  ;;  %v10096_v50 = vld [vmem:[%s13103_s6 + $0x2f8] sm:$0xff]  ;;  %v10082_v59 = vld [vmem:[%s13103_s6 + $0x288] sm:$0xff] }
 0x62d   :  { %v5776_v38 = vmax.f32 %v5738_v22, %v5768_v33  ;;  %v10105_v22 = vld [vmem:[%s13103_s6 + $0x340] sm:$0xff] }
 0x632   :  { %v5733_v37 = vpop.f32.mrf.mxu2 }
 0x633   :  { %v5800_v14 = vpop.f32.mrf.mxu1  ;;  %v5739_v32 = vmax.f32 %v12845_v15, %v5733_v37  ;;  %v5771_v48 = vpop.f32.mrf.mxu3  ;;  %v10088_v15 = vld [vmem:[%s13103_s6 + $0x2b8] sm:$0xff]  ;;  %v10114_v37 = vld [vmem:[%s13103_s6 + $0x388] sm:$0xff] }
 0x634   :  { %v5812_v30 = vmax.f32 %v5774_v28, %v5800_v14  ;;  %v10111_v14 = vld [vmem:[%s13103_s6 + $0x370] sm:$0xff] }
 0x635   :  { %v5777_v46 = vmax.f32 %v5739_v32, %v5771_v48 }
 0x636   :  { %v5816_v10 = vmax.f32 %v5812_v30, 0.0 }
 0x638   :  { %v5820_v44 = vpack.c.bf16 %v5816_v10, %v5816_v10  ;;  %v10086_v10 = vld [vmem:[%s13103_s6 + $0x2a8] sm:$0xff] }
 0x63a   :  { %v5855_v54 = vrot.slane %v5820_v44, 1  ;;  %v5996_v2 = vrot.slane %v5820_v44, 2  ;;  %5974 = vmatmul.bf16.vlgmr.msra.gmra.mxu3 %v5820_v44  ;;  %v6077_v60 = vrot.slane %v5820_v44, 3  ;;  %v10085_v44 = vld [vmem:[%s13103_s6 + $0x2a0] sm:$0xff] }
 0x63b   :  { %6451 = vmatpush.bf16.msra.mxu3 %v10064_v43  ;;  %v5803_v63 = vpop.f32.mrf.mxu1  ;;  %v10093_v43 = vld [vmem:[%s13103_s6 + $0x2e0] sm:$0xff] }
 0x63c   :  { %5913 = vmatmul.bf16.vlgmr.msra.gmra.mxu2 %v5855_v54  ;;  %6054 = vmatmul.bf16.vlgmr.msra.gmra.mxu1 %v5996_v2  ;;  %v5813_v16 = vmax.f32 %v5775_v26, %v5803_v63  ;;  %v10108_v54 = vld [vmem:[%s13103_s6 + $0x358] sm:$0xff]  ;;  %v10091_v2 = vld [vmem:[%s13103_s6 + $0x2d0] sm:$0xff]  ;;  %v10090_v63 = vld [vmem:[%s13103_s6 + $0x2c8] sm:$0xff] }
 0x63d   :  { %6370 = vmatpush.bf16.msra.mxu2 %v10056_v31  ;;  %6613 = vmatpush.bf16.msra.mxu1 %v10080_v20  ;;  %v10092_v31 = vld [vmem:[%s13103_s6 + $0x2d8] sm:$0xff]  ;;  %v10106_v26 = vld [vmem:[%s13103_s6 + $0x348] sm:$0xff] }
 0x63e   :  { %v5817_v23 = vmax.f32 %v5813_v16, 0.0  ;;  %v10084_v20 = vld [vmem:[%s13103_s6 + $0x298] sm:$0xff]  ;;  %v10081_v16 = vld [vmem:[%s13103_s6 + $0x280] sm:$0xff] }
 0x63f   :  { %6452 = vmatpush.bf16.msra.mxu3 %v10063_v11  ;;  %v10107_v11 = vld [vmem:[%s13103_s6 + $0x350] sm:$0xff] }
 0x640   :  { %v6141_v6 = vpack.c.bf16 %v5817_v23, %v5817_v23 }
 0x641   :  { %6371 = vmatpush.bf16.msra.mxu2 %v10055_v62  ;;  %6614 = vmatpush.bf16.msra.mxu1 %v10079_v61  ;;  %v10089_v62 = vld [vmem:[%s13103_s6 + $0x2c0] sm:$0xff]  ;;  %v10128_v61 = vld [vmem:[%s13103_s6 + $0x3f8] sm:$0xff] }
 0x642   :  { %v6239_v24 = vrot.slane %v6141_v6, 1  ;;  %v6401_v3 = vrot.slane %v6141_v6, 3  ;;  %v6320_v28 = vrot.slane %v6141_v6, 2 }
 0x643   :  { %6453 = vmatpush.bf16.msra.mxu3 %v10062_v55  ;;  %v5806_v21 = vpop.f32.mrf.mxu1  ;;  %v10120_v55 = vld [vmem:[%s13103_s6 + $0x3b8] sm:$0xff] }
 0x644   :  { %v5814_v13 = vmax.f32 %v5776_v38, %v5806_v21  ;;  %v10119_v38 = vld [vmem:[%s13103_s6 + $0x3b0] sm:$0xff]  ;;  %v10118_v21 = vld [vmem:[%s13103_s6 + $0x3a8] sm:$0xff] }
 0x645   :  { %6372 = vmatpush.bf16.msra.mxu2 %v10054_v53  ;;  %6615 = vmatpush.bf16.msra.mxu1 %v10078_v39  ;;  %v10127_v53 = vld [vmem:[%s13103_s6 + $0x3f0] sm:$0xff] }
 0x646   :  { %v5818_v5 = vmax.f32 %v5814_v13, 0.0  ;;  %v10125_v13 = vld [vmem:[%s13103_s6 + $0x3e0] sm:$0xff] }
 0x647   :  { %6454 = vmatpush.bf16.msra.mxu3 %v10061_v29  ;;  %v10126_v29 = vld [vmem:[%s13103_s6 + $0x3e8] sm:$0xff] }
 0x648   :  { %v12898_v42 = vpack.c.bf16 %v5818_v5, %v5818_v5  ;;  %v10123_v5 = vld [vmem:[%s13103_s6 + $0x3d0] sm:$0xff] }
 0x649   :  { %6373 = vmatpush.bf16.msra.mxu2 %v10053_v41  ;;  %6616 = vmatpush.bf16.msra.mxu1 %v10077_v1  ;;  %v10117_v41 = vld [vmem:[%s13103_s6 + $0x3a0] sm:$0xff]  ;;  %v10124_v1 = vld [vmem:[%s13103_s6 + $0x3d8] sm:$0xff] }
 0x64a   :  { %6215 = vmatmul.bf16.vlgmr.msrb.gmra.mxu3 %v6141_v6  ;;  %6539 = vmatmul.bf16.vlgmr.msra.gmra.mxu0 %v12898_v42  ;;  %v6563_v30 = vrot.slane %v12898_v42, 1  ;;  %v6725_v33 = vrot.slane %v12898_v42, 3  ;;  %v6644_v39 = vrot.slane %v12898_v42, 2  ;;  %v10116_v6 = vld [vmem:[%s13103_s6 + $0x398] sm:$0xff]  ;;  %v10122_v42 = vld [vmem:[%s13103_s6 + $0x3c8] sm:$0xff] }
 0x64b   :  { %6455 = vmatpush.bf16.msra.mxu3 %v10060_v51  ;;  %v5809_v8 = vpop.f32.mrf.mxu1  ;;  %v10115_v51 = vld [vmem:[%s13103_s6 + $0x390] sm:$0xff] }
 0x64c   :  { %6135 = vmatmul.bf16.vlgmr.msrb.gmra.mxu2 %v6077_v60  ;;  %6297 = vmatmul.bf16.vlgmr.msrb.gmra.mxu1 %v6239_v24  ;;  %v5815_v36 = vmax.f32 %v5777_v46, %v5809_v8 }
 0x64d   :  { %6374 = vmatpush.bf16.msra.mxu2 %v10052_v52  ;;  %6617 = vmatpush.bf16.msra.mxu1 %v10076_v9  ;;  %v10121_v52 = vld [vmem:[%s13103_s6 + $0x3c0] sm:$0xff] }
 0x64e   :  { %v5819_v34 = vmax.f32 %v5815_v36, 0.0  ;;  %v10113_v9 = vld [vmem:[%s13103_s6 + $0x380] sm:$0xff] }
 0x64f   :  { %6456 = vmatpush.bf16.msra.mxu3 %v10059_v57 }
 0x650   :  { %v12947_v7 = vpack.c.bf16 %v5819_v34, %v5819_v34 }
 0x651   :  { %6375 = vmatpush.bf16.msra.mxu2 %v10051_v17  ;;  %6618 = vmatpush.bf16.msra.mxu1 %v10075_v12 }
 0x652   :  { %v6887_v23 = vrot.slane %v12947_v7, 1  ;;  %v7049_v60 = vrot.slane %v12947_v7, 3  ;;  %v6968_v24 = vrot.slane %v12947_v7, 2 }
 0x653   :  { %6457 = vmatpush.bf16.msra.mxu3 %v10058_v49 }
 0x655   :  { %6376 = vmatpush.bf16.msra.mxu2 %v10050_v4  ;;  %6619 = vmatpush.bf16.msra.mxu1 %v10074_v19 }
 0x657   :  { %6458 = vmatpush.bf16.msra.mxu3 %v10057_v45 }
 0x659   :  { %6377 = vmatpush.bf16.msra.mxu2 %v10049_v47  ;;  %6620 = vmatpush.bf16.msra.mxu1 %v10073_v40 }
 0x65a   :  { %6459 = vmatmul.bf16.vlgmr.msra.gmra.mxu3 %v6401_v3  ;;  %6863 = vmatmul.bf16.vlgmr.msrb.gmra.mxu0 %v12947_v7 }
 0x65b   :  { %6775 = vmatpush.bf16.msrb.mxu3 %v10096_v50 }
 0x65c   :  { %6378 = vmatmul.bf16.vlgmr.msra.gmra.mxu2 %v6320_v28  ;;  %6621 = vmatmul.bf16.vlgmr.msra.gmra.mxu1 %v6563_v30 }
 0x65d   :  { %6694 = vmatpush.bf16.msrb.mxu2 %v10088_v15  ;;  %6937 = vmatpush.bf16.msrb.mxu1 %v10112_v56 }
 0x65f   :  { %6776 = vmatpush.bf16.msrb.mxu3 %v10095_v35 }
 0x661   :  { %6695 = vmatpush.bf16.msrb.mxu2 %v10087_v25  ;;  %6938 = vmatpush.bf16.msrb.mxu1 %v10111_v14 }
 0x663   :  { %6777 = vmatpush.bf16.msrb.mxu3 %v10094_v58 }
 0x665   :  { %6696 = vmatpush.bf16.msrb.mxu2 %v10086_v10  ;;  %6939 = vmatpush.bf16.msrb.mxu1 %v10110_v27 }
 0x667   :  { %6778 = vmatpush.bf16.msrb.mxu3 %v10093_v43  ;;  %v10136_v43 = vld [vmem:[%s13105_s8 + $0x38] sm:$0xff] }
 0x668   :  { %7188 = vmatpush.bf16.msra.mxu0 %v10136_v43 }
 0x669   :  { %6697 = vmatpush.bf16.msrb.mxu2 %v10085_v44  ;;  %6940 = vmatpush.bf16.msrb.mxu1 %v10109_v0  ;;  %v10135_v0 = vld [vmem:[%s13105_s8 + $0x30] sm:$0xff] }
 0x66b   :  { %6779 = vmatpush.bf16.msrb.mxu3 %v10092_v31 }
 0x66c   :  { %7189 = vmatpush.bf16.msra.mxu0 %v10135_v0 }
 0x66d   :  { %6698 = vmatpush.bf16.msrb.mxu2 %v10084_v20  ;;  %6941 = vmatpush.bf16.msrb.mxu1 %v10108_v54  ;;  %v10134_v20 = vld [vmem:[%s13105_s8 + $0x28] sm:$0xff]  ;;  %v10133_v54 = vld [vmem:[%s13105_s8 + $0x20] sm:$0xff] }
 0x66f   :  { %6780 = vmatpush.bf16.msrb.mxu3 %v10091_v2  ;;  %v10132_v2 = vld [vmem:[%s13105_s8 + $0x18] sm:$0xff] }
 0x670   :  { %7190 = vmatpush.bf16.msra.mxu0 %v10134_v20 }
 0x671   :  { %6699 = vmatpush.bf16.msrb.mxu2 %v10083_v18  ;;  %6942 = vmatpush.bf16.msrb.mxu1 %v10107_v11 }
 0x673   :  { %6781 = vmatpush.bf16.msrb.mxu3 %v10090_v63  ;;  %v10131_v63 = vld [vmem:[%s13105_s8 + $0x10] sm:$0xff] }
 0x674   :  { %7191 = vmatpush.bf16.msra.mxu0 %v10133_v54 }
 0x675   :  { %6700 = vmatpush.bf16.msrb.mxu2 %v10082_v59  ;;  %6943 = vmatpush.bf16.msrb.mxu1 %v10106_v26 }
 0x677   :  { %6782 = vmatpush.bf16.msrb.mxu3 %v10089_v62  ;;  %v10130_v62 = vld [vmem:[%s13105_s8 + $0x8] sm:$0xff] }
 0x678   :  { %7192 = vmatpush.bf16.msra.mxu0 %v10132_v2 }
 0x679   :  { %6701 = vmatpush.bf16.msrb.mxu2 %v10081_v16  ;;  %6944 = vmatpush.bf16.msrb.mxu1 %v10105_v22  ;;  %v10129_v16 = vld [vmem:[%s13105_s8] sm:$0xff] }
 0x67a   :  { %6783 = vmatmul.bf16.vlgmr.msrb.gmra.mxu3 %v6725_v33 }
 0x67b   :  { %7099 = vmatpush.bf16.msra.mxu3 %v10128_v61 }
 0x67c   :  { %6702 = vmatmul.bf16.vlgmr.msrb.gmra.mxu2 %v6644_v39  ;;  %6945 = vmatmul.bf16.vlgmr.msrb.gmra.mxu1 %v6887_v23 }
 0x67d   :  { %7018 = vmatpush.bf16.msra.mxu2 %v10120_v55  ;;  %7193 = vmatpush.bf16.msra.mxu0 %v10131_v63 }
 0x67f   :  { %7100 = vmatpush.bf16.msra.mxu3 %v10127_v53 }
 0x681   :  { %7019 = vmatpush.bf16.msra.mxu2 %v10119_v38  ;;  %7194 = vmatpush.bf16.msra.mxu0 %v10130_v62 }
 0x683   :  { %7101 = vmatpush.bf16.msra.mxu3 %v10126_v29 }
 0x685   :  { %7020 = vmatpush.bf16.msra.mxu2 %v10118_v21  ;;  %7195 = vmatpush.bf16.msra.mxu0 %v10129_v16 }
 0x687   :  { %7102 = vmatpush.bf16.msra.mxu3 %v10125_v13  ;;  %v10143_v13 = vld [vmem:[%s13104_s7] ss:$0 sm:$0xff]  ;;  %s10241_s7 = smov [#allocation3]  }
 0x689   :  { %7021 = vmatpush.bf16.msra.mxu2 %v10117_v41 }
 0x68b   :  { %7103 = vmatpush.bf16.msra.mxu3 %v10124_v1 }
 0x68d   :  { %7022 = vmatpush.bf16.msra.mxu2 %v10116_v6 }
 0x68f   :  { %7104 = vmatpush.bf16.msra.mxu3 %v10123_v5 }
 0x691   :  { %7023 = vmatpush.bf16.msra.mxu2 %v10115_v51 }
 0x693   :  { %7105 = vmatpush.bf16.msra.mxu3 %v10122_v42 }
 0x695   :  { %7024 = vmatpush.bf16.msra.mxu2 %v10114_v37  ;;  %v7201_v37 = vlaneseq }
 0x697   :  { %7106 = vmatpush.bf16.msra.mxu3 %v10121_v52  ;;  %v7202_v52 = vand.u32 127, %v7201_v37 }
 0x699   :  { %7025 = vmatpush.bf16.msra.mxu2 %v10113_v9  ;;  %v10144_v9 = vld [vmem:[%s13106_s9] ss:$0 sm:$0xff]  ;;  %vm7203_vm3 = vcmp.lt.s32.totalorder %v7202_v52, 3  ;;  %s7224_s9 = sshll.u32 %s10241_s7, 4  ;;  %s7225_s9 = int_to_ptr.vmem [resolvable:$true] %s7224_s9 }
 0x69a   :  { %7107 = vmatmul.bf16.vlgmr.msra.gmra.mxu3 %v7049_v60 }
 0x69c   :  { %7026 = vmatmul.bf16.vlgmr.msra.gmra.mxu2 %v6968_v24 }
 0x6b9   :  { %v6055_v57 = vpop.f32.mrf.mxu1 }
 0x6bd   :  { %v5975_v32 = vpop.f32.mrf.mxu3 }
 0x6bf   :  { %v5914_v48 = vpop.f32.mrf.mxu2 }
 0x6c0   :  { %v5976_v17 = vadd.f32 %v5975_v32, %v5914_v48 }
 0x6c1   :  { %v6057_v12 = vpop.f32.mrf.mxu1 }
 0x6c2   :  { %v6059_v8 = vadd.f32 %v6055_v57, %v5976_v17 }
 0x6c5   :  { %v5977_v49 = vpop.f32.mrf.mxu3 }
 0x6c7   :  { %v5916_v46 = vpop.f32.mrf.mxu2  ;;  %v6540_v4 = vpop.f32.mrf.mxu0 }
 0x6c9   :  { %v6298_v19 = vpop.f32.mrf.mxu1 }
 0x6cd   :  { %v6216_v36 = vpop.f32.mrf.mxu3 }
 0x6cf   :  { %v6136_v45 = vpop.f32.mrf.mxu2  ;;  %v6542_v50 = vpop.f32.mrf.mxu0 }
 0x6d0   :  { %v6140_v34 = vadd.f32 %v6136_v45, %v6059_v8 }
 0x6d1   :  { %v6300_v47 = vpop.f32.mrf.mxu1 }
 0x6d2   :  { %v6220_v35 = vadd.f32 %v6216_v36, %v6140_v34 }
 0x6d4   :  { %v6302_v28 = vadd.f32 %v6298_v19, %v6220_v35 }
 0x6d5   :  { %v6218_v40 = vpop.f32.mrf.mxu3 }
 0x6d7   :  { %v6138_v15 = vpop.f32.mrf.mxu2  ;;  %v6864_v56 = vpop.f32.mrf.mxu0 }
 0x6d9   :  { %v6622_v3 = vpop.f32.mrf.mxu1 }
 0x6dd   :  { %v6460_v7 = vpop.f32.mrf.mxu3 }
 0x6df   :  { %v6379_v25 = vpop.f32.mrf.mxu2  ;;  %v6866_v30 = vpop.f32.mrf.mxu0 }
 0x6e0   :  { %v6383_v14 = vadd.f32 %v6379_v25, %v6302_v28 }
 0x6e1   :  { %v6624_v10 = vpop.f32.mrf.mxu1 }
 0x6e2   :  { %v6464_v58 = vadd.f32 %v6460_v7, %v6383_v14 }
 0x6e4   :  { %v6544_v27 = vadd.f32 %v6540_v4, %v6464_v58 }
 0x6e5   :  { %v6462_v44 = vpop.f32.mrf.mxu3 }
 0x6e6   :  { %v6626_v55 = vadd.f32 %v6622_v3, %v6544_v27 }
 0x6e7   :  { %v6381_v31 = vpop.f32.mrf.mxu2 }
 0x6f9   :  { %v6946_v18 = vpop.f32.mrf.mxu1 }
 0x6fd   :  { %v6784_v11 = vpop.f32.mrf.mxu3 }
 0x6ff   :  { %v6703_v59 = vpop.f32.mrf.mxu2 }
 0x700   :  { %v6707_v33 = vadd.f32 %v6703_v59, %v6626_v55 }
 0x701   :  { %v6948_v26 = vpop.f32.mrf.mxu1 }
 0x702   :  { %v6788_v53 = vadd.f32 %v6784_v11, %v6707_v33 }
 0x704   :  { %v6868_v39 = vadd.f32 %v6864_v56, %v6788_v53 }
 0x705   :  { %v6786_v61 = vpop.f32.mrf.mxu3 }
 0x706   :  { %v6950_v38 = vadd.f32 %v6946_v18, %v6868_v39 }
 0x707   :  { %v6705_v22 = vpop.f32.mrf.mxu2 }
 0x71d   :  { %v7108_v23 = vpop.f32.mrf.mxu3 }
 0x71f   :  { %v7027_v29 = vpop.f32.mrf.mxu2 }
 0x720   :  { %v7031_v21 = vadd.f32 %v7027_v29, %v6950_v38 }
 0x722   :  { %v7112_v41 = vadd.f32 %v7108_v23, %v7031_v21 }
 0x724   :  { %v7117_v1 = vadd.f32 %v10143_v13, %v7112_v41 }
 0x725   :  { %v7110_v5 = vpop.f32.mrf.mxu3 }
 0x726   :  { %v7118_v6 = vmax.f32 %v7117_v1, 0.0 }
 0x727   :  { %v7029_v51 = vpop.f32.mrf.mxu2 }
 0x728   :  { %v7119_v42 = vpack.c.bf16 %v7118_v6, %v7118_v6 }
 0x72a   :  { %7196 = vmatmul.bf16.vlgmr.msra.gmra.mxu0 %v7119_v42 }
 0x7a7   :  { %v7197_v60 = vpop.f32.mrf.mxu0 }
 0x7a8   :  { %v7198_v24 = vadd.f32 %v10144_v9, %v7197_v60 }
 0x7aa   :  { %v7204_v57 = vsel %vm7203_vm3, %v7198_v24, -1e+30 }
 0x7ab   :  { %v7206_v32 = vsel %vm7205_vm4, %v7204_v57, -inf }
 0x7ac   :  { %7207 = vmax.xlane.f32.xlu0 %v7206_v32 }
 0x7af   :  { %v7199_v48 = vpop.f32.mrf.mxu0 }
 0x81f   :  { %v7208_v17 = vpop.xlane.xlu0 %7207 }
 0x820   :  { %v7209_v12 = vsub.f32 %v7204_v57, %v7208_v17 }
 0x822   :  { %v7210_v8 = vmul.f32 1.442695, %v7209_v12 }
 0x824   :  { %10145 = vpow2.f32 %v7210_v8 }
 0x82a   :  { %v10146_v49 = vpop.eup %10145 }
 0x82b   :  { %v7212_v46 = vsel %vm7205_vm4, %v10146_v49, 0.0 }
 0x82c   :  { %7213 = vadd.xlane.f32.xlu0 %v7212_v46 }
 0x89f   :  { %v7214_v4 = vpop.xlane.xlu0 %7213 }
 0x8a0   :  { %10147 = vlog2.f32 %v7214_v4 }
 0x8a6   :  { %v10148_v19 = vpop.eup %10147 }
 0x8a7   :  { %v7216_v36 = vmul.f32 0.6931472, %v10148_v19 }
 0x8a9   :  { %v7217_v45 = vsub.f32 %v7209_v12, %v7216_v36 }
 0x8ab   :  { %7218 = vst [vmem:[#allocation3] sm:$0x3] %v7217_v45 }
 0x8ac   :  { %7229 = dma.vmem_to_hbm [thread:$0]  %s7225_s9, 32, %s7227_s3, [#allocation4]  }
 0x8ad   :  { %10238 = dma.done.wait [#allocation4], 32  }
 0x8ae   :  { %10239 = vsyncadd [#allocation4], 4294967264 }
 0x8af   :  { %7234 = vsyncpa [#allocation4], 1 }

</bundles_post_ra>
